<compile_context>
chip_gen: v7x
topology: tpu7x:2x2x1
jax: 0.10.0
libtpu: 0.0.40
codegen_flags: <defaults>
</compile_context>

<pallas_src>
import jax
import jax.numpy as jnp
from jax.experimental import pallas as pl
from jax.experimental.pallas import tpu as pltpu

IN_FEATURES = 28 * 56          # 1568 (kept un-padded; Mosaic handles non-128 K)
H1_DIM, H2_DIM, H34_DIM = 800, 600, 800
HEAD_WIDTH = 128               # lane-dense fused head output (48 real + 80 zero cols)
# column ranges of the four heads (fc5, fc6, fc7, fc8) inside the fused output
HEAD_SLICES = ((0, 20), (20, 24), (24, 44), (44, 48))


def _mlp_kernel(x_ref, w1, b1, w2, b2, w34, b34, wh, bh, out_ref):
    """One batch tile of the fused branchy MLP. Weights stay VMEM-resident."""

    def linear(a, w_ref, b_ref):
        # bf16 MXU matmul, f32 accumulation, f32 bias add.
        return jnp.dot(a.astype(w_ref.dtype), w_ref[...],
                       preferred_element_type=jnp.float32) + b_ref[...]

    x = x_ref[...]                                            # (tm, 1568) bf16
    h1 = jnp.maximum(linear(x, w1, b1), 0.0)                  # (tm, 800) f32
    h2 = jnp.maximum(linear(h1, w2, b2), 0.0)                 # (tm, 600) f32
    h34 = jnp.maximum(linear(h2, w34, b34), 0.0)              # (tm, 800) = [h3 | h4]
    out_ref[...] = linear(h34, wh, bh).astype(out_ref.dtype)  # (tm, 128) = [h5|h6|h7|h8|0]


def init_params(key):
    """Deterministic synthetic parameters: (in, out) weights and (1, out) biases."""
    dims = [
        (28 * 56, 800),  # fc1
        (800, 600),      # fc2
        (600, 400),      # fc3
        (600, 400),      # fc4
        (400, 20),       # fc5
        (400, 4),        # fc6
        (400, 20),       # fc7
        (400, 4),        # fc8
    ]
    params = []
    for i, (fan_in, fan_out) in enumerate(dims):
        kw, kb = jax.random.split(jax.random.fold_in(key, i))
        scale = 1.0 / jnp.sqrt(jnp.float32(fan_in))
        w = jax.random.uniform(kw, (fan_in, fan_out), jnp.float32, -scale, scale)
        b = jax.random.uniform(kb, (1, fan_out), jnp.float32, -scale, scale)
        params.append((w, b))
    return params


def fuse_params(params, weight_dtype=jnp.bfloat16):
    """Plain-JAX parameter prep: fuse branches/heads, cast weights to bf16.

    No K-dim padding: fc1 keeps its 1568 contraction dim.
    """
    (w1, b1), (w2, b2), (w3, b3), (w4, b4), \
        (w5, b5), (w6, b6), (w7, b7), (w8, b8) = params

    # fc3/fc4 share input h2 -> one (600, 800) weight / (1, 800) bias.
    w34 = jnp.concatenate([w3, w4], axis=1)
    b34 = jnp.concatenate([b3, b4], axis=1)

    # Heads fc5..fc8 -> block-diagonal (800, 128) weight, lane-dense output.
    wh = jnp.zeros((H34_DIM, HEAD_WIDTH), jnp.float32)
    wh = wh.at[:400, 0:20].set(w5)
    wh = wh.at[:400, 20:24].set(w6)
    wh = wh.at[400:, 24:44].set(w7)
    wh = wh.at[400:, 44:48].set(w8)
    bh = jnp.zeros((1, HEAD_WIDTH), jnp.float32)
    bh = bh.at[:, 0:20].set(b5)
    bh = bh.at[:, 20:24].set(b6)
    bh = bh.at[:, 24:44].set(b7)
    bh = bh.at[:, 44:48].set(b8)

    to_w = lambda w: w.astype(weight_dtype)
    # Weights bf16, biases stay f32 (tiny, added post-accumulation).
    return (to_w(w1), b1, to_w(w2), b2, to_w(w34), b34, to_w(wh), bh)


def _round_up(v, m):
    return ((v + m - 1) // m) * m


def _choose_tile(n):
    """Batch tile size. bf16 x => rows must be a multiple of 16 (sublane packing)."""
    if n <= 256:
        # Tiny batches: single tile (the call is weight-load bound anyway).
        return _round_up(max(n, 16), 16)
    # Larger batches: cap at 512 rows/tile and keep the grid length >= 2 so the
    # "parallel" batch axis shards across v7x's two TensorCores.
    return min(512, _round_up((n + 1) // 2, 16))


def _vmem_limit_bytes(tm, fused_params):
    """Right-sized VMEM budget from the actual tile/weight footprint."""
    # Weight + bias blocks are double-buffered by the default pipeliner.
    wbytes = 2 * sum(int(a.size) * a.dtype.itemsize for a in fused_params)
    per_row = (
        IN_FEATURES * 2 * 2                              # x bf16 tile, 2 buffers
        + HEAD_WIDTH * 4 * 2                             # out f32 tile, 2 buffers
        + (H1_DIM + H2_DIM + H34_DIM + HEAD_WIDTH) * 4   # f32 intermediates
        + (H1_DIM + H2_DIM + H34_DIM) * 2                # bf16 casts feeding the MXU
    )
    total = wbytes + tm * per_row
    # 1.5x margin + 4 MiB for Mosaic internal scratch; floor 20 MiB, cap 56 MiB
    # (stays well inside v7x's 64 MiB/TC, trivially inside v5e/v6e's 128 MiB).
    budget = int(total * 1.5) + (4 << 20)
    return max(20 << 20, min(budget, 56 << 20))


@jax.jit
def mnist_classifier_forward(x, fused_params):
    # x: (B, 1, 28, 56) float32, NCHW like the PyTorch module.
    w1, b1, w2, b2, w34, b34, wh, bh = fused_params

    # Reshape is a free view; the bf16 cast halves the kernel's x DMA (the MXU
    # multiplies in bf16 anyway, so numerics are unchanged).
    x2 = x.reshape(-1, IN_FEATURES).astype(jnp.bfloat16)
    n = x2.shape[0]

    tm = _choose_tile(n)
    n_pad = _round_up(n, tm)
    # Only pad the batch dim, and only when actually needed.
    x_in = x2 if n_pad == n else jnp.pad(x2, ((0, n_pad - n), (0, 0)))

    grid = (n_pad // tm,)

    def weight_spec(a):
        # Full-array block, constant index map -> VMEM-resident across the grid.
        return pl.BlockSpec(a.shape, lambda i: (0, 0))

    in_specs = [
        # Last dim equals the full array dim (1568), so it is exempt from the
        # 128-divisibility rule; tm is a multiple of 16 for bf16 packing.
        pl.BlockSpec((tm, IN_FEATURES), lambda i: (i, 0)),
        weight_spec(w1), weight_spec(b1),
        weight_spec(w2), weight_spec(b2),
        weight_spec(w34), weight_spec(b34),
        weight_spec(wh), weight_spec(bh),
    ]
    out_spec = pl.BlockSpec((tm, HEAD_WIDTH), lambda i: (i, 0))

    flops = 2 * n_pad * (IN_FEATURES * H1_DIM + H1_DIM * H2_DIM
                         + H2_DIM * H34_DIM + H34_DIM * HEAD_WIDTH)
    bytes_accessed = (
        int(x_in.size) * x_in.dtype.itemsize          # bf16 x read
        + n_pad * HEAD_WIDTH * 4                      # f32 fused-head output write
        + sum(int(a.size) * a.dtype.itemsize
              for a in (w1, b1, w2, b2, w34, b34, wh, bh)))

    out = pl.pallas_call(
        _mlp_kernel,
        out_shape=jax.ShapeDtypeStruct((n_pad, HEAD_WIDTH), jnp.float32),
        grid_spec=pltpu.PrefetchScalarGridSpec(
            num_scalar_prefetch=0,
            grid=grid,
            in_specs=in_specs,
            out_specs=out_spec),
        compiler_params=pltpu.CompilerParams(
            dimension_semantics=("parallel",),
            vmem_limit_bytes=_vmem_limit_bytes(tm, fused_params)),
        cost_estimate=pl.CostEstimate(
            flops=flops, transcendentals=0, bytes_accessed=bytes_accessed),
    )(x_in, w1, b1, w2, b2, w34, b34, wh, bh)

    # Slice the lane-dense fused output back into the four head tensors.
    return [out[:n, lo:hi] for lo, hi in HEAD_SLICES]


def reference_forward(x, params):
    """Pure-JAX f32 reference matching the PyTorch forward exactly."""
    x2 = x.reshape(-1, IN_FEATURES).astype(jnp.float32)
    (w1, b1), (w2, b2), (w3, b3), (w4, b4), \
        (w5, b5), (w6, b6), (w7, b7), (w8, b8) = params
    h1 = jnp.maximum(x2 @ w1 + b1, 0.0)
    h2 = jnp.maximum(h1 @ w2 + b2, 0.0)
    h3 = jnp.maximum(h2 @ w3 + b3, 0.0)
    h4 = jnp.maximum(h2 @ w4 + b4, 0.0)
    return [h3 @ w5 + b5, h3 @ w6 + b6, h4 @ w7 + b7, h4 @ w8 + b8]


if __name__ == "__main__":
    key = jax.random.PRNGKey(0)
    k_x, k_p = jax.random.split(key)

    # Small batch; the forward implies a double-wide MNIST image (B, 1, 28, 56).
    batch = 2
    x = jax.random.normal(k_x, (batch, 1, 28, 56), jnp.float32)

    params = init_params(k_p)
    fused = fuse_params(params)

    outs = mnist_classifier_forward(x, fused)
    outs = [jax.block_until_ready(o) for o in outs]

    refs = reference_forward(x, params)
    for o, r in zip(outs, refs):
        assert o.shape == r.shape, (o.shape, r.shape)
        max_err = float(jnp.abs(o - r).max())
        # Tolerance loosened vs f32 reference because weights/activations use
        # bf16 on the MXU (f32 accumulation).
        assert jnp.allclose(o, r, atol=5e-2, rtol=5e-2), max_err

    print("KERNEL_OK")
</pallas_src>

<mosaic_0001>
module attributes {stable_mosaic.version = 11 : i64} {
  func.func @_mlp_kernel(%arg0: i32, %arg1: memref<16x1568xbf16, #tpu.memory_space<vmem>>, %arg2: memref<1568x800xbf16, #tpu.memory_space<vmem>>, %arg3: memref<1x800xf32, #tpu.memory_space<vmem>>, %arg4: memref<800x600xbf16, #tpu.memory_space<vmem>>, %arg5: memref<1x600xf32, #tpu.memory_space<vmem>>, %arg6: memref<600x800xbf16, #tpu.memory_space<vmem>>, %arg7: memref<1x800xf32, #tpu.memory_space<vmem>>, %arg8: memref<800x128xbf16, #tpu.memory_space<vmem>>, %arg9: memref<1x128xf32, #tpu.memory_space<vmem>>, %arg10: memref<16x128xf32, #tpu.memory_space<vmem>>) attributes {dimension_semantics = [#tpu.dimension_semantics<parallel>], iteration_bounds = array<i64: 1>, scalar_prefetch = 0 : i64, scratch_operands = 0 : i64, tpu.core_type = #tpu.core_type<tc>, window_params = [{transform_indices = @transform_0, window_bounds = array<i64: 16, 1568>}, {pipeline_mode = #tpu.pipeline_mode<synchronous>, transform_indices = @transform_1, window_bounds = array<i64: 1568, 800>}, {pipeline_mode = #tpu.pipeline_mode<synchronous>, transform_indices = @transform_2, window_bounds = array<i64: 1, 800>}, {pipeline_mode = #tpu.pipeline_mode<synchronous>, transform_indices = @transform_3, window_bounds = array<i64: 800, 600>}, {pipeline_mode = #tpu.pipeline_mode<synchronous>, transform_indices = @transform_4, window_bounds = array<i64: 1, 600>}, {pipeline_mode = #tpu.pipeline_mode<synchronous>, transform_indices = @transform_5, window_bounds = array<i64: 600, 800>}, {pipeline_mode = #tpu.pipeline_mode<synchronous>, transform_indices = @transform_6, window_bounds = array<i64: 1, 800>}, {pipeline_mode = #tpu.pipeline_mode<synchronous>, transform_indices = @transform_7, window_bounds = array<i64: 800, 128>}, {pipeline_mode = #tpu.pipeline_mode<synchronous>, transform_indices = @transform_8, window_bounds = array<i64: 1, 128>}, {transform_indices = @transform_9, window_bounds = array<i64: 16, 128>}]} {
    %c0 = arith.constant 0 : index
    %c0_0 = arith.constant 0 : index
    %0 = vector.load %arg1[%c0, %c0_0] : memref<16x1568xbf16, #tpu.memory_space<vmem>>, vector<16x1568xbf16>
    %c0_1 = arith.constant 0 : index
    %c0_2 = arith.constant 0 : index
    %1 = vector.load %arg2[%c0_1, %c0_2] : memref<1568x800xbf16, #tpu.memory_space<vmem>>, vector<1568x800xbf16>
    %cst = arith.constant dense<0.000000e+00> : vector<16x800xf32>
    %2 = tpu.matmul %0, %1, %cst {dimension_numbers = #tpu.dot_dimension_numbers<[1], [0], [0], [1], [0, 0, 1, 1], [], []>} : vector<16x1568xbf16>, vector<1568x800xbf16>, vector<16x800xf32> -> vector<16x800xf32>
    %c0_3 = arith.constant 0 : index
    %c0_4 = arith.constant 0 : index
    %3 = vector.load %arg3[%c0_3, %c0_4] : memref<1x800xf32, #tpu.memory_space<vmem>>, vector<1x800xf32>
    %4 = vector.broadcast %3 : vector<1x800xf32> to vector<16x800xf32>
    %5 = arith.addf %2, %4 : vector<16x800xf32>
    %cst_5 = arith.constant 0.000000e+00 : f32
    %6 = vector.broadcast %cst_5 : f32 to vector<16x800xf32>
    %7 = arith.maximumf %5, %6 : vector<16x800xf32>
    %8 = arith.truncf %7 : vector<16x800xf32> to vector<16x800xbf16>
    %c0_6 = arith.constant 0 : index
    %c0_7 = arith.constant 0 : index
    %9 = vector.load %arg4[%c0_6, %c0_7] : memref<800x600xbf16, #tpu.memory_space<vmem>>, vector<800x600xbf16>
    %cst_8 = arith.constant dense<0.000000e+00> : vector<16x600xf32>
    %10 = tpu.matmul %8, %9, %cst_8 {dimension_numbers = #tpu.dot_dimension_numbers<[1], [0], [0], [1], [0, 0, 1, 1], [], []>} : vector<16x800xbf16>, vector<800x600xbf16>, vector<16x600xf32> -> vector<16x600xf32>
    %c0_9 = arith.constant 0 : index
    %c0_10 = arith.constant 0 : index
    %11 = vector.load %arg5[%c0_9, %c0_10] : memref<1x600xf32, #tpu.memory_space<vmem>>, vector<1x600xf32>
    %12 = vector.broadcast %11 : vector<1x600xf32> to vector<16x600xf32>
    %13 = arith.addf %10, %12 : vector<16x600xf32>
    %cst_11 = arith.constant 0.000000e+00 : f32
    %14 = vector.broadcast %cst_11 : f32 to vector<16x600xf32>
    %15 = arith.maximumf %13, %14 : vector<16x600xf32>
    %16 = arith.truncf %15 : vector<16x600xf32> to vector<16x600xbf16>
    %c0_12 = arith.constant 0 : index
    %c0_13 = arith.constant 0 : index
    %17 = vector.load %arg6[%c0_12, %c0_13] : memref<600x800xbf16, #tpu.memory_space<vmem>>, vector<600x800xbf16>
    %cst_14 = arith.constant dense<0.000000e+00> : vector<16x800xf32>
    %18 = tpu.matmul %16, %17, %cst_14 {dimension_numbers = #tpu.dot_dimension_numbers<[1], [0], [0], [1], [0, 0, 1, 1], [], []>} : vector<16x600xbf16>, vector<600x800xbf16>, vector<16x800xf32> -> vector<16x800xf32>
    %c0_15 = arith.constant 0 : index
    %c0_16 = arith.constant 0 : index
    %19 = vector.load %arg7[%c0_15, %c0_16] : memref<1x800xf32, #tpu.memory_space<vmem>>, vector<1x800xf32>
    %20 = vector.broadcast %19 : vector<1x800xf32> to vector<16x800xf32>
    %21 = arith.addf %18, %20 : vector<16x800xf32>
    %cst_17 = arith.constant 0.000000e+00 : f32
    %22 = vector.broadcast %cst_17 : f32 to vector<16x800xf32>
    %23 = arith.maximumf %21, %22 : vector<16x800xf32>
    %24 = arith.truncf %23 : vector<16x800xf32> to vector<16x800xbf16>
    %c0_18 = arith.constant 0 : index
    %c0_19 = arith.constant 0 : index
    %25 = vector.load %arg8[%c0_18, %c0_19] : memref<800x128xbf16, #tpu.memory_space<vmem>>, vector<800x128xbf16>
    %cst_20 = arith.constant dense<0.000000e+00> : vector<16x128xf32>
    %26 = tpu.matmul %24, %25, %cst_20 {dimension_numbers = #tpu.dot_dimension_numbers<[1], [0], [0], [1], [0, 0, 1, 1], [], []>} : vector<16x800xbf16>, vector<800x128xbf16>, vector<16x128xf32> -> vector<16x128xf32>
    %c0_21 = arith.constant 0 : index
    %c0_22 = arith.constant 0 : index
    %27 = vector.load %arg9[%c0_21, %c0_22] : memref<1x128xf32, #tpu.memory_space<vmem>>, vector<1x128xf32>
    %28 = vector.broadcast %27 : vector<1x128xf32> to vector<16x128xf32>
    %29 = arith.addf %26, %28 : vector<16x128xf32>
    %c0_23 = arith.constant 0 : index
    %c0_24 = arith.constant 0 : index
    %30 = vector.load %arg10[%c0_23, %c0_24] : memref<16x128xf32, #tpu.memory_space<vmem>>, vector<16x128xf32>
    tpu.vector_store %arg10[%c0_23, %c0_24], %29 {strides = array<i32>} : memref<16x128xf32, #tpu.memory_space<vmem>>, vector<16x128xf32>,
    return
  }
  func.func @transform_0(%arg0: i32) -> (i32, i32) {
    %c0_i32 = arith.constant 0 : i32
    %c0_i32_0 = arith.constant 0 : i32
    return %arg0, %c0_i32 : i32, i32
  }
  func.func @transform_1(%arg0: i32) -> (i32, i32) {
    %c0_i32 = arith.constant 0 : i32
    %c0_i32_0 = arith.constant 0 : i32
    %c0_i32_1 = arith.constant 0 : i32
    return %c0_i32, %c0_i32_0 : i32, i32
  }
  func.func @transform_2(%arg0: i32) -> (i32, i32) {
    %c0_i32 = arith.constant 0 : i32
    %c0_i32_0 = arith.constant 0 : i32
    %c0_i32_1 = arith.constant 0 : i32
    return %c0_i32, %c0_i32_0 : i32, i32
  }
  func.func @transform_3(%arg0: i32) -> (i32, i32) {
    %c0_i32 = arith.constant 0 : i32
    %c0_i32_0 = arith.constant 0 : i32
    %c0_i32_1 = arith.constant 0 : i32
    return %c0_i32, %c0_i32_0 : i32, i32
  }
  func.func @transform_4(%arg0: i32) -> (i32, i32) {
    %c0_i32 = arith.constant 0 : i32
    %c0_i32_0 = arith.constant 0 : i32
    %c0_i32_1 = arith.constant 0 : i32
    return %c0_i32, %c0_i32_0 : i32, i32
  }
  func.func @transform_5(%arg0: i32) -> (i32, i32) {
    %c0_i32 = arith.constant 0 : i32
    %c0_i32_0 = arith.constant 0 : i32
    %c0_i32_1 = arith.constant 0 : i32
    return %c0_i32, %c0_i32_0 : i32, i32
  }
  func.func @transform_6(%arg0: i32) -> (i32, i32) {
    %c0_i32 = arith.constant 0 : i32
    %c0_i32_0 = arith.constant 0 : i32
    %c0_i32_1 = arith.constant 0 : i32
    return %c0_i32, %c0_i32_0 : i32, i32
  }
  func.func @transform_7(%arg0: i32) -> (i32, i32) {
    %c0_i32 = arith.constant 0 : i32
    %c0_i32_0 = arith.constant 0 : i32
    %c0_i32_1 = arith.constant 0 : i32
    return %c0_i32, %c0_i32_0 : i32, i32
  }
  func.func @transform_8(%arg0: i32) -> (i32, i32) {
    %c0_i32 = arith.constant 0 : i32
    %c0_i32_0 = arith.constant 0 : i32
    %c0_i32_1 = arith.constant 0 : i32
    return %c0_i32, %c0_i32_0 : i32, i32
  }
  func.func @transform_9(%arg0: i32) -> (i32, i32) {
    %c0_i32 = arith.constant 0 : i32
    %c0_i32_0 = arith.constant 0 : i32
    return %arg0, %c0_i32 : i32, i32
  }
}

</mosaic_0001>

<bundles_post_ra>
// kernel: mnist_classifier_forward.1
= control target key start
LH: loop header
LB: loop body
LE: loop exit
PB: predicated region body
PF: predicated region fallthrough
CT: control target
= control target key end

     0   :  { %vm4461_vm0 = vcmask 261120   ;;  %vm14245_vm1 = vmmov 0   ;;  %vm9520_vm2 = vcmask 1043456   ;;  %vm9516_vm3 = vcmask 719872   ;;  %s18379_s1 = inlined_call_operand.vmem [shape: bf16[1568,800], index: 1, kind: input, shape index: {}]   ;;  %s18380_s0 = inlined_call_operand.vmem [shape: bf16[16,1568], index: 0, kind: input, shape index: {}]   ;;  %s18381_s3 = inlined_call_operand.vmem [shape: bf16[800,600], index: 3, kind: input, shape index: {}]   ;;  %s18382_s2 = inlined_call_operand.vmem [shape: f32[1,800], index: 2, kind: input, shape index: {}]   ;;  %s18383_s5 = inlined_call_operand.vmem [shape: bf16[600,800], index: 5, kind: input, shape index: {}]   ;;  %s18384_s4 = inlined_call_operand.vmem [shape: f32[1,600], index: 4, kind: input, shape index: {}]   ;;  %s18385_s7 = inlined_call_operand.vmem [shape: bf16[800,128], index: 7, kind: input, shape index: {}]   ;;  %s18386_s6 = inlined_call_operand.vmem [shape: f32[1,800], index: 6, kind: input, shape index: {}]   ;;  %s18387_s8 = inlined_call_operand.vmem [shape: f32[1,128], index: 8, kind: input, shape index: {}]   ;;  %s18388_s9 = inlined_call_operand.vmem [shape: f32[16,128], index: 9, kind: output, shape index: {}]  }
   0x1   :  { %v12453_v0 = vld [vmem:[%s18379_s1 + $0x4] ss:$28 sps:$4 sm:$0xff]   ;;  %v12455_v1 = vld [vmem:[%s18379_s1 + $0xc] ss:$28 sps:$4 sm:$0xff]   ;;  %v12459_v4 = vld [vmem:[%s18379_s1 + $0x3c] ss:$28 sps:$4 sm:$0xff]  }
   0x2   :  { %4465 = vmatprep.subr.bf16.mxu0 %v12453_v0  ;;  %v12457_v2 = vld [vmem:[%s18379_s1] ss:$28 sps:$4 sm:$0xff]   ;;  %v12458_v3 = vld [vmem:[%s18379_s1 + $0x8] ss:$28 sps:$4 sm:$0xff]   ;;  %4766 = vmatprep.subr.bf16.mxu1 %v12455_v1  ;;  %v12463_v6 = vld [vmem:[%s18379_s1 + $0x38] ss:$28 sps:$4 sm:$0xff]  }
   0x3   :  { %4466 = vmatpush1.bf16.msra.mxu0 %v12457_v2  ;;  %4767 = vmatpush1.bf16.msra.mxu1 %v12458_v3  ;;  %v12461_v5 = vld [vmem:[%s18379_s1 + $0x44] ss:$28 sps:$4 sm:$0xff]   ;;  %v12465_v8 = vld [vmem:[%s18379_s1 + $0x74] ss:$28 sps:$4 sm:$0xff]   ;;  %v12467_v9 = vld [vmem:[%s18379_s1 + $0x7c] ss:$28 sps:$4 sm:$0xff]  }
   0x4   :  { %4467 = vmatprep.subr.bf16.mxu0 %v12459_v4  ;;  %v12464_v7 = vld [vmem:[%s18379_s1 + $0x40] ss:$28 sps:$4 sm:$0xff]   ;;  %4768 = vmatprep.subr.bf16.mxu1 %v12461_v5  ;;  %v12469_v10 = vld [vmem:[%s18379_s1 + $0x70] ss:$28 sps:$4 sm:$0xff]   ;;  %v12470_v11 = vld [vmem:[%s18379_s1 + $0x78] ss:$28 sps:$4 sm:$0xff]  }
   0x5   :  { %v12471_v12 = vld [vmem:[%s18379_s1 + $0xac] ss:$28 sps:$4 sm:$0xff]   ;;  %v12473_v13 = vld [vmem:[%s18379_s1 + $0xb4] ss:$28 sps:$4 sm:$0xff]   ;;  %v12477_v16 = vld [vmem:[%s18379_s1 + $0xe4] ss:$28 sps:$4 sm:$0xff]  }
   0x6   :  { %v12475_v14 = vld [vmem:[%s18379_s1 + $0xa8] ss:$28 sps:$4 sm:$0xff]   ;;  %v12476_v15 = vld [vmem:[%s18379_s1 + $0xb0] ss:$28 sps:$4 sm:$0xff]   ;;  %v12481_v18 = vld [vmem:[%s18379_s1 + $0xe0] ss:$28 sps:$4 sm:$0xff]  }
   0x7   :  { %4468 = vmatpush1.bf16.msra.mxu0 %v12463_v6  ;;  %4769 = vmatpush1.bf16.msra.mxu1 %v12464_v7  ;;  %v12479_v17 = vld [vmem:[%s18379_s1 + $0xec] ss:$28 sps:$4 sm:$0xff]   ;;  %v12483_v20 = vld [vmem:[%s18379_s1 + $0x11c] ss:$28 sps:$4 sm:$0xff]   ;;  %v12485_v21 = vld [vmem:[%s18379_s1 + $0x124] ss:$28 sps:$4 sm:$0xff]  }
   0x8   :  { %4469 = vmatprep.subr.bf16.mxu0 %v12465_v8  ;;  %4770 = vmatprep.subr.bf16.mxu1 %v12467_v9  ;;  %v12482_v19 = vld [vmem:[%s18379_s1 + $0xe8] ss:$28 sps:$4 sm:$0xff]   ;;  %v12487_v22 = vld [vmem:[%s18379_s1 + $0x118] ss:$28 sps:$4 sm:$0xff]   ;;  %v12488_v23 = vld [vmem:[%s18379_s1 + $0x120] ss:$28 sps:$4 sm:$0xff]  }
   0x9   :  { %v12489_v24 = vld [vmem:[%s18379_s1 + $0x154] ss:$28 sps:$4 sm:$0xff]   ;;  %v12491_v25 = vld [vmem:[%s18379_s1 + $0x15c] ss:$28 sps:$4 sm:$0xff]   ;;  %v12495_v28 = vld [vmem:[%s18379_s1 + $0x18c] ss:$28 sps:$4 sm:$0xff]  }
   0xa   :  { %v12493_v26 = vld [vmem:[%s18379_s1 + $0x150] ss:$28 sps:$4 sm:$0xff]   ;;  %v12494_v27 = vld [vmem:[%s18379_s1 + $0x158] ss:$28 sps:$4 sm:$0xff]   ;;  %v12499_v30 = vld [vmem:[%s18379_s1 + $0x188] ss:$28 sps:$4 sm:$0xff]  }
   0xb   :  { %4470 = vmatpush1.bf16.msra.mxu0 %v12469_v10  ;;  %4771 = vmatpush1.bf16.msra.mxu1 %v12470_v11  ;;  %v12497_v29 = vld [vmem:[%s18379_s1 + $0x194] ss:$28 sps:$4 sm:$0xff]   ;;  %v12501_v32 = vld [vmem:[%s18379_s1 + $0x1c4] ss:$28 sps:$4 sm:$0xff]   ;;  %v12503_v33 = vld [vmem:[%s18379_s1 + $0x1cc] ss:$28 sps:$4 sm:$0xff]  }
   0xc   :  { %4471 = vmatprep.subr.bf16.mxu0 %v12471_v12  ;;  %4772 = vmatprep.subr.bf16.mxu1 %v12473_v13  ;;  %v12500_v31 = vld [vmem:[%s18379_s1 + $0x190] ss:$28 sps:$4 sm:$0xff]   ;;  %v12505_v34 = vld [vmem:[%s18379_s1 + $0x1c0] ss:$28 sps:$4 sm:$0xff]   ;;  %v12506_v35 = vld [vmem:[%s18379_s1 + $0x1c8] ss:$28 sps:$4 sm:$0xff]  }
   0xd   :  { %v12507_v36 = vld [vmem:[%s18379_s1 + $0x1fc] ss:$28 sps:$4 sm:$0xff]   ;;  %v12509_v37 = vld [vmem:[%s18379_s1 + $0x204] ss:$28 sps:$4 sm:$0xff]   ;;  %v12513_v40 = vld [vmem:[%s18379_s1 + $0x234] ss:$28 sps:$4 sm:$0xff]  }
   0xe   :  { %v12511_v38 = vld [vmem:[%s18379_s1 + $0x1f8] ss:$28 sps:$4 sm:$0xff]   ;;  %v12512_v39 = vld [vmem:[%s18379_s1 + $0x200] ss:$28 sps:$4 sm:$0xff]   ;;  %v12517_v42 = vld [vmem:[%s18379_s1 + $0x230] ss:$28 sps:$4 sm:$0xff]  }
   0xf   :  { %4472 = vmatpush1.bf16.msra.mxu0 %v12475_v14  ;;  %4773 = vmatpush1.bf16.msra.mxu1 %v12476_v15  ;;  %v12515_v41 = vld [vmem:[%s18379_s1 + $0x23c] ss:$28 sps:$4 sm:$0xff]   ;;  %v12519_v44 = vld [vmem:[%s18379_s1 + $0x26c] ss:$28 sps:$4 sm:$0xff]   ;;  %v12521_v45 = vld [vmem:[%s18379_s1 + $0x274] ss:$28 sps:$4 sm:$0xff]  }
  0x10   :  { %4473 = vmatprep.subr.bf16.mxu0 %v12477_v16  ;;  %4774 = vmatprep.subr.bf16.mxu1 %v12479_v17  ;;  %v12518_v43 = vld [vmem:[%s18379_s1 + $0x238] ss:$28 sps:$4 sm:$0xff]   ;;  %v12523_v46 = vld [vmem:[%s18379_s1 + $0x268] ss:$28 sps:$4 sm:$0xff]   ;;  %v12524_v48 = vld [vmem:[%s18379_s1 + $0x270] ss:$28 sps:$4 sm:$0xff]  }
  0x11   :  { %v12549_v47 = vld [vmem:[%s18380_s0 + $0x4] ss:$52 sps:$4 sm:$0xff]   ;;  %v12527_v50 = vld [vmem:[%s18379_s1 + $0x2ac] ss:$28 sps:$4 sm:$0xff]   ;;  %v12529_v51 = vld [vmem:[%s18379_s1 + $0x2a0] ss:$28 sps:$4 sm:$0xff]  }
  0x12   :  { %v12525_v49 = vld [vmem:[%s18379_s1 + $0x2a4] ss:$28 sps:$4 sm:$0xff]   ;;  %4497 = vmatprep.mubr.bf16.mxu0 %v12549_v47  ;;  %4798 = vmatprep.mubr.bf16.mxu1 %v12549_v47  ;;  %v12531_v53 = vld [vmem:[%s18379_s1 + $0x2dc] ss:$28 sps:$4 sm:$0xff]   ;;  %v12537_v57 = vld [vmem:[%s18379_s1 + $0x314] ss:$28 sps:$4 sm:$0xff]  }
  0x13   :  { %4474 = vmatpush1.bf16.msra.mxu0 %v12481_v18  ;;  %4775 = vmatpush1.bf16.msra.mxu1 %v12482_v19  ;;  %v12530_v52 = vld [vmem:[%s18379_s1 + $0x2a8] ss:$28 sps:$4 sm:$0xff]   ;;  %v12535_v55 = vld [vmem:[%s18379_s1 + $0x2d8] ss:$28 sps:$4 sm:$0xff]   ;;  %v12536_v56 = vld [vmem:[%s18379_s1 + $0x2e0] ss:$28 sps:$4 sm:$0xff]  }
  0x14   :  { %4475 = vmatprep.subr.bf16.mxu0 %v12483_v20  ;;  %4776 = vmatprep.subr.bf16.mxu1 %v12485_v21  ;;  %v12533_v54 = vld [vmem:[%s18379_s1 + $0x2e4] ss:$28 sps:$4 sm:$0xff]   ;;  %v12539_v58 = vld [vmem:[%s18379_s1 + $0x31c] ss:$28 sps:$4 sm:$0xff]   ;;  %v12541_v59 = vld [vmem:[%s18379_s1 + $0x310] ss:$28 sps:$4 sm:$0xff]  }
  0x15   :  { %v12542_v60 = vld [vmem:[%s18379_s1 + $0x318] ss:$28 sps:$4 sm:$0xff]   ;;  %v12543_v61 = vld [vmem:[%s18379_s1 + $0x34c] ss:$28 sps:$4 sm:$0xff]   ;;  %v12553_v1 = vld [vmem:[%s18379_s1 + $0x384] ss:$28 sps:$4 sm:$0xff]  }
  0x16   :  { %v12545_v62 = vld [vmem:[%s18379_s1 + $0x354] ss:$28 sps:$4 sm:$0xff]   ;;  %v12547_v63 = vld [vmem:[%s18379_s1 + $0x348] ss:$28 sps:$4 sm:$0xff]   ;;  %v12551_v3 = vld [vmem:[%s18379_s1 + $0x380] ss:$28 sps:$4 sm:$0xff]  }
  0x17   :  { %4476 = vmatpush1.bf16.msra.mxu0 %v12487_v22  ;;  %4777 = vmatpush1.bf16.msra.mxu1 %v12488_v23  ;;  %v12548_v0 = vld [vmem:[%s18379_s1 + $0x350] ss:$28 sps:$4 sm:$0xff]   ;;  %v12554_v4 = vld [vmem:[%s18379_s1 + $0x388] ss:$28 sps:$4 sm:$0xff]   ;;  %v12557_v5 = vld [vmem:[%s18380_s0] ss:$52 sps:$4 sm:$0xff]  }
  0x18   :  { %4477 = vmatprep.subr.bf16.mxu0 %v12489_v24  ;;  %4778 = vmatprep.subr.bf16.mxu1 %v12491_v25  ;;  %v12556_v2 = vld [vmem:[%s18379_s1 + $0x38c] ss:$28 sps:$4 sm:$0xff]   ;;  %v12560_v6 = vld [vmem:[%s18379_s1 + $0x3bc] ss:$28 sps:$4 sm:$0xff]   ;;  %v12563_v7 = vld [vmem:[%s18379_s1 + $0x3c4] ss:$28 sps:$4 sm:$0xff]  }
  0x19   :  { %v12558_v8 = vld [vmem:[%s18379_s1 + $0x3b8] ss:$28 sps:$4 sm:$0xff]   ;;  %v12561_v9 = vld [vmem:[%s18379_s1 + $0x3c0] ss:$28 sps:$4 sm:$0xff]   ;;  %v12564_v12 = vld [vmem:[%s18379_s1 + $0x3f0] ss:$28 sps:$4 sm:$0xff]  }
  0x1a   :  { %v12566_v10 = vld [vmem:[%s18379_s1 + $0x3f4] ss:$28 sps:$4 sm:$0xff]   ;;  %v12569_v11 = vld [vmem:[%s18379_s1 + $0x3fc] ss:$28 sps:$4 sm:$0xff]   ;;  %v12572_v14 = vld [vmem:[%s18379_s1 + $0x42c] ss:$28 sps:$4 sm:$0xff]  }
  0x1b   :  { %4478 = vmatpush1.bf16.msra.mxu0 %v12493_v26  ;;  %4779 = vmatpush1.bf16.msra.mxu1 %v12494_v27  ;;  %v12567_v13 = vld [vmem:[%s18379_s1 + $0x3f8] ss:$28 sps:$4 sm:$0xff]   ;;  %v12570_v16 = vld [vmem:[%s18379_s1 + $0x428] ss:$28 sps:$4 sm:$0xff]   ;;  %v12573_v17 = vld [vmem:[%s18379_s1 + $0x430] ss:$28 sps:$4 sm:$0xff]  }
  0x1c   :  { %4479 = vmatprep.subr.bf16.mxu0 %v12495_v28  ;;  %4780 = vmatprep.subr.bf16.mxu1 %v12497_v29  ;;  %v12575_v15 = vld [vmem:[%s18379_s1 + $0x434] ss:$28 sps:$4 sm:$0xff]   ;;  %v12578_v18 = vld [vmem:[%s18379_s1 + $0x464] ss:$28 sps:$4 sm:$0xff]   ;;  %v12581_v19 = vld [vmem:[%s18379_s1 + $0x46c] ss:$28 sps:$4 sm:$0xff]  }
  0x1d   :  { %v12576_v20 = vld [vmem:[%s18379_s1 + $0x460] ss:$28 sps:$4 sm:$0xff]   ;;  %v12579_v21 = vld [vmem:[%s18379_s1 + $0x468] ss:$28 sps:$4 sm:$0xff]   ;;  %v12582_v24 = vld [vmem:[%s18379_s1 + $0x498] ss:$28 sps:$4 sm:$0xff]  }
  0x1e   :  { %v12584_v22 = vld [vmem:[%s18379_s1 + $0x49c] ss:$28 sps:$4 sm:$0xff]   ;;  %v12587_v23 = vld [vmem:[%s18379_s1 + $0x4a4] ss:$28 sps:$4 sm:$0xff]   ;;  %v12590_v26 = vld [vmem:[%s18379_s1 + $0x4d4] ss:$28 sps:$4 sm:$0xff]  }
  0x1f   :  { %4480 = vmatpush1.bf16.msra.mxu0 %v12499_v30  ;;  %4781 = vmatpush1.bf16.msra.mxu1 %v12500_v31  ;;  %v12585_v25 = vld [vmem:[%s18379_s1 + $0x4a0] ss:$28 sps:$4 sm:$0xff]   ;;  %v12588_v28 = vld [vmem:[%s18379_s1 + $0x4d0] ss:$28 sps:$4 sm:$0xff]   ;;  %v12591_v30 = vld [vmem:[%s18379_s1 + $0x4d8] ss:$28 sps:$4 sm:$0xff]  }
  0x20   :  { %4481 = vmatprep.subr.bf16.mxu0 %v12501_v32  ;;  %4782 = vmatprep.subr.bf16.mxu1 %v12503_v33  ;;  %v12593_v27 = vld [vmem:[%s18379_s1 + $0x4dc] ss:$28 sps:$4 sm:$0xff]   ;;  %v12648_v29 = vld [vmem:[%s18380_s0 + $0xc] ss:$52 sps:$4 sm:$0xff]   ;;  %v12599_v32 = vld [vmem:[%s18379_s1 + $0x514] ss:$28 sps:$4 sm:$0xff]  }
  0x21   :  { %v12596_v31 = vld [vmem:[%s18379_s1 + $0x50c] ss:$28 sps:$4 sm:$0xff]  }
  0x22   :  { %v12594_v33 = vld [vmem:[%s18379_s1 + $0x508] ss:$28 sps:$4 sm:$0xff]  }
  0x23   :  { %4482 = vmatpush1.bf16.msra.mxu0 %v12505_v34  ;;  %4783 = vmatpush1.bf16.msra.mxu1 %v12506_v35  ;;  %v12597_v34 = vld [vmem:[%s18379_s1 + $0x510] ss:$28 sps:$4 sm:$0xff]   ;;  %v12602_v35 = vld [vmem:[%s18379_s1 + $0x544] ss:$28 sps:$4 sm:$0xff]  }
  0x24   :  { %4483 = vmatprep.subr.bf16.mxu0 %v12507_v36  ;;  %4784 = vmatprep.subr.bf16.mxu1 %v12509_v37  ;;  %v12605_v36 = vld [vmem:[%s18379_s1 + $0x54c] ss:$28 sps:$4 sm:$0xff]   ;;  %v12600_v37 = vld [vmem:[%s18379_s1 + $0x540] ss:$28 sps:$4 sm:$0xff]  }
  0x25   :  { %v12620_v47 = vld [vmem:[%s18379_s1 + $0x5ec] ss:$28 sps:$4 sm:$0xff]  }
  0x27   :  { %4484 = vmatpush1.bf16.msra.mxu0 %v12511_v38  ;;  %4785 = vmatpush1.bf16.msra.mxu1 %v12512_v39  ;;  %v12603_v38 = vld [vmem:[%s18379_s1 + $0x548] ss:$28 sps:$4 sm:$0xff]   ;;  %v12608_v39 = vld [vmem:[%s18379_s1 + $0x57c] ss:$28 sps:$4 sm:$0xff]  }
  0x28   :  { %4485 = vmatprep.subr.bf16.mxu0 %v12513_v40  ;;  %4786 = vmatprep.subr.bf16.mxu1 %v12515_v41  ;;  %v12611_v40 = vld [vmem:[%s18379_s1 + $0x584] ss:$28 sps:$4 sm:$0xff]   ;;  %v12606_v41 = vld [vmem:[%s18379_s1 + $0x578] ss:$28 sps:$4 sm:$0xff]  }
  0x2b   :  { %4486 = vmatpush1.bf16.msra.mxu0 %v12517_v42  ;;  %4787 = vmatpush1.bf16.msra.mxu1 %v12518_v43  ;;  %v12609_v42 = vld [vmem:[%s18379_s1 + $0x580] ss:$28 sps:$4 sm:$0xff]   ;;  %v12614_v43 = vld [vmem:[%s18379_s1 + $0x5b4] ss:$28 sps:$4 sm:$0xff]  }
  0x2c   :  { %4487 = vmatprep.subr.bf16.mxu0 %v12519_v44  ;;  %4788 = vmatprep.subr.bf16.mxu1 %v12521_v45  ;;  %v12617_v44 = vld [vmem:[%s18379_s1 + $0x5bc] ss:$28 sps:$4 sm:$0xff]   ;;  %v12612_v45 = vld [vmem:[%s18379_s1 + $0x5b0] ss:$28 sps:$4 sm:$0xff]  }
  0x2f   :  { %4488 = vmatpush1.bf16.msra.mxu0 %v12523_v46  ;;  %4789 = vmatpush1.bf16.msra.mxu1 %v12524_v48  ;;  %v12615_v46 = vld [vmem:[%s18379_s1 + $0x5b8] ss:$28 sps:$4 sm:$0xff]  }
  0x30   :  { %4489 = vmatprep.subr.bf16.mxu0 %v12525_v49  ;;  %4790 = vmatprep.subr.bf16.mxu1 %v12527_v50  ;;  %v12623_v48 = vld [vmem:[%s18379_s1 + $0x5f4] ss:$28 sps:$4 sm:$0xff]   ;;  %v12618_v49 = vld [vmem:[%s18379_s1 + $0x5e8] ss:$28 sps:$4 sm:$0xff]  }
  0x31   :  { %v12621_v50 = vld [vmem:[%s18379_s1 + $0x5f0] ss:$28 sps:$4 sm:$0xff]  }
  0x33   :  { %4490 = vmatpush1.bf16.msra.mxu0 %v12529_v51  ;;  %4791 = vmatpush1.bf16.msra.mxu1 %v12530_v52  ;;  %v12626_v51 = vld [vmem:[%s18379_s1 + $0x624] ss:$28 sps:$4 sm:$0xff]   ;;  %v12629_v52 = vld [vmem:[%s18379_s1 + $0x62c] ss:$28 sps:$4 sm:$0xff]  }
  0x34   :  { %4491 = vmatprep.subr.bf16.mxu0 %v12531_v53  ;;  %4792 = vmatprep.subr.bf16.mxu1 %v12533_v54  ;;  %v12624_v53 = vld [vmem:[%s18379_s1 + $0x620] ss:$28 sps:$4 sm:$0xff]   ;;  %v12627_v54 = vld [vmem:[%s18379_s1 + $0x628] ss:$28 sps:$4 sm:$0xff]  }
  0x37   :  { %4492 = vmatpush1.bf16.msra.mxu0 %v12535_v55  ;;  %4793 = vmatpush1.bf16.msra.mxu1 %v12536_v56  ;;  %v12632_v55 = vld [vmem:[%s18379_s1 + $0x65c] ss:$28 sps:$4 sm:$0xff]   ;;  %v12635_v56 = vld [vmem:[%s18379_s1 + $0x664] ss:$28 sps:$4 sm:$0xff]  }
  0x38   :  { %4493 = vmatprep.subr.bf16.mxu0 %v12537_v57  ;;  %4794 = vmatprep.subr.bf16.mxu1 %v12539_v58  ;;  %v12630_v57 = vld [vmem:[%s18379_s1 + $0x658] ss:$28 sps:$4 sm:$0xff]   ;;  %v12633_v58 = vld [vmem:[%s18379_s1 + $0x660] ss:$28 sps:$4 sm:$0xff]  }
  0x3b   :  { %4494 = vmatpush1.bf16.msra.mxu0 %v12541_v59  ;;  %4795 = vmatpush1.bf16.msra.mxu1 %v12542_v60  ;;  %v12638_v59 = vld [vmem:[%s18379_s1 + $0x694] ss:$28 sps:$4 sm:$0xff]   ;;  %v12641_v60 = vld [vmem:[%s18379_s1 + $0x69c] ss:$28 sps:$4 sm:$0xff]  }
  0x3c   :  { %4495 = vmatprep.subr.bf16.mxu0 %v12543_v61  ;;  %4796 = vmatprep.subr.bf16.mxu1 %v12545_v62  ;;  %v12636_v61 = vld [vmem:[%s18379_s1 + $0x690] ss:$28 sps:$4 sm:$0xff]   ;;  %v12639_v62 = vld [vmem:[%s18379_s1 + $0x698] ss:$28 sps:$4 sm:$0xff]  }
  0x3f   :  { %4496 = vmatpush1.bf16.msra.mxu0 %v12547_v63  ;;  %4797 = vmatpush1.bf16.msra.mxu1 %v12548_v0  ;;  %v12644_v63 = vld [vmem:[%s18379_s1 + $0x6cc] ss:$28 sps:$4 sm:$0xff]   ;;  %v12647_v0 = vld [vmem:[%s18379_s1 + $0x6d4] ss:$28 sps:$4 sm:$0xff]  }
  0x40   :  { %4508 = vmatprep.subr.bf16.mxu0 %v12553_v1  ;;  %4809 = vmatprep.subr.bf16.mxu1 %v12556_v2  ;;  %v12642_v1 = vld [vmem:[%s18379_s1 + $0x6c8] ss:$28 sps:$4 sm:$0xff]   ;;  %v12645_v2 = vld [vmem:[%s18379_s1 + $0x6d0] ss:$28 sps:$4 sm:$0xff]  }
  0x42   :  { %4498 = vmatmul.mubr.bf16.vlgmr.msra.gmra.mrb[0].mxu0 %v12557_v5  ;;  %4799 = vmatmul.mubr.bf16.vlgmr.msra.gmra.mrb[0].mxu1 %v12557_v5  ;;  %v12650_v5 = vld [vmem:[%s18379_s1 + $0x700] ss:$28 sps:$4 sm:$0xff]  }
  0x43   :  { %4509 = vmatpush1.bf16.msra.mxu0 %v12551_v3  ;;  %4810 = vmatpush1.bf16.msra.mxu1 %v12554_v4  ;;  %v12652_v3 = vld [vmem:[%s18379_s1 + $0x704] ss:$28 sps:$4 sm:$0xff]   ;;  %v12655_v4 = vld [vmem:[%s18379_s1 + $0x70c] ss:$28 sps:$4 sm:$0xff]  }
  0x44   :  { %4510 = vmatprep.subr.bf16.mxu0 %v12560_v6  ;;  %4811 = vmatprep.subr.bf16.mxu1 %v12563_v7  ;;  %v12653_v6 = vld [vmem:[%s18379_s1 + $0x708] ss:$28 sps:$4 sm:$0xff]  }
  0x45   :  { %4540 = vmatprep.mubr.bf16.mxu0 %v12648_v29  ;;  %4841 = vmatprep.mubr.bf16.mxu1 %v12648_v29  ;;  %v12656_v7 = vld [vmem:[%s18380_s0 + $0x8] ss:$52 sps:$4 sm:$0xff]   ;;  %v12689_v29 = vld [vmem:[%s18379_s1 + $0x854] ss:$28 sps:$4 sm:$0xff]  }
  0x47   :  { %4511 = vmatpush1.bf16.msra.mxu0 %v12558_v8  ;;  %4812 = vmatpush1.bf16.msra.mxu1 %v12561_v9  ;;  %v12659_v8 = vld [vmem:[%s18379_s1 + $0x73c] ss:$28 sps:$4 sm:$0xff]   ;;  %v12662_v9 = vld [vmem:[%s18379_s1 + $0x744] ss:$28 sps:$4 sm:$0xff]  }
  0x48   :  { %4512 = vmatprep.subr.bf16.mxu0 %v12566_v10  ;;  %4813 = vmatprep.subr.bf16.mxu1 %v12569_v11  ;;  %v12657_v10 = vld [vmem:[%s18379_s1 + $0x738] ss:$28 sps:$4 sm:$0xff]  }
  0x49   :  { %v12747_v11 = vld [vmem:[%s18380_s0 + $0x14] ss:$52 sps:$4 sm:$0xff]  }
  0x4b   :  { %4513 = vmatpush1.bf16.msra.mxu0 %v12564_v12  ;;  %4814 = vmatpush1.bf16.msra.mxu1 %v12567_v13  ;;  %v12660_v12 = vld [vmem:[%s18379_s1 + $0x740] ss:$28 sps:$4 sm:$0xff]   ;;  %v12665_v13 = vld [vmem:[%s18379_s1 + $0x774] ss:$28 sps:$4 sm:$0xff]  }
  0x4c   :  { %4514 = vmatprep.subr.bf16.mxu0 %v12572_v14  ;;  %4815 = vmatprep.subr.bf16.mxu1 %v12575_v15  ;;  %v12668_v14 = vld [vmem:[%s18379_s1 + $0x77c] ss:$28 sps:$4 sm:$0xff]   ;;  %v12663_v15 = vld [vmem:[%s18379_s1 + $0x770] ss:$28 sps:$4 sm:$0xff]  }
  0x4f   :  { %4515 = vmatpush1.bf16.msra.mxu0 %v12570_v16  ;;  %4816 = vmatpush1.bf16.msra.mxu1 %v12573_v17  ;;  %v12666_v16 = vld [vmem:[%s18379_s1 + $0x778] ss:$28 sps:$4 sm:$0xff]   ;;  %v12671_v17 = vld [vmem:[%s18379_s1 + $0x7ac] ss:$28 sps:$4 sm:$0xff]  }
  0x50   :  { %4516 = vmatprep.subr.bf16.mxu0 %v12578_v18  ;;  %4817 = vmatprep.subr.bf16.mxu1 %v12581_v19  ;;  %v12674_v18 = vld [vmem:[%s18379_s1 + $0x7b4] ss:$28 sps:$4 sm:$0xff]   ;;  %v12669_v19 = vld [vmem:[%s18379_s1 + $0x7a8] ss:$28 sps:$4 sm:$0xff]  }
  0x53   :  { %4517 = vmatpush1.bf16.msra.mxu0 %v12576_v20  ;;  %4818 = vmatpush1.bf16.msra.mxu1 %v12579_v21  ;;  %v12672_v20 = vld [vmem:[%s18379_s1 + $0x7b0] ss:$28 sps:$4 sm:$0xff]   ;;  %v12677_v21 = vld [vmem:[%s18379_s1 + $0x7e4] ss:$28 sps:$4 sm:$0xff]  }
  0x54   :  { %4518 = vmatprep.subr.bf16.mxu0 %v12584_v22  ;;  %4819 = vmatprep.subr.bf16.mxu1 %v12587_v23  ;;  %v12680_v22 = vld [vmem:[%s18379_s1 + $0x7ec] ss:$28 sps:$4 sm:$0xff]   ;;  %v12675_v23 = vld [vmem:[%s18379_s1 + $0x7e0] ss:$28 sps:$4 sm:$0xff]  }
  0x57   :  { %4519 = vmatpush1.bf16.msra.mxu0 %v12582_v24  ;;  %4820 = vmatpush1.bf16.msra.mxu1 %v12585_v25  ;;  %v12678_v24 = vld [vmem:[%s18379_s1 + $0x7e8] ss:$28 sps:$4 sm:$0xff]   ;;  %v12683_v25 = vld [vmem:[%s18379_s1 + $0x81c] ss:$28 sps:$4 sm:$0xff]  }
  0x58   :  { %4520 = vmatprep.subr.bf16.mxu0 %v12590_v26  ;;  %4821 = vmatprep.subr.bf16.mxu1 %v12593_v27  ;;  %v12686_v26 = vld [vmem:[%s18379_s1 + $0x824] ss:$28 sps:$4 sm:$0xff]   ;;  %v12681_v27 = vld [vmem:[%s18379_s1 + $0x818] ss:$28 sps:$4 sm:$0xff]  }
  0x5b   :  { %4521 = vmatpush1.bf16.msra.mxu0 %v12588_v28  ;;  %4822 = vmatpush1.bf16.msra.mxu1 %v12591_v30  ;;  %v12684_v28 = vld [vmem:[%s18379_s1 + $0x820] ss:$28 sps:$4 sm:$0xff]  }
  0x5c   :  { %4522 = vmatprep.subr.bf16.mxu0 %v12596_v31  ;;  %4823 = vmatprep.subr.bf16.mxu1 %v12599_v32  ;;  %v12692_v30 = vld [vmem:[%s18379_s1 + $0x85c] ss:$28 sps:$4 sm:$0xff]   ;;  %v12687_v31 = vld [vmem:[%s18379_s1 + $0x850] ss:$28 sps:$4 sm:$0xff]  }
  0x5d   :  { %v12690_v32 = vld [vmem:[%s18379_s1 + $0x858] ss:$28 sps:$4 sm:$0xff]  }
  0x5f   :  { %4523 = vmatpush1.bf16.msra.mxu0 %v12594_v33  ;;  %4824 = vmatpush1.bf16.msra.mxu1 %v12597_v34  ;;  %v12695_v33 = vld [vmem:[%s18379_s1 + $0x88c] ss:$28 sps:$4 sm:$0xff]   ;;  %v12698_v34 = vld [vmem:[%s18379_s1 + $0x894] ss:$28 sps:$4 sm:$0xff]  }
  0x60   :  { %4524 = vmatprep.subr.bf16.mxu0 %v12602_v35  ;;  %4825 = vmatprep.subr.bf16.mxu1 %v12605_v36  ;;  %v12693_v35 = vld [vmem:[%s18379_s1 + $0x888] ss:$28 sps:$4 sm:$0xff]   ;;  %v12696_v36 = vld [vmem:[%s18379_s1 + $0x890] ss:$28 sps:$4 sm:$0xff]  }
  0x63   :  { %4525 = vmatpush1.bf16.msra.mxu0 %v12600_v37  ;;  %4826 = vmatpush1.bf16.msra.mxu1 %v12603_v38  ;;  %v12701_v37 = vld [vmem:[%s18379_s1 + $0x8c4] ss:$28 sps:$4 sm:$0xff]   ;;  %v12704_v38 = vld [vmem:[%s18379_s1 + $0x8cc] ss:$28 sps:$4 sm:$0xff]  }
  0x64   :  { %4526 = vmatprep.subr.bf16.mxu0 %v12608_v39  ;;  %4827 = vmatprep.subr.bf16.mxu1 %v12611_v40  ;;  %v12699_v39 = vld [vmem:[%s18379_s1 + $0x8c0] ss:$28 sps:$4 sm:$0xff]   ;;  %v12702_v40 = vld [vmem:[%s18379_s1 + $0x8c8] ss:$28 sps:$4 sm:$0xff]  }
  0x67   :  { %4527 = vmatpush1.bf16.msra.mxu0 %v12606_v41  ;;  %4828 = vmatpush1.bf16.msra.mxu1 %v12609_v42  ;;  %v12707_v41 = vld [vmem:[%s18379_s1 + $0x8fc] ss:$28 sps:$4 sm:$0xff]   ;;  %v12710_v42 = vld [vmem:[%s18379_s1 + $0x904] ss:$28 sps:$4 sm:$0xff]  }
  0x68   :  { %4528 = vmatprep.subr.bf16.mxu0 %v12614_v43  ;;  %4829 = vmatprep.subr.bf16.mxu1 %v12617_v44  ;;  %v12705_v43 = vld [vmem:[%s18379_s1 + $0x8f8] ss:$28 sps:$4 sm:$0xff]   ;;  %v12708_v44 = vld [vmem:[%s18379_s1 + $0x900] ss:$28 sps:$4 sm:$0xff]  }
  0x6b   :  { %4529 = vmatpush1.bf16.msra.mxu0 %v12612_v45  ;;  %4830 = vmatpush1.bf16.msra.mxu1 %v12615_v46  ;;  %v12713_v45 = vld [vmem:[%s18379_s1 + $0x934] ss:$28 sps:$4 sm:$0xff]   ;;  %v12716_v46 = vld [vmem:[%s18379_s1 + $0x93c] ss:$28 sps:$4 sm:$0xff]  }
  0x6c   :  { %4530 = vmatprep.subr.bf16.mxu0 %v12620_v47  ;;  %4831 = vmatprep.subr.bf16.mxu1 %v12623_v48  ;;  %v12711_v47 = vld [vmem:[%s18379_s1 + $0x930] ss:$28 sps:$4 sm:$0xff]   ;;  %v12714_v48 = vld [vmem:[%s18379_s1 + $0x938] ss:$28 sps:$4 sm:$0xff]  }
  0x6f   :  { %4531 = vmatpush1.bf16.msra.mxu0 %v12618_v49  ;;  %4832 = vmatpush1.bf16.msra.mxu1 %v12621_v50  ;;  %v12719_v49 = vld [vmem:[%s18379_s1 + $0x96c] ss:$28 sps:$4 sm:$0xff]   ;;  %v12722_v50 = vld [vmem:[%s18379_s1 + $0x974] ss:$28 sps:$4 sm:$0xff]  }
  0x70   :  { %4532 = vmatprep.subr.bf16.mxu0 %v12626_v51  ;;  %4833 = vmatprep.subr.bf16.mxu1 %v12629_v52  ;;  %v12717_v51 = vld [vmem:[%s18379_s1 + $0x968] ss:$28 sps:$4 sm:$0xff]   ;;  %v12720_v52 = vld [vmem:[%s18379_s1 + $0x970] ss:$28 sps:$4 sm:$0xff]  }
  0x73   :  { %4533 = vmatpush1.bf16.msra.mxu0 %v12624_v53  ;;  %4834 = vmatpush1.bf16.msra.mxu1 %v12627_v54  ;;  %v12725_v53 = vld [vmem:[%s18379_s1 + $0x9a4] ss:$28 sps:$4 sm:$0xff]   ;;  %v12728_v54 = vld [vmem:[%s18379_s1 + $0x9ac] ss:$28 sps:$4 sm:$0xff]  }
  0x74   :  { %4534 = vmatprep.subr.bf16.mxu0 %v12632_v55  ;;  %4835 = vmatprep.subr.bf16.mxu1 %v12635_v56  ;;  %v12723_v55 = vld [vmem:[%s18379_s1 + $0x9a0] ss:$28 sps:$4 sm:$0xff]   ;;  %v12726_v56 = vld [vmem:[%s18379_s1 + $0x9a8] ss:$28 sps:$4 sm:$0xff]  }
  0x77   :  { %4535 = vmatpush1.bf16.msra.mxu0 %v12630_v57  ;;  %4836 = vmatpush1.bf16.msra.mxu1 %v12633_v58  ;;  %v12731_v57 = vld [vmem:[%s18379_s1 + $0x9dc] ss:$28 sps:$4 sm:$0xff]   ;;  %v12734_v58 = vld [vmem:[%s18379_s1 + $0x9e4] ss:$28 sps:$4 sm:$0xff]  }
  0x78   :  { %4536 = vmatprep.subr.bf16.mxu0 %v12638_v59  ;;  %4837 = vmatprep.subr.bf16.mxu1 %v12641_v60  ;;  %v12729_v59 = vld [vmem:[%s18379_s1 + $0x9d8] ss:$28 sps:$4 sm:$0xff]   ;;  %v12732_v60 = vld [vmem:[%s18379_s1 + $0x9e0] ss:$28 sps:$4 sm:$0xff]  }
  0x7b   :  { %4537 = vmatpush1.bf16.msra.mxu0 %v12636_v61  ;;  %4838 = vmatpush1.bf16.msra.mxu1 %v12639_v62  ;;  %v12737_v61 = vld [vmem:[%s18379_s1 + $0xa14] ss:$28 sps:$4 sm:$0xff]   ;;  %v12740_v62 = vld [vmem:[%s18379_s1 + $0xa1c] ss:$28 sps:$4 sm:$0xff]  }
  0x7c   :  { %4538 = vmatprep.subr.bf16.mxu0 %v12644_v63  ;;  %4839 = vmatprep.subr.bf16.mxu1 %v12647_v0  ;;  %v12735_v63 = vld [vmem:[%s18379_s1 + $0xa10] ss:$28 sps:$4 sm:$0xff]   ;;  %v12738_v0 = vld [vmem:[%s18379_s1 + $0xa18] ss:$28 sps:$4 sm:$0xff]  }
  0x7f   :  { %4539 = vmatpush1.bf16.msra.mxu0 %v12642_v1  ;;  %4840 = vmatpush1.bf16.msra.mxu1 %v12645_v2  ;;  %v12743_v1 = vld [vmem:[%s18379_s1 + $0xa4c] ss:$28 sps:$4 sm:$0xff]   ;;  %v12746_v2 = vld [vmem:[%s18379_s1 + $0xa54] ss:$28 sps:$4 sm:$0xff]  }
  0x80   :  { %4551 = vmatprep.subr.bf16.mxu0 %v12652_v3  ;;  %4852 = vmatprep.subr.bf16.mxu1 %v12655_v4  ;;  %v12741_v3 = vld [vmem:[%s18379_s1 + $0xa48] ss:$28 sps:$4 sm:$0xff]   ;;  %v12744_v4 = vld [vmem:[%s18379_s1 + $0xa50] ss:$28 sps:$4 sm:$0xff]  }
  0x82   :  { %4541 = vmatmul.mubr.bf16.vlgmr.msra.gmra.mrb[0].mxu0 %v12656_v7  ;;  %4842 = vmatmul.mubr.bf16.vlgmr.msra.gmra.mrb[0].mxu1 %v12656_v7  ;;  %v12749_v7 = vld [vmem:[%s18379_s1 + $0xa80] ss:$28 sps:$4 sm:$0xff]  }
  0x83   :  { %4552 = vmatpush1.bf16.msra.mxu0 %v12650_v5  ;;  %4853 = vmatpush1.bf16.msra.mxu1 %v12653_v6  ;;  %v12751_v5 = vld [vmem:[%s18379_s1 + $0xa84] ss:$28 sps:$4 sm:$0xff]   ;;  %v12754_v6 = vld [vmem:[%s18379_s1 + $0xa8c] ss:$28 sps:$4 sm:$0xff]  }
  0x84   :  { %4553 = vmatprep.subr.bf16.mxu0 %v12659_v8  ;;  %4854 = vmatprep.subr.bf16.mxu1 %v12662_v9  ;;  %v12752_v8 = vld [vmem:[%s18379_s1 + $0xa88] ss:$28 sps:$4 sm:$0xff]  }
  0x85   :  { %4583 = vmatprep.mubr.bf16.mxu0 %v12747_v11  ;;  %4884 = vmatprep.mubr.bf16.mxu1 %v12747_v11  ;;  %v12755_v9 = vld [vmem:[%s18380_s0 + $0x10] ss:$52 sps:$4 sm:$0xff]  }
  0x86   :  { %v12761_v11 = vld [vmem:[%s18379_s1 + $0xac4] ss:$28 sps:$4 sm:$0xff]  }
  0x87   :  { %4554 = vmatpush1.bf16.msra.mxu0 %v12657_v10  ;;  %4855 = vmatpush1.bf16.msra.mxu1 %v12660_v12  ;;  %v12758_v10 = vld [vmem:[%s18379_s1 + $0xabc] ss:$28 sps:$4 sm:$0xff]  }
  0x88   :  { %4555 = vmatprep.subr.bf16.mxu0 %v12665_v13  ;;  %4856 = vmatprep.subr.bf16.mxu1 %v12668_v14  ;;  %v12846_v12 = vld [vmem:[%s18380_s0 + $0x1c] ss:$52 sps:$4 sm:$0xff]   ;;  %v12756_v13 = vld [vmem:[%s18379_s1 + $0xab8] ss:$28 sps:$4 sm:$0xff]  }
  0x89   :  { %v12759_v14 = vld [vmem:[%s18379_s1 + $0xac0] ss:$28 sps:$4 sm:$0xff]  }
  0x8b   :  { %4556 = vmatpush1.bf16.msra.mxu0 %v12663_v15  ;;  %4857 = vmatpush1.bf16.msra.mxu1 %v12666_v16  ;;  %v12764_v15 = vld [vmem:[%s18379_s1 + $0xaf4] ss:$28 sps:$4 sm:$0xff]   ;;  %v12767_v16 = vld [vmem:[%s18379_s1 + $0xafc] ss:$28 sps:$4 sm:$0xff]  }
  0x8c   :  { %4557 = vmatprep.subr.bf16.mxu0 %v12671_v17  ;;  %4858 = vmatprep.subr.bf16.mxu1 %v12674_v18  ;;  %v12762_v17 = vld [vmem:[%s18379_s1 + $0xaf0] ss:$28 sps:$4 sm:$0xff]   ;;  %v12765_v18 = vld [vmem:[%s18379_s1 + $0xaf8] ss:$28 sps:$4 sm:$0xff]  }
  0x8f   :  { %4558 = vmatpush1.bf16.msra.mxu0 %v12669_v19  ;;  %4859 = vmatpush1.bf16.msra.mxu1 %v12672_v20  ;;  %v12770_v19 = vld [vmem:[%s18379_s1 + $0xb2c] ss:$28 sps:$4 sm:$0xff]   ;;  %v12773_v20 = vld [vmem:[%s18379_s1 + $0xb34] ss:$28 sps:$4 sm:$0xff]  }
  0x90   :  { %4559 = vmatprep.subr.bf16.mxu0 %v12677_v21  ;;  %4860 = vmatprep.subr.bf16.mxu1 %v12680_v22  ;;  %v12768_v21 = vld [vmem:[%s18379_s1 + $0xb28] ss:$28 sps:$4 sm:$0xff]   ;;  %v12771_v22 = vld [vmem:[%s18379_s1 + $0xb30] ss:$28 sps:$4 sm:$0xff]  }
  0x93   :  { %4560 = vmatpush1.bf16.msra.mxu0 %v12675_v23  ;;  %4861 = vmatpush1.bf16.msra.mxu1 %v12678_v24  ;;  %v12776_v23 = vld [vmem:[%s18379_s1 + $0xb64] ss:$28 sps:$4 sm:$0xff]   ;;  %v12779_v24 = vld [vmem:[%s18379_s1 + $0xb6c] ss:$28 sps:$4 sm:$0xff]  }
  0x94   :  { %4561 = vmatprep.subr.bf16.mxu0 %v12683_v25  ;;  %4862 = vmatprep.subr.bf16.mxu1 %v12686_v26  ;;  %v12774_v25 = vld [vmem:[%s18379_s1 + $0xb60] ss:$28 sps:$4 sm:$0xff]   ;;  %v12777_v26 = vld [vmem:[%s18379_s1 + $0xb68] ss:$28 sps:$4 sm:$0xff]  }
  0x97   :  { %4562 = vmatpush1.bf16.msra.mxu0 %v12681_v27  ;;  %4863 = vmatpush1.bf16.msra.mxu1 %v12684_v28  ;;  %v12782_v27 = vld [vmem:[%s18379_s1 + $0xb9c] ss:$28 sps:$4 sm:$0xff]   ;;  %v12785_v28 = vld [vmem:[%s18379_s1 + $0xba4] ss:$28 sps:$4 sm:$0xff]  }
  0x98   :  { %4563 = vmatprep.subr.bf16.mxu0 %v12689_v29  ;;  %4864 = vmatprep.subr.bf16.mxu1 %v12692_v30  ;;  %v12780_v29 = vld [vmem:[%s18379_s1 + $0xb98] ss:$28 sps:$4 sm:$0xff]   ;;  %v12783_v30 = vld [vmem:[%s18379_s1 + $0xba0] ss:$28 sps:$4 sm:$0xff]  }
  0x9b   :  { %4564 = vmatpush1.bf16.msra.mxu0 %v12687_v31  ;;  %4865 = vmatpush1.bf16.msra.mxu1 %v12690_v32  ;;  %v12788_v31 = vld [vmem:[%s18379_s1 + $0xbd4] ss:$28 sps:$4 sm:$0xff]   ;;  %v12791_v32 = vld [vmem:[%s18379_s1 + $0xbdc] ss:$28 sps:$4 sm:$0xff]  }
  0x9c   :  { %4565 = vmatprep.subr.bf16.mxu0 %v12695_v33  ;;  %4866 = vmatprep.subr.bf16.mxu1 %v12698_v34  ;;  %v12786_v33 = vld [vmem:[%s18379_s1 + $0xbd0] ss:$28 sps:$4 sm:$0xff]   ;;  %v12789_v34 = vld [vmem:[%s18379_s1 + $0xbd8] ss:$28 sps:$4 sm:$0xff]  }
  0x9f   :  { %4566 = vmatpush1.bf16.msra.mxu0 %v12693_v35  ;;  %4867 = vmatpush1.bf16.msra.mxu1 %v12696_v36  ;;  %v12794_v35 = vld [vmem:[%s18379_s1 + $0xc0c] ss:$28 sps:$4 sm:$0xff]   ;;  %v12797_v36 = vld [vmem:[%s18379_s1 + $0xc14] ss:$28 sps:$4 sm:$0xff]  }
  0xa0   :  { %4567 = vmatprep.subr.bf16.mxu0 %v12701_v37  ;;  %4868 = vmatprep.subr.bf16.mxu1 %v12704_v38  ;;  %v12792_v37 = vld [vmem:[%s18379_s1 + $0xc08] ss:$28 sps:$4 sm:$0xff]   ;;  %v12795_v38 = vld [vmem:[%s18379_s1 + $0xc10] ss:$28 sps:$4 sm:$0xff]  }
  0xa3   :  { %4568 = vmatpush1.bf16.msra.mxu0 %v12699_v39  ;;  %4869 = vmatpush1.bf16.msra.mxu1 %v12702_v40  ;;  %v12800_v39 = vld [vmem:[%s18379_s1 + $0xc44] ss:$28 sps:$4 sm:$0xff]   ;;  %v12803_v40 = vld [vmem:[%s18379_s1 + $0xc4c] ss:$28 sps:$4 sm:$0xff]  }
  0xa4   :  { %4569 = vmatprep.subr.bf16.mxu0 %v12707_v41  ;;  %4870 = vmatprep.subr.bf16.mxu1 %v12710_v42  ;;  %v12798_v41 = vld [vmem:[%s18379_s1 + $0xc40] ss:$28 sps:$4 sm:$0xff]   ;;  %v12801_v42 = vld [vmem:[%s18379_s1 + $0xc48] ss:$28 sps:$4 sm:$0xff]  }
  0xa7   :  { %4570 = vmatpush1.bf16.msra.mxu0 %v12705_v43  ;;  %4871 = vmatpush1.bf16.msra.mxu1 %v12708_v44  ;;  %v12806_v43 = vld [vmem:[%s18379_s1 + $0xc7c] ss:$28 sps:$4 sm:$0xff]   ;;  %v12809_v44 = vld [vmem:[%s18379_s1 + $0xc84] ss:$28 sps:$4 sm:$0xff]  }
  0xa8   :  { %4571 = vmatprep.subr.bf16.mxu0 %v12713_v45  ;;  %4872 = vmatprep.subr.bf16.mxu1 %v12716_v46  ;;  %v12804_v45 = vld [vmem:[%s18379_s1 + $0xc78] ss:$28 sps:$4 sm:$0xff]   ;;  %v12807_v46 = vld [vmem:[%s18379_s1 + $0xc80] ss:$28 sps:$4 sm:$0xff]  }
  0xab   :  { %4572 = vmatpush1.bf16.msra.mxu0 %v12711_v47  ;;  %4873 = vmatpush1.bf16.msra.mxu1 %v12714_v48  ;;  %v12812_v47 = vld [vmem:[%s18379_s1 + $0xcb4] ss:$28 sps:$4 sm:$0xff]   ;;  %v12815_v48 = vld [vmem:[%s18379_s1 + $0xcbc] ss:$28 sps:$4 sm:$0xff]  }
  0xac   :  { %4573 = vmatprep.subr.bf16.mxu0 %v12719_v49  ;;  %4874 = vmatprep.subr.bf16.mxu1 %v12722_v50  ;;  %v12810_v49 = vld [vmem:[%s18379_s1 + $0xcb0] ss:$28 sps:$4 sm:$0xff]   ;;  %v12813_v50 = vld [vmem:[%s18379_s1 + $0xcb8] ss:$28 sps:$4 sm:$0xff]  }
  0xaf   :  { %4574 = vmatpush1.bf16.msra.mxu0 %v12717_v51  ;;  %4875 = vmatpush1.bf16.msra.mxu1 %v12720_v52  ;;  %v12818_v51 = vld [vmem:[%s18379_s1 + $0xcec] ss:$28 sps:$4 sm:$0xff]   ;;  %v12821_v52 = vld [vmem:[%s18379_s1 + $0xcf4] ss:$28 sps:$4 sm:$0xff]  }
  0xb0   :  { %4575 = vmatprep.subr.bf16.mxu0 %v12725_v53  ;;  %4876 = vmatprep.subr.bf16.mxu1 %v12728_v54  ;;  %v12816_v53 = vld [vmem:[%s18379_s1 + $0xce8] ss:$28 sps:$4 sm:$0xff]   ;;  %v12819_v54 = vld [vmem:[%s18379_s1 + $0xcf0] ss:$28 sps:$4 sm:$0xff]  }
  0xb3   :  { %4576 = vmatpush1.bf16.msra.mxu0 %v12723_v55  ;;  %4877 = vmatpush1.bf16.msra.mxu1 %v12726_v56  ;;  %v12824_v55 = vld [vmem:[%s18379_s1 + $0xd24] ss:$28 sps:$4 sm:$0xff]   ;;  %v12827_v56 = vld [vmem:[%s18379_s1 + $0xd2c] ss:$28 sps:$4 sm:$0xff]  }
  0xb4   :  { %4577 = vmatprep.subr.bf16.mxu0 %v12731_v57  ;;  %4878 = vmatprep.subr.bf16.mxu1 %v12734_v58  ;;  %v12822_v57 = vld [vmem:[%s18379_s1 + $0xd20] ss:$28 sps:$4 sm:$0xff]   ;;  %v12825_v58 = vld [vmem:[%s18379_s1 + $0xd28] ss:$28 sps:$4 sm:$0xff]  }
  0xb7   :  { %4578 = vmatpush1.bf16.msra.mxu0 %v12729_v59  ;;  %4879 = vmatpush1.bf16.msra.mxu1 %v12732_v60  ;;  %v12830_v59 = vld [vmem:[%s18379_s1 + $0xd5c] ss:$28 sps:$4 sm:$0xff]   ;;  %v12833_v60 = vld [vmem:[%s18379_s1 + $0xd64] ss:$28 sps:$4 sm:$0xff]  }
  0xb8   :  { %4579 = vmatprep.subr.bf16.mxu0 %v12737_v61  ;;  %4880 = vmatprep.subr.bf16.mxu1 %v12740_v62  ;;  %v12828_v61 = vld [vmem:[%s18379_s1 + $0xd58] ss:$28 sps:$4 sm:$0xff]   ;;  %v12831_v62 = vld [vmem:[%s18379_s1 + $0xd60] ss:$28 sps:$4 sm:$0xff]  }
  0xbb   :  { %4580 = vmatpush1.bf16.msra.mxu0 %v12735_v63  ;;  %4881 = vmatpush1.bf16.msra.mxu1 %v12738_v0  ;;  %v12836_v63 = vld [vmem:[%s18379_s1 + $0xd94] ss:$28 sps:$4 sm:$0xff]   ;;  %v12839_v0 = vld [vmem:[%s18379_s1 + $0xd9c] ss:$28 sps:$4 sm:$0xff]  }
  0xbc   :  { %4581 = vmatprep.subr.bf16.mxu0 %v12743_v1  ;;  %4882 = vmatprep.subr.bf16.mxu1 %v12746_v2  ;;  %v12834_v1 = vld [vmem:[%s18379_s1 + $0xd90] ss:$28 sps:$4 sm:$0xff]   ;;  %v12837_v2 = vld [vmem:[%s18379_s1 + $0xd98] ss:$28 sps:$4 sm:$0xff]  }
  0xbf   :  { %4582 = vmatpush1.bf16.msra.mxu0 %v12741_v3  ;;  %4883 = vmatpush1.bf16.msra.mxu1 %v12744_v4  ;;  %v12842_v3 = vld [vmem:[%s18379_s1 + $0xdcc] ss:$28 sps:$4 sm:$0xff]   ;;  %v12845_v4 = vld [vmem:[%s18379_s1 + $0xdd4] ss:$28 sps:$4 sm:$0xff]  }
  0xc0   :  { %4594 = vmatprep.subr.bf16.mxu0 %v12751_v5  ;;  %4895 = vmatprep.subr.bf16.mxu1 %v12754_v6  ;;  %v12840_v5 = vld [vmem:[%s18379_s1 + $0xdc8] ss:$28 sps:$4 sm:$0xff]   ;;  %v12843_v6 = vld [vmem:[%s18379_s1 + $0xdd0] ss:$28 sps:$4 sm:$0xff]  }
  0xc2   :  { %4584 = vmatmul.mubr.bf16.vlgmr.msra.gmra.mrb[0].mxu0 %v12755_v9  ;;  %4885 = vmatmul.mubr.bf16.vlgmr.msra.gmra.mrb[0].mxu1 %v12755_v9  ;;  %v12848_v9 = vld [vmem:[%s18379_s1 + $0xe00] ss:$28 sps:$4 sm:$0xff]  }
  0xc3   :  { %4595 = vmatpush1.bf16.msra.mxu0 %v12749_v7  ;;  %4896 = vmatpush1.bf16.msra.mxu1 %v12752_v8  ;;  %v12850_v7 = vld [vmem:[%s18379_s1 + $0xe04] ss:$28 sps:$4 sm:$0xff]   ;;  %v12853_v8 = vld [vmem:[%s18379_s1 + $0xe0c] ss:$28 sps:$4 sm:$0xff]  }
  0xc4   :  { %4596 = vmatprep.subr.bf16.mxu0 %v12758_v10  ;;  %4897 = vmatprep.subr.bf16.mxu1 %v12761_v11  ;;  %v12851_v10 = vld [vmem:[%s18379_s1 + $0xe08] ss:$28 sps:$4 sm:$0xff]   ;;  %v12854_v11 = vld [vmem:[%s18380_s0 + $0x18] ss:$52 sps:$4 sm:$0xff]  }
  0xc5   :  { %4626 = vmatprep.mubr.bf16.mxu0 %v12846_v12  ;;  %4927 = vmatprep.mubr.bf16.mxu1 %v12846_v12  ;;  %v12857_v12 = vld [vmem:[%s18379_s1 + $0xe3c] ss:$28 sps:$4 sm:$0xff]  }
  0xc7   :  { %4597 = vmatpush1.bf16.msra.mxu0 %v12756_v13  ;;  %4898 = vmatpush1.bf16.msra.mxu1 %v12759_v14  ;;  %v12860_v13 = vld [vmem:[%s18379_s1 + $0xe44] ss:$28 sps:$4 sm:$0xff]  }
  0xc8   :  { %4598 = vmatprep.subr.bf16.mxu0 %v12764_v15  ;;  %4899 = vmatprep.subr.bf16.mxu1 %v12767_v16  ;;  %v12945_v14 = vld [vmem:[%s18380_s0 + $0x24] ss:$52 sps:$4 sm:$0xff]   ;;  %v12858_v16 = vld [vmem:[%s18379_s1 + $0xe40] ss:$28 sps:$4 sm:$0xff]  }
  0xc9   :  { %v12855_v15 = vld [vmem:[%s18379_s1 + $0xe38] ss:$28 sps:$4 sm:$0xff]  }
  0xcb   :  { %4599 = vmatpush1.bf16.msra.mxu0 %v12762_v17  ;;  %4900 = vmatpush1.bf16.msra.mxu1 %v12765_v18  ;;  %v12863_v17 = vld [vmem:[%s18379_s1 + $0xe74] ss:$28 sps:$4 sm:$0xff]   ;;  %v12866_v18 = vld [vmem:[%s18379_s1 + $0xe7c] ss:$28 sps:$4 sm:$0xff]  }
  0xcc   :  { %4600 = vmatprep.subr.bf16.mxu0 %v12770_v19  ;;  %4901 = vmatprep.subr.bf16.mxu1 %v12773_v20  ;;  %v12861_v19 = vld [vmem:[%s18379_s1 + $0xe70] ss:$28 sps:$4 sm:$0xff]   ;;  %v12864_v20 = vld [vmem:[%s18379_s1 + $0xe78] ss:$28 sps:$4 sm:$0xff]  }
  0xcf   :  { %4601 = vmatpush1.bf16.msra.mxu0 %v12768_v21  ;;  %4902 = vmatpush1.bf16.msra.mxu1 %v12771_v22  ;;  %v12869_v21 = vld [vmem:[%s18379_s1 + $0xeac] ss:$28 sps:$4 sm:$0xff]   ;;  %v12872_v22 = vld [vmem:[%s18379_s1 + $0xeb4] ss:$28 sps:$4 sm:$0xff]  }
  0xd0   :  { %4602 = vmatprep.subr.bf16.mxu0 %v12776_v23  ;;  %4903 = vmatprep.subr.bf16.mxu1 %v12779_v24  ;;  %v12867_v23 = vld [vmem:[%s18379_s1 + $0xea8] ss:$28 sps:$4 sm:$0xff]   ;;  %v12870_v24 = vld [vmem:[%s18379_s1 + $0xeb0] ss:$28 sps:$4 sm:$0xff]  }
  0xd3   :  { %4603 = vmatpush1.bf16.msra.mxu0 %v12774_v25  ;;  %4904 = vmatpush1.bf16.msra.mxu1 %v12777_v26  ;;  %v12875_v25 = vld [vmem:[%s18379_s1 + $0xee4] ss:$28 sps:$4 sm:$0xff]   ;;  %v12878_v26 = vld [vmem:[%s18379_s1 + $0xeec] ss:$28 sps:$4 sm:$0xff]  }
  0xd4   :  { %4604 = vmatprep.subr.bf16.mxu0 %v12782_v27  ;;  %4905 = vmatprep.subr.bf16.mxu1 %v12785_v28  ;;  %v12873_v27 = vld [vmem:[%s18379_s1 + $0xee0] ss:$28 sps:$4 sm:$0xff]   ;;  %v12876_v28 = vld [vmem:[%s18379_s1 + $0xee8] ss:$28 sps:$4 sm:$0xff]  }
  0xd7   :  { %4605 = vmatpush1.bf16.msra.mxu0 %v12780_v29  ;;  %4906 = vmatpush1.bf16.msra.mxu1 %v12783_v30  ;;  %v12881_v29 = vld [vmem:[%s18379_s1 + $0xf1c] ss:$28 sps:$4 sm:$0xff]   ;;  %v12884_v30 = vld [vmem:[%s18379_s1 + $0xf24] ss:$28 sps:$4 sm:$0xff]  }
  0xd8   :  { %4606 = vmatprep.subr.bf16.mxu0 %v12788_v31  ;;  %4907 = vmatprep.subr.bf16.mxu1 %v12791_v32  ;;  %v12879_v31 = vld [vmem:[%s18379_s1 + $0xf18] ss:$28 sps:$4 sm:$0xff]   ;;  %v12882_v32 = vld [vmem:[%s18379_s1 + $0xf20] ss:$28 sps:$4 sm:$0xff]  }
  0xdb   :  { %4607 = vmatpush1.bf16.msra.mxu0 %v12786_v33  ;;  %4908 = vmatpush1.bf16.msra.mxu1 %v12789_v34  ;;  %v12887_v33 = vld [vmem:[%s18379_s1 + $0xf54] ss:$28 sps:$4 sm:$0xff]   ;;  %v12890_v34 = vld [vmem:[%s18379_s1 + $0xf5c] ss:$28 sps:$4 sm:$0xff]  }
  0xdc   :  { %4608 = vmatprep.subr.bf16.mxu0 %v12794_v35  ;;  %4909 = vmatprep.subr.bf16.mxu1 %v12797_v36  ;;  %v12885_v35 = vld [vmem:[%s18379_s1 + $0xf50] ss:$28 sps:$4 sm:$0xff]   ;;  %v12888_v36 = vld [vmem:[%s18379_s1 + $0xf58] ss:$28 sps:$4 sm:$0xff]  }
  0xdf   :  { %4609 = vmatpush1.bf16.msra.mxu0 %v12792_v37  ;;  %4910 = vmatpush1.bf16.msra.mxu1 %v12795_v38  ;;  %v12893_v37 = vld [vmem:[%s18379_s1 + $0xf8c] ss:$28 sps:$4 sm:$0xff]   ;;  %v12896_v38 = vld [vmem:[%s18379_s1 + $0xf94] ss:$28 sps:$4 sm:$0xff]  }
  0xe0   :  { %4610 = vmatprep.subr.bf16.mxu0 %v12800_v39  ;;  %4911 = vmatprep.subr.bf16.mxu1 %v12803_v40  ;;  %v12891_v39 = vld [vmem:[%s18379_s1 + $0xf88] ss:$28 sps:$4 sm:$0xff]   ;;  %v12894_v40 = vld [vmem:[%s18379_s1 + $0xf90] ss:$28 sps:$4 sm:$0xff]  }
  0xe3   :  { %4611 = vmatpush1.bf16.msra.mxu0 %v12798_v41  ;;  %4912 = vmatpush1.bf16.msra.mxu1 %v12801_v42  ;;  %v12899_v41 = vld [vmem:[%s18379_s1 + $0xfc4] ss:$28 sps:$4 sm:$0xff]   ;;  %v12902_v42 = vld [vmem:[%s18379_s1 + $0xfcc] ss:$28 sps:$4 sm:$0xff]  }
  0xe4   :  { %4612 = vmatprep.subr.bf16.mxu0 %v12806_v43  ;;  %4913 = vmatprep.subr.bf16.mxu1 %v12809_v44  ;;  %v12897_v43 = vld [vmem:[%s18379_s1 + $0xfc0] ss:$28 sps:$4 sm:$0xff]   ;;  %v12900_v44 = vld [vmem:[%s18379_s1 + $0xfc8] ss:$28 sps:$4 sm:$0xff]  }
  0xe7   :  { %4613 = vmatpush1.bf16.msra.mxu0 %v12804_v45  ;;  %4914 = vmatpush1.bf16.msra.mxu1 %v12807_v46  ;;  %v12905_v45 = vld [vmem:[%s18379_s1 + $0xffc] ss:$28 sps:$4 sm:$0xff]   ;;  %v12908_v46 = vld [vmem:[%s18379_s1 + $0x1004] ss:$28 sps:$4 sm:$0xff]  }
  0xe8   :  { %4614 = vmatprep.subr.bf16.mxu0 %v12812_v47  ;;  %4915 = vmatprep.subr.bf16.mxu1 %v12815_v48  ;;  %v12903_v47 = vld [vmem:[%s18379_s1 + $0xff8] ss:$28 sps:$4 sm:$0xff]   ;;  %v12906_v48 = vld [vmem:[%s18379_s1 + $0x1000] ss:$28 sps:$4 sm:$0xff]  }
  0xeb   :  { %4615 = vmatpush1.bf16.msra.mxu0 %v12810_v49  ;;  %4916 = vmatpush1.bf16.msra.mxu1 %v12813_v50  ;;  %v12911_v49 = vld [vmem:[%s18379_s1 + $0x1034] ss:$28 sps:$4 sm:$0xff]   ;;  %v12914_v50 = vld [vmem:[%s18379_s1 + $0x103c] ss:$28 sps:$4 sm:$0xff]  }
  0xec   :  { %4616 = vmatprep.subr.bf16.mxu0 %v12818_v51  ;;  %4917 = vmatprep.subr.bf16.mxu1 %v12821_v52  ;;  %v12909_v51 = vld [vmem:[%s18379_s1 + $0x1030] ss:$28 sps:$4 sm:$0xff]   ;;  %v12912_v52 = vld [vmem:[%s18379_s1 + $0x1038] ss:$28 sps:$4 sm:$0xff]  }
  0xef   :  { %4617 = vmatpush1.bf16.msra.mxu0 %v12816_v53  ;;  %4918 = vmatpush1.bf16.msra.mxu1 %v12819_v54  ;;  %v12917_v53 = vld [vmem:[%s18379_s1 + $0x106c] ss:$28 sps:$4 sm:$0xff]   ;;  %v12920_v54 = vld [vmem:[%s18379_s1 + $0x1074] ss:$28 sps:$4 sm:$0xff]  }
  0xf0   :  { %4618 = vmatprep.subr.bf16.mxu0 %v12824_v55  ;;  %4919 = vmatprep.subr.bf16.mxu1 %v12827_v56  ;;  %v12915_v55 = vld [vmem:[%s18379_s1 + $0x1068] ss:$28 sps:$4 sm:$0xff]   ;;  %v12918_v56 = vld [vmem:[%s18379_s1 + $0x1070] ss:$28 sps:$4 sm:$0xff]  }
  0xf3   :  { %4619 = vmatpush1.bf16.msra.mxu0 %v12822_v57  ;;  %4920 = vmatpush1.bf16.msra.mxu1 %v12825_v58  ;;  %v12923_v57 = vld [vmem:[%s18379_s1 + $0x10a4] ss:$28 sps:$4 sm:$0xff]   ;;  %v12926_v58 = vld [vmem:[%s18379_s1 + $0x10ac] ss:$28 sps:$4 sm:$0xff]  }
  0xf4   :  { %4620 = vmatprep.subr.bf16.mxu0 %v12830_v59  ;;  %4921 = vmatprep.subr.bf16.mxu1 %v12833_v60  ;;  %v12921_v59 = vld [vmem:[%s18379_s1 + $0x10a0] ss:$28 sps:$4 sm:$0xff]   ;;  %v12924_v60 = vld [vmem:[%s18379_s1 + $0x10a8] ss:$28 sps:$4 sm:$0xff]  }
  0xf7   :  { %4621 = vmatpush1.bf16.msra.mxu0 %v12828_v61  ;;  %4922 = vmatpush1.bf16.msra.mxu1 %v12831_v62  ;;  %v12929_v61 = vld [vmem:[%s18379_s1 + $0x10dc] ss:$28 sps:$4 sm:$0xff]   ;;  %v12932_v62 = vld [vmem:[%s18379_s1 + $0x10e4] ss:$28 sps:$4 sm:$0xff]  }
  0xf8   :  { %4622 = vmatprep.subr.bf16.mxu0 %v12836_v63  ;;  %4923 = vmatprep.subr.bf16.mxu1 %v12839_v0  ;;  %v12927_v63 = vld [vmem:[%s18379_s1 + $0x10d8] ss:$28 sps:$4 sm:$0xff]   ;;  %v12930_v0 = vld [vmem:[%s18379_s1 + $0x10e0] ss:$28 sps:$4 sm:$0xff]  }
  0xfb   :  { %4623 = vmatpush1.bf16.msra.mxu0 %v12834_v1  ;;  %4924 = vmatpush1.bf16.msra.mxu1 %v12837_v2  ;;  %v12935_v1 = vld [vmem:[%s18379_s1 + $0x1114] ss:$28 sps:$4 sm:$0xff]   ;;  %v12938_v2 = vld [vmem:[%s18379_s1 + $0x111c] ss:$28 sps:$4 sm:$0xff]  }
  0xfc   :  { %4624 = vmatprep.subr.bf16.mxu0 %v12842_v3  ;;  %4925 = vmatprep.subr.bf16.mxu1 %v12845_v4  ;;  %v12933_v3 = vld [vmem:[%s18379_s1 + $0x1110] ss:$28 sps:$4 sm:$0xff]   ;;  %v12936_v4 = vld [vmem:[%s18379_s1 + $0x1118] ss:$28 sps:$4 sm:$0xff]  }
  0xff   :  { %4625 = vmatpush1.bf16.msra.mxu0 %v12840_v5  ;;  %4926 = vmatpush1.bf16.msra.mxu1 %v12843_v6  ;;  %v12941_v5 = vld [vmem:[%s18379_s1 + $0x114c] ss:$28 sps:$4 sm:$0xff]   ;;  %v12944_v6 = vld [vmem:[%s18379_s1 + $0x1154] ss:$28 sps:$4 sm:$0xff]  }
 0x100   :  { %4637 = vmatprep.subr.bf16.mxu0 %v12850_v7  ;;  %4938 = vmatprep.subr.bf16.mxu1 %v12853_v8  ;;  %v12939_v7 = vld [vmem:[%s18379_s1 + $0x1148] ss:$28 sps:$4 sm:$0xff]   ;;  %v12942_v8 = vld [vmem:[%s18379_s1 + $0x1150] ss:$28 sps:$4 sm:$0xff]  }
 0x102   :  { %4627 = vmatmul.mubr.bf16.vlgmr.msra.gmra.mrb[0].mxu0 %v12854_v11  ;;  %4928 = vmatmul.mubr.bf16.vlgmr.msra.gmra.mrb[0].mxu1 %v12854_v11  ;;  %v12947_v11 = vld [vmem:[%s18379_s1 + $0x1180] ss:$28 sps:$4 sm:$0xff]  }
 0x103   :  { %4638 = vmatpush1.bf16.msra.mxu0 %v12848_v9  ;;  %4939 = vmatpush1.bf16.msra.mxu1 %v12851_v10  ;;  %v12949_v9 = vld [vmem:[%s18379_s1 + $0x1184] ss:$28 sps:$4 sm:$0xff]   ;;  %v12952_v10 = vld [vmem:[%s18379_s1 + $0x118c] ss:$28 sps:$4 sm:$0xff]  }
 0x104   :  { %4639 = vmatprep.subr.bf16.mxu0 %v12857_v12  ;;  %4940 = vmatprep.subr.bf16.mxu1 %v12860_v13  ;;  %v12953_v12 = vld [vmem:[%s18380_s0 + $0x20] ss:$52 sps:$4 sm:$0xff]   ;;  %v12950_v13 = vld [vmem:[%s18379_s1 + $0x1188] ss:$28 sps:$4 sm:$0xff]  }
 0x105   :  { %4669 = vmatprep.mubr.bf16.mxu0 %v12945_v14  ;;  %4970 = vmatprep.mubr.bf16.mxu1 %v12945_v14  ;;  %v12956_v14 = vld [vmem:[%s18379_s1 + $0x11bc] ss:$28 sps:$4 sm:$0xff]  }
 0x107   :  { %4640 = vmatpush1.bf16.msra.mxu0 %v12855_v15  ;;  %4941 = vmatpush1.bf16.msra.mxu1 %v12858_v16  ;;  %v12959_v15 = vld [vmem:[%s18379_s1 + $0x11c4] ss:$28 sps:$4 sm:$0xff]   ;;  %v12954_v16 = vld [vmem:[%s18379_s1 + $0x11b8] ss:$28 sps:$4 sm:$0xff]  }
 0x108   :  { %4641 = vmatprep.subr.bf16.mxu0 %v12863_v17  ;;  %4942 = vmatprep.subr.bf16.mxu1 %v12866_v18  ;;  %v13044_v17 = vld [vmem:[%s18380_s0 + $0x2c] ss:$52 sps:$4 sm:$0xff]  }
 0x109   :  { %v12957_v18 = vld [vmem:[%s18379_s1 + $0x11c0] ss:$28 sps:$4 sm:$0xff]  }
 0x10b   :  { %4642 = vmatpush1.bf16.msra.mxu0 %v12861_v19  ;;  %4943 = vmatpush1.bf16.msra.mxu1 %v12864_v20  ;;  %v12962_v19 = vld [vmem:[%s18379_s1 + $0x11f4] ss:$28 sps:$4 sm:$0xff]   ;;  %v12965_v20 = vld [vmem:[%s18379_s1 + $0x11fc] ss:$28 sps:$4 sm:$0xff]  }
 0x10c   :  { %4643 = vmatprep.subr.bf16.mxu0 %v12869_v21  ;;  %4944 = vmatprep.subr.bf16.mxu1 %v12872_v22  ;;  %v12960_v21 = vld [vmem:[%s18379_s1 + $0x11f0] ss:$28 sps:$4 sm:$0xff]   ;;  %v12963_v22 = vld [vmem:[%s18379_s1 + $0x11f8] ss:$28 sps:$4 sm:$0xff]  }
 0x10f   :  { %4644 = vmatpush1.bf16.msra.mxu0 %v12867_v23  ;;  %4945 = vmatpush1.bf16.msra.mxu1 %v12870_v24  ;;  %v12968_v23 = vld [vmem:[%s18379_s1 + $0x122c] ss:$28 sps:$4 sm:$0xff]   ;;  %v12971_v24 = vld [vmem:[%s18379_s1 + $0x1234] ss:$28 sps:$4 sm:$0xff]  }
 0x110   :  { %4645 = vmatprep.subr.bf16.mxu0 %v12875_v25  ;;  %4946 = vmatprep.subr.bf16.mxu1 %v12878_v26  ;;  %v12966_v25 = vld [vmem:[%s18379_s1 + $0x1228] ss:$28 sps:$4 sm:$0xff]   ;;  %v12969_v26 = vld [vmem:[%s18379_s1 + $0x1230] ss:$28 sps:$4 sm:$0xff]  }
 0x113   :  { %4646 = vmatpush1.bf16.msra.mxu0 %v12873_v27  ;;  %4947 = vmatpush1.bf16.msra.mxu1 %v12876_v28  ;;  %v12974_v27 = vld [vmem:[%s18379_s1 + $0x1264] ss:$28 sps:$4 sm:$0xff]   ;;  %v12977_v28 = vld [vmem:[%s18379_s1 + $0x126c] ss:$28 sps:$4 sm:$0xff]  }
 0x114   :  { %4647 = vmatprep.subr.bf16.mxu0 %v12881_v29  ;;  %4948 = vmatprep.subr.bf16.mxu1 %v12884_v30  ;;  %v12972_v29 = vld [vmem:[%s18379_s1 + $0x1260] ss:$28 sps:$4 sm:$0xff]   ;;  %v12975_v30 = vld [vmem:[%s18379_s1 + $0x1268] ss:$28 sps:$4 sm:$0xff]  }
 0x117   :  { %4648 = vmatpush1.bf16.msra.mxu0 %v12879_v31  ;;  %4949 = vmatpush1.bf16.msra.mxu1 %v12882_v32  ;;  %v12980_v31 = vld [vmem:[%s18379_s1 + $0x129c] ss:$28 sps:$4 sm:$0xff]   ;;  %v12983_v32 = vld [vmem:[%s18379_s1 + $0x12a4] ss:$28 sps:$4 sm:$0xff]  }
 0x118   :  { %4649 = vmatprep.subr.bf16.mxu0 %v12887_v33  ;;  %4950 = vmatprep.subr.bf16.mxu1 %v12890_v34  ;;  %v12978_v33 = vld [vmem:[%s18379_s1 + $0x1298] ss:$28 sps:$4 sm:$0xff]   ;;  %v12981_v34 = vld [vmem:[%s18379_s1 + $0x12a0] ss:$28 sps:$4 sm:$0xff]  }
 0x11b   :  { %4650 = vmatpush1.bf16.msra.mxu0 %v12885_v35  ;;  %4951 = vmatpush1.bf16.msra.mxu1 %v12888_v36  ;;  %v12986_v35 = vld [vmem:[%s18379_s1 + $0x12d4] ss:$28 sps:$4 sm:$0xff]   ;;  %v12989_v36 = vld [vmem:[%s18379_s1 + $0x12dc] ss:$28 sps:$4 sm:$0xff]  }
 0x11c   :  { %4651 = vmatprep.subr.bf16.mxu0 %v12893_v37  ;;  %4952 = vmatprep.subr.bf16.mxu1 %v12896_v38  ;;  %v12984_v37 = vld [vmem:[%s18379_s1 + $0x12d0] ss:$28 sps:$4 sm:$0xff]   ;;  %v12987_v38 = vld [vmem:[%s18379_s1 + $0x12d8] ss:$28 sps:$4 sm:$0xff]  }
 0x11f   :  { %4652 = vmatpush1.bf16.msra.mxu0 %v12891_v39  ;;  %4953 = vmatpush1.bf16.msra.mxu1 %v12894_v40  ;;  %v12992_v39 = vld [vmem:[%s18379_s1 + $0x130c] ss:$28 sps:$4 sm:$0xff]   ;;  %v12995_v40 = vld [vmem:[%s18379_s1 + $0x1314] ss:$28 sps:$4 sm:$0xff]  }
 0x120   :  { %4653 = vmatprep.subr.bf16.mxu0 %v12899_v41  ;;  %4954 = vmatprep.subr.bf16.mxu1 %v12902_v42  ;;  %v12990_v41 = vld [vmem:[%s18379_s1 + $0x1308] ss:$28 sps:$4 sm:$0xff]   ;;  %v12993_v42 = vld [vmem:[%s18379_s1 + $0x1310] ss:$28 sps:$4 sm:$0xff]  }
 0x123   :  { %4654 = vmatpush1.bf16.msra.mxu0 %v12897_v43  ;;  %4955 = vmatpush1.bf16.msra.mxu1 %v12900_v44  ;;  %v12998_v43 = vld [vmem:[%s18379_s1 + $0x1344] ss:$28 sps:$4 sm:$0xff]   ;;  %v13001_v44 = vld [vmem:[%s18379_s1 + $0x134c] ss:$28 sps:$4 sm:$0xff]  }
 0x124   :  { %4655 = vmatprep.subr.bf16.mxu0 %v12905_v45  ;;  %4956 = vmatprep.subr.bf16.mxu1 %v12908_v46  ;;  %v12996_v45 = vld [vmem:[%s18379_s1 + $0x1340] ss:$28 sps:$4 sm:$0xff]   ;;  %v12999_v46 = vld [vmem:[%s18379_s1 + $0x1348] ss:$28 sps:$4 sm:$0xff]  }
 0x127   :  { %4656 = vmatpush1.bf16.msra.mxu0 %v12903_v47  ;;  %4957 = vmatpush1.bf16.msra.mxu1 %v12906_v48  ;;  %v13004_v47 = vld [vmem:[%s18379_s1 + $0x137c] ss:$28 sps:$4 sm:$0xff]   ;;  %v13007_v48 = vld [vmem:[%s18379_s1 + $0x1384] ss:$28 sps:$4 sm:$0xff]  }
 0x128   :  { %4657 = vmatprep.subr.bf16.mxu0 %v12911_v49  ;;  %4958 = vmatprep.subr.bf16.mxu1 %v12914_v50  ;;  %v13002_v49 = vld [vmem:[%s18379_s1 + $0x1378] ss:$28 sps:$4 sm:$0xff]   ;;  %v13005_v50 = vld [vmem:[%s18379_s1 + $0x1380] ss:$28 sps:$4 sm:$0xff]  }
 0x12b   :  { %4658 = vmatpush1.bf16.msra.mxu0 %v12909_v51  ;;  %4959 = vmatpush1.bf16.msra.mxu1 %v12912_v52  ;;  %v13010_v51 = vld [vmem:[%s18379_s1 + $0x13b4] ss:$28 sps:$4 sm:$0xff]   ;;  %v13013_v52 = vld [vmem:[%s18379_s1 + $0x13bc] ss:$28 sps:$4 sm:$0xff]  }
 0x12c   :  { %4659 = vmatprep.subr.bf16.mxu0 %v12917_v53  ;;  %4960 = vmatprep.subr.bf16.mxu1 %v12920_v54  ;;  %v13008_v53 = vld [vmem:[%s18379_s1 + $0x13b0] ss:$28 sps:$4 sm:$0xff]   ;;  %v13011_v54 = vld [vmem:[%s18379_s1 + $0x13b8] ss:$28 sps:$4 sm:$0xff]  }
 0x12f   :  { %4660 = vmatpush1.bf16.msra.mxu0 %v12915_v55  ;;  %4961 = vmatpush1.bf16.msra.mxu1 %v12918_v56  ;;  %v13016_v55 = vld [vmem:[%s18379_s1 + $0x13ec] ss:$28 sps:$4 sm:$0xff]   ;;  %v13019_v56 = vld [vmem:[%s18379_s1 + $0x13f4] ss:$28 sps:$4 sm:$0xff]  }
 0x130   :  { %4661 = vmatprep.subr.bf16.mxu0 %v12923_v57  ;;  %4962 = vmatprep.subr.bf16.mxu1 %v12926_v58  ;;  %v13014_v57 = vld [vmem:[%s18379_s1 + $0x13e8] ss:$28 sps:$4 sm:$0xff]   ;;  %v13017_v58 = vld [vmem:[%s18379_s1 + $0x13f0] ss:$28 sps:$4 sm:$0xff]  }
 0x133   :  { %4662 = vmatpush1.bf16.msra.mxu0 %v12921_v59  ;;  %4963 = vmatpush1.bf16.msra.mxu1 %v12924_v60  ;;  %v13022_v59 = vld [vmem:[%s18379_s1 + $0x1424] ss:$28 sps:$4 sm:$0xff]   ;;  %v13025_v60 = vld [vmem:[%s18379_s1 + $0x142c] ss:$28 sps:$4 sm:$0xff]  }
 0x134   :  { %4663 = vmatprep.subr.bf16.mxu0 %v12929_v61  ;;  %4964 = vmatprep.subr.bf16.mxu1 %v12932_v62  ;;  %v13020_v61 = vld [vmem:[%s18379_s1 + $0x1420] ss:$28 sps:$4 sm:$0xff]   ;;  %v13023_v62 = vld [vmem:[%s18379_s1 + $0x1428] ss:$28 sps:$4 sm:$0xff]  }
 0x137   :  { %4664 = vmatpush1.bf16.msra.mxu0 %v12927_v63  ;;  %4965 = vmatpush1.bf16.msra.mxu1 %v12930_v0  ;;  %v13028_v63 = vld [vmem:[%s18379_s1 + $0x145c] ss:$28 sps:$4 sm:$0xff]   ;;  %v13031_v0 = vld [vmem:[%s18379_s1 + $0x1464] ss:$28 sps:$4 sm:$0xff]  }
 0x138   :  { %4665 = vmatprep.subr.bf16.mxu0 %v12935_v1  ;;  %4966 = vmatprep.subr.bf16.mxu1 %v12938_v2  ;;  %v13026_v1 = vld [vmem:[%s18379_s1 + $0x1458] ss:$28 sps:$4 sm:$0xff]   ;;  %v13029_v2 = vld [vmem:[%s18379_s1 + $0x1460] ss:$28 sps:$4 sm:$0xff]  }
 0x13b   :  { %4666 = vmatpush1.bf16.msra.mxu0 %v12933_v3  ;;  %4967 = vmatpush1.bf16.msra.mxu1 %v12936_v4  ;;  %v13034_v3 = vld [vmem:[%s18379_s1 + $0x1494] ss:$28 sps:$4 sm:$0xff]   ;;  %v13037_v4 = vld [vmem:[%s18379_s1 + $0x149c] ss:$28 sps:$4 sm:$0xff]  }
 0x13c   :  { %4667 = vmatprep.subr.bf16.mxu0 %v12941_v5  ;;  %4968 = vmatprep.subr.bf16.mxu1 %v12944_v6  ;;  %v13032_v5 = vld [vmem:[%s18379_s1 + $0x1490] ss:$28 sps:$4 sm:$0xff]   ;;  %v13035_v6 = vld [vmem:[%s18379_s1 + $0x1498] ss:$28 sps:$4 sm:$0xff]  }
 0x13f   :  { %4668 = vmatpush1.bf16.msra.mxu0 %v12939_v7  ;;  %4969 = vmatpush1.bf16.msra.mxu1 %v12942_v8  ;;  %v13040_v7 = vld [vmem:[%s18379_s1 + $0x14cc] ss:$28 sps:$4 sm:$0xff]   ;;  %v13043_v8 = vld [vmem:[%s18379_s1 + $0x14d4] ss:$28 sps:$4 sm:$0xff]  }
 0x140   :  { %4680 = vmatprep.subr.bf16.mxu0 %v12949_v9  ;;  %4981 = vmatprep.subr.bf16.mxu1 %v12952_v10  ;;  %v13038_v9 = vld [vmem:[%s18379_s1 + $0x14c8] ss:$28 sps:$4 sm:$0xff]   ;;  %v13041_v10 = vld [vmem:[%s18379_s1 + $0x14d0] ss:$28 sps:$4 sm:$0xff]  }
 0x142   :  { %4670 = vmatmul.mubr.bf16.vlgmr.msra.gmra.mrb[0].mxu0 %v12953_v12  ;;  %4971 = vmatmul.mubr.bf16.vlgmr.msra.gmra.mrb[0].mxu1 %v12953_v12  ;;  %v13046_v12 = vld [vmem:[%s18380_s0 + $0x28] ss:$52 sps:$4 sm:$0xff]  }
 0x143   :  { %4681 = vmatpush1.bf16.msra.mxu0 %v12947_v11  ;;  %4982 = vmatpush1.bf16.msra.mxu1 %v12950_v13  ;;  %v13049_v11 = vld [vmem:[%s18379_s1 + $0x1504] ss:$28 sps:$4 sm:$0xff]   ;;  %v13052_v13 = vld [vmem:[%s18379_s1 + $0x150c] ss:$28 sps:$4 sm:$0xff]  }
 0x144   :  { %4682 = vmatprep.subr.bf16.mxu0 %v12956_v14  ;;  %4983 = vmatprep.subr.bf16.mxu1 %v12959_v15  ;;  %v13047_v14 = vld [vmem:[%s18379_s1 + $0x1500] ss:$28 sps:$4 sm:$0xff]   ;;  %v13050_v15 = vld [vmem:[%s18379_s1 + $0x1508] ss:$28 sps:$4 sm:$0xff]  }
 0x145   :  { %4712 = vmatprep.mubr.bf16.mxu0 %v13044_v17  ;;  %5013 = vmatprep.mubr.bf16.mxu1 %v13044_v17  ;;  %v13058_v17 = vld [vmem:[%s18379_s1 + $0x1544] ss:$28 sps:$4 sm:$0xff]  }
 0x147   :  { %4683 = vmatpush1.bf16.msra.mxu0 %v12954_v16  ;;  %4984 = vmatpush1.bf16.msra.mxu1 %v12957_v18  ;;  %v13055_v16 = vld [vmem:[%s18379_s1 + $0x153c] ss:$28 sps:$4 sm:$0xff]  }
 0x148   :  { %4684 = vmatprep.subr.bf16.mxu0 %v12962_v19  ;;  %4985 = vmatprep.subr.bf16.mxu1 %v12965_v20  ;;  %v13053_v18 = vld [vmem:[%s18379_s1 + $0x1538] ss:$28 sps:$4 sm:$0xff]   ;;  %v13056_v19 = vld [vmem:[%s18379_s1 + $0x1540] ss:$28 sps:$4 sm:$0xff]  }
 0x149   :  { %v13061_v20 = vld [vmem:[%s18379_s1 + $0x14] ss:$28 sps:$4 sm:$0xff]  }
 0x14b   :  { %4685 = vmatpush1.bf16.msra.mxu0 %v12960_v21  ;;  %4986 = vmatpush1.bf16.msra.mxu1 %v12963_v22  ;;  %v13062_v21 = vld [vmem:[%s18379_s1 + $0x1d8] ss:$28 sps:$4 sm:$0xff]   ;;  %v14243_v22 = vmov 0  }
 0x14c   :  { %4686 = vmatprep.subr.bf16.mxu0 %v12968_v23  ;;  %4987 = vmatprep.subr.bf16.mxu1 %v12971_v24  ;;  %v13059_v23 = vld [vmem:[%s18379_s1 + $0x10] ss:$28 sps:$4 sm:$0xff]  }
 0x14d   :  { %v13063_v24 = vld [vmem:[%s18380_s0 + $0x30] ss:$52 sps:$4 sm:$0xff]  }
 0x14f   :  { %4687 = vmatpush1.bf16.msra.mxu0 %v12966_v25  ;;  %4988 = vmatpush1.bf16.msra.mxu1 %v12969_v26  ;;  %v13064_v25 = vld [vmem:[%s18379_s1 + $0x18] ss:$28 sps:$4 sm:$0xff]   ;;  %v13067_v26 = vld [vmem:[%s18379_s1 + $0x4c] ss:$28 sps:$4 sm:$0xff]  }
 0x150   :  { %4688 = vmatprep.subr.bf16.mxu0 %v12974_v27  ;;  %4989 = vmatprep.subr.bf16.mxu1 %v12977_v28  ;;  %v13068_v27 = vld [vmem:[%s18379_s1 + $0x210] ss:$28 sps:$4 sm:$0xff]   ;;  %v13065_v28 = vld [vmem:[%s18379_s1 + $0x48] ss:$28 sps:$4 sm:$0xff]  }
 0x153   :  { %4689 = vmatpush1.bf16.msra.mxu0 %v12972_v29  ;;  %4990 = vmatpush1.bf16.msra.mxu1 %v12975_v30  ;;  %v13069_v29 = vld [vmem:[%s18379_s1 + $0x50] ss:$28 sps:$4 sm:$0xff]   ;;  %v13072_v30 = vld [vmem:[%s18379_s1 + $0x84] ss:$28 sps:$4 sm:$0xff]  }
 0x154   :  { %4690 = vmatprep.subr.bf16.mxu0 %v12980_v31  ;;  %4991 = vmatprep.subr.bf16.mxu1 %v12983_v32  ;;  %v13073_v31 = vld [vmem:[%s18379_s1 + $0x248] ss:$28 sps:$4 sm:$0xff]   ;;  %v13070_v32 = vld [vmem:[%s18379_s1 + $0x80] ss:$28 sps:$4 sm:$0xff]  }
 0x157   :  { %4691 = vmatpush1.bf16.msra.mxu0 %v12978_v33  ;;  %4992 = vmatpush1.bf16.msra.mxu1 %v12981_v34  ;;  %v14229_v33 = vld [vmem:[%s18380_s0 + $0x4] ss:$52 sps:$4 sm:$0xff]  }
 0x158   :  { %4692 = vmatprep.subr.bf16.mxu0 %v12986_v35  ;;  %4993 = vmatprep.subr.bf16.mxu1 %v12989_v36  ;;  %v13074_v34 = vld [vmem:[%s18379_s1 + $0x88] ss:$28 sps:$4 sm:$0xff]   ;;  %v13077_v35 = vld [vmem:[%s18379_s1 + $0xbc] ss:$28 sps:$4 sm:$0xff]  }
 0x159   :  { %v13078_v36 = vld [vmem:[%s18379_s1 + $0x280] ss:$28 sps:$4 sm:$0xff]  }
 0x15b   :  { %4693 = vmatpush1.bf16.msra.mxu0 %v12984_v37  ;;  %4994 = vmatpush1.bf16.msra.mxu1 %v12987_v38  ;;  %v13075_v37 = vld [vmem:[%s18379_s1 + $0xb8] ss:$28 sps:$4 sm:$0xff]   ;;  %v13079_v38 = vld [vmem:[%s18379_s1 + $0xc0] ss:$28 sps:$4 sm:$0xff]  }
 0x15c   :  { %4694 = vmatprep.subr.bf16.mxu0 %v12992_v39  ;;  %4995 = vmatprep.subr.bf16.mxu1 %v12995_v40  ;;  %v13082_v39 = vld [vmem:[%s18379_s1 + $0xf4] ss:$28 sps:$4 sm:$0xff]  }
 0x15d   :  { %v13083_v40 = vld [vmem:[%s18379_s1 + $0x2b8] ss:$28 sps:$4 sm:$0xff]  }
 0x15f   :  { %4695 = vmatpush1.bf16.msra.mxu0 %v12990_v41  ;;  %4996 = vmatpush1.bf16.msra.mxu1 %v12993_v42  ;;  %v13080_v41 = vld [vmem:[%s18379_s1 + $0xf0] ss:$28 sps:$4 sm:$0xff]   ;;  %v13084_v42 = vld [vmem:[%s18379_s1 + $0xf8] ss:$28 sps:$4 sm:$0xff]  }
 0x160   :  { %4696 = vmatprep.subr.bf16.mxu0 %v12998_v43  ;;  %4997 = vmatprep.subr.bf16.mxu1 %v13001_v44  ;;  %v13087_v43 = vld [vmem:[%s18379_s1 + $0x12c] ss:$28 sps:$4 sm:$0xff]  }
 0x161   :  { %v13088_v44 = vld [vmem:[%s18379_s1 + $0x2f0] ss:$28 sps:$4 sm:$0xff]  }
 0x163   :  { %4697 = vmatpush1.bf16.msra.mxu0 %v12996_v45  ;;  %4998 = vmatpush1.bf16.msra.mxu1 %v12999_v46  ;;  %v13085_v45 = vld [vmem:[%s18379_s1 + $0x128] ss:$28 sps:$4 sm:$0xff]   ;;  %v13089_v46 = vld [vmem:[%s18379_s1 + $0x130] ss:$28 sps:$4 sm:$0xff]  }
 0x164   :  { %4698 = vmatprep.subr.bf16.mxu0 %v13004_v47  ;;  %4999 = vmatprep.subr.bf16.mxu1 %v13007_v48  ;;  %v13092_v47 = vld [vmem:[%s18379_s1 + $0x164] ss:$28 sps:$4 sm:$0xff]  }
 0x165   :  { %v13093_v48 = vld [vmem:[%s18379_s1 + $0x328] ss:$28 sps:$4 sm:$0xff]  }
 0x167   :  { %4699 = vmatpush1.bf16.msra.mxu0 %v13002_v49  ;;  %5000 = vmatpush1.bf16.msra.mxu1 %v13005_v50  ;;  %v13090_v49 = vld [vmem:[%s18379_s1 + $0x160] ss:$28 sps:$4 sm:$0xff]   ;;  %v13094_v50 = vld [vmem:[%s18379_s1 + $0x168] ss:$28 sps:$4 sm:$0xff]  }
 0x168   :  { %4700 = vmatprep.subr.bf16.mxu0 %v13010_v51  ;;  %5001 = vmatprep.subr.bf16.mxu1 %v13013_v52  ;;  %v13097_v51 = vld [vmem:[%s18379_s1 + $0x19c] ss:$28 sps:$4 sm:$0xff]  }
 0x169   :  { %v13098_v52 = vld [vmem:[%s18379_s1 + $0x360] ss:$28 sps:$4 sm:$0xff]  }
 0x16b   :  { %4701 = vmatpush1.bf16.msra.mxu0 %v13008_v53  ;;  %5002 = vmatpush1.bf16.msra.mxu1 %v13011_v54  ;;  %v13095_v53 = vld [vmem:[%s18379_s1 + $0x198] ss:$28 sps:$4 sm:$0xff]   ;;  %v13099_v54 = vld [vmem:[%s18379_s1 + $0x1a0] ss:$28 sps:$4 sm:$0xff]  }
 0x16c   :  { %4702 = vmatprep.subr.bf16.mxu0 %v13016_v55  ;;  %5003 = vmatprep.subr.bf16.mxu1 %v13019_v56  ;;  %v13102_v55 = vld [vmem:[%s18379_s1 + $0x1d4] ss:$28 sps:$4 sm:$0xff]  }
 0x16d   :  { %v13103_v56 = vld [vmem:[%s18379_s1 + $0x558] ss:$28 sps:$4 sm:$0xff]  }
 0x16f   :  { %4703 = vmatpush1.bf16.msra.mxu0 %v13014_v57  ;;  %5004 = vmatpush1.bf16.msra.mxu1 %v13017_v58  ;;  %v13100_v57 = vld [vmem:[%s18379_s1 + $0x1d0] ss:$28 sps:$4 sm:$0xff]   ;;  %v13104_v58 = vld [vmem:[%s18379_s1 + $0x398] ss:$28 sps:$4 sm:$0xff]  }
 0x170   :  { %4704 = vmatprep.subr.bf16.mxu0 %v13022_v59  ;;  %5005 = vmatprep.subr.bf16.mxu1 %v13025_v60  ;;  %v13107_v59 = vld [vmem:[%s18379_s1 + $0x20c] ss:$28 sps:$4 sm:$0xff]  }
 0x171   :  { %v13108_v60 = vld [vmem:[%s18379_s1 + $0x590] ss:$28 sps:$4 sm:$0xff]  }
 0x173   :  { %4705 = vmatpush1.bf16.msra.mxu0 %v13020_v61  ;;  %5006 = vmatpush1.bf16.msra.mxu1 %v13023_v62  ;;  %v13105_v61 = vld [vmem:[%s18379_s1 + $0x208] ss:$28 sps:$4 sm:$0xff]   ;;  %v15638_v62 = vld [vmem:[%s18380_s0] ss:$52 sps:$4 sm:$0xff]  }
 0x174   :  { %4706 = vmatprep.subr.bf16.mxu0 %v13028_v63  ;;  %5007 = vmatprep.subr.bf16.mxu1 %v13031_v0  ;;  %v13109_v63 = vld [vmem:[%s18379_s1 + $0x3d0] ss:$28 sps:$4 sm:$0xff]   ;;  %v13112_v0 = vld [vmem:[%s18379_s1 + $0x244] ss:$28 sps:$4 sm:$0xff]  }
 0x177   :  { %4707 = vmatpush1.bf16.msra.mxu0 %v13026_v1  ;;  %5008 = vmatpush1.bf16.msra.mxu1 %v13029_v2  ;;  %v13113_v1 = vld [vmem:[%s18379_s1 + $0x5c8] ss:$28 sps:$4 sm:$0xff]   ;;  %v13110_v2 = vld [vmem:[%s18379_s1 + $0x240] ss:$28 sps:$4 sm:$0xff]  }
 0x178   :  { %4708 = vmatprep.subr.bf16.mxu0 %v13034_v3  ;;  %5009 = vmatprep.subr.bf16.mxu1 %v13037_v4  ;;  %v15656_v3 = vld [vmem:[%s18380_s0 + $0xc] ss:$52 sps:$4 sm:$0xff]   ;;  %v13114_v4 = vld [vmem:[%s18379_s1 + $0x408] ss:$28 sps:$4 sm:$0xff]  }
 0x17b   :  { %4709 = vmatpush1.bf16.msra.mxu0 %v13032_v5  ;;  %5010 = vmatpush1.bf16.msra.mxu1 %v13035_v6  ;;  %v13117_v5 = vld [vmem:[%s18379_s1 + $0x27c] ss:$28 sps:$4 sm:$0xff]  }
 0x17c   :  { %4710 = vmatprep.subr.bf16.mxu0 %v13040_v7  ;;  %5011 = vmatprep.subr.bf16.mxu1 %v13043_v8  ;;  %v13118_v6 = vld [vmem:[%s18379_s1 + $0x600] ss:$28 sps:$4 sm:$0xff]   ;;  %v13115_v7 = vld [vmem:[%s18379_s1 + $0x278] ss:$28 sps:$4 sm:$0xff]  }
 0x17d   :  { %v13119_v8 = vld [vmem:[%s18379_s1 + $0x440] ss:$28 sps:$4 sm:$0xff]  }
 0x17f   :  { %4711 = vmatpush1.bf16.msra.mxu0 %v13038_v9  ;;  %5012 = vmatpush1.bf16.msra.mxu1 %v13041_v10  ;;  %v13122_v9 = vld [vmem:[%s18379_s1 + $0x2b4] ss:$28 sps:$4 sm:$0xff]  }
 0x180   :  { %4723 = vmatprep.subr.bf16.mxu0 %v13049_v11  ;;  %5024 = vmatprep.subr.bf16.mxu1 %v13052_v13  ;;  %v13123_v10 = vld [vmem:[%s18379_s1 + $0x638] ss:$28 sps:$4 sm:$0xff]   ;;  %v13120_v11 = vld [vmem:[%s18379_s1 + $0x2b0] ss:$28 sps:$4 sm:$0xff]  }
 0x181   :  { %v13127_v13 = vld [vmem:[%s18379_s1 + $0x2ec] ss:$28 sps:$4 sm:$0xff]  }
 0x182   :  { %4713 = vmatmul.mubr.bf16.vlgmr.msra.gmra.mrb[0].mxu0 %v13046_v12  ;;  %5014 = vmatmul.mubr.bf16.vlgmr.msra.gmra.mrb[0].mxu1 %v13046_v12  ;;  %v13124_v12 = vld [vmem:[%s18379_s1 + $0x478] ss:$28 sps:$4 sm:$0xff]  }
 0x183   :  { %4724 = vmatpush1.bf16.msra.mxu0 %v13047_v14  ;;  %5025 = vmatpush1.bf16.msra.mxu1 %v13050_v15  ;;  %v13128_v14 = vld [vmem:[%s18379_s1 + $0x670] ss:$28 sps:$4 sm:$0xff]   ;;  %v13125_v15 = vld [vmem:[%s18379_s1 + $0x2e8] ss:$28 sps:$4 sm:$0xff]  }
 0x184   :  { %4725 = vmatprep.subr.bf16.mxu0 %v13055_v16  ;;  %5026 = vmatprep.subr.bf16.mxu1 %v13058_v17  ;;  %v13129_v16 = vld [vmem:[%s18379_s1 + $0x4b0] ss:$28 sps:$4 sm:$0xff]   ;;  %v13132_v17 = vld [vmem:[%s18379_s1 + $0x324] ss:$28 sps:$4 sm:$0xff]  }
 0x185   :  { %4755 = vmatprep.mubr.bf16.mxu0 %v14243_v22  ;;  %5056 = vmatprep.mubr.bf16.mxu1 %v14243_v22 }
 0x187   :  { %4726 = vmatpush1.bf16.msra.mxu0 %v13053_v18  ;;  %5027 = vmatpush1.bf16.msra.mxu1 %v13056_v19  ;;  %v13133_v18 = vld [vmem:[%s18379_s1 + $0x6a8] ss:$28 sps:$4 sm:$0xff]   ;;  %v13130_v19 = vld [vmem:[%s18379_s1 + $0x320] ss:$28 sps:$4 sm:$0xff]  }
 0x188   :  { %5067 = vmatprep.subr.bf16.mxu0 %v13061_v20  ;;  %11934 = vmatprep.subr.bf16.mxu1 %v13062_v21  ;;  %v13134_v20 = vld [vmem:[%s18379_s1 + $0x4e8] ss:$28 sps:$4 sm:$0xff]   ;;  %v13137_v21 = vld [vmem:[%s18379_s1 + $0x35c] ss:$28 sps:$4 sm:$0xff]  }
 0x18e   :  { %11352 = vmatmul.mubr.msk.bf16.vlgmr.msra.gmra.mrb[0].mxu0 %vm4461_vm0, %v13063_v24  ;;  %11353 = vmatmul.mubr.msk.bf16.vlgmr.msra.gmra.mrb[0].mxu1 %vm4461_vm0, %v13063_v24  ;;  %v13135_v24 = vld [vmem:[%s18379_s1 + $0x358] ss:$28 sps:$4 sm:$0xff]  }
 0x18f   :  { %5068 = vmatpush1.bf16.msra.mxu0 %v13059_v23  ;;  %11935 = vmatpush3.bf16.msra.mxu1 %v13064_v25  ;;  %v13138_v23 = vld [vmem:[%s18379_s1 + $0x6e0] ss:$28 sps:$4 sm:$0xff]  }
 0x190   :  { %5069 = vmatprep.subr.bf16.mxu0 %v13067_v26  ;;  %11936 = vmatprep.subr.bf16.mxu1 %v13068_v27  ;;  %v13139_v25 = vld [vmem:[%s18379_s1 + $0x520] ss:$28 sps:$4 sm:$0xff]   ;;  %v13142_v26 = vld [vmem:[%s18379_s1 + $0x394] ss:$28 sps:$4 sm:$0xff]  }
 0x191   :  { %5400 = vmatprep.mubr.bf16.mxu1 %v14229_v33  ;;  %5099 = vmatprep.mubr.bf16.mxu0 %v14229_v33  ;;  %v13143_v27 = vld [vmem:[%s18379_s1 + $0x8d8] ss:$28 sps:$4 sm:$0xff]   ;;  %v13149_v33 = vld [vmem:[%s18379_s1 + $0x750] ss:$28 sps:$4 sm:$0xff]  }
 0x193   :  { %5070 = vmatpush1.bf16.msra.mxu0 %v13065_v28  ;;  %11937 = vmatpush3.bf16.msra.mxu1 %v13069_v29  ;;  %v13140_v28 = vld [vmem:[%s18379_s1 + $0x390] ss:$28 sps:$4 sm:$0xff]   ;;  %v13144_v29 = vld [vmem:[%s18379_s1 + $0x718] ss:$28 sps:$4 sm:$0xff]  }
 0x194   :  { %5071 = vmatprep.subr.bf16.mxu0 %v13072_v30  ;;  %11938 = vmatprep.subr.bf16.mxu1 %v13073_v31  ;;  %v13147_v30 = vld [vmem:[%s18379_s1 + $0x3cc] ss:$28 sps:$4 sm:$0xff]  }
 0x195   :  { %v13148_v31 = vld [vmem:[%s18379_s1 + $0x910] ss:$28 sps:$4 sm:$0xff]  }
 0x197   :  { %5072 = vmatpush1.bf16.msra.mxu0 %v13070_v32  ;;  %11939 = vmatpush3.bf16.msra.mxu1 %v13074_v34  ;;  %v13145_v32 = vld [vmem:[%s18379_s1 + $0x3c8] ss:$28 sps:$4 sm:$0xff]  }
 0x198   :  { %5073 = vmatprep.subr.bf16.mxu0 %v13077_v35  ;;  %11940 = vmatprep.subr.bf16.mxu1 %v13078_v36  ;;  %v15750_v34 = vld [vmem:[%s18380_s0 + $0x8] ss:$52 sps:$4 sm:$0xff]   ;;  %v13152_v35 = vld [vmem:[%s18379_s1 + $0x404] ss:$28 sps:$4 sm:$0xff]  }
 0x199   :  { %v13153_v36 = vld [vmem:[%s18379_s1 + $0x948] ss:$28 sps:$4 sm:$0xff]  }
 0x19b   :  { %5074 = vmatpush1.bf16.msra.mxu0 %v13075_v37  ;;  %11941 = vmatpush3.bf16.msra.mxu1 %v13079_v38  ;;  %v15762_v37 = vld [vmem:[%s18380_s0 + $0x14] ss:$52 sps:$4 sm:$0xff]   ;;  %v13150_v38 = vld [vmem:[%s18379_s1 + $0x400] ss:$28 sps:$4 sm:$0xff]  }
 0x19c   :  { %5075 = vmatprep.subr.bf16.mxu0 %v13082_v39  ;;  %11942 = vmatprep.subr.bf16.mxu1 %v13083_v40  ;;  %v13154_v39 = vld [vmem:[%s18379_s1 + $0x788] ss:$28 sps:$4 sm:$0xff]   ;;  %v13157_v40 = vld [vmem:[%s18379_s1 + $0x43c] ss:$28 sps:$4 sm:$0xff]  }
 0x19f   :  { %5076 = vmatpush1.bf16.msra.mxu0 %v13080_v41  ;;  %11943 = vmatpush3.bf16.msra.mxu1 %v13084_v42  ;;  %v13158_v41 = vld [vmem:[%s18379_s1 + $0x980] ss:$28 sps:$4 sm:$0xff]   ;;  %v13155_v42 = vld [vmem:[%s18379_s1 + $0x438] ss:$28 sps:$4 sm:$0xff]  }
 0x1a0   :  { %5077 = vmatprep.subr.bf16.mxu0 %v13087_v43  ;;  %11944 = vmatprep.subr.bf16.mxu1 %v13088_v44  ;;  %v13159_v43 = vld [vmem:[%s18379_s1 + $0x7c0] ss:$28 sps:$4 sm:$0xff]   ;;  %v13162_v44 = vld [vmem:[%s18379_s1 + $0x474] ss:$28 sps:$4 sm:$0xff]  }
 0x1a3   :  { %5078 = vmatpush1.bf16.msra.mxu0 %v13085_v45  ;;  %11945 = vmatpush3.bf16.msra.mxu1 %v13089_v46  ;;  %v13163_v45 = vld [vmem:[%s18379_s1 + $0x9b8] ss:$28 sps:$4 sm:$0xff]   ;;  %v13160_v46 = vld [vmem:[%s18379_s1 + $0x470] ss:$28 sps:$4 sm:$0xff]  }
 0x1a4   :  { %5079 = vmatprep.subr.bf16.mxu0 %v13092_v47  ;;  %11946 = vmatprep.subr.bf16.mxu1 %v13093_v48  ;;  %v13164_v47 = vld [vmem:[%s18379_s1 + $0x7f8] ss:$28 sps:$4 sm:$0xff]   ;;  %v13167_v48 = vld [vmem:[%s18379_s1 + $0x4ac] ss:$28 sps:$4 sm:$0xff]  }
 0x1a7   :  { %5080 = vmatpush1.bf16.msra.mxu0 %v13090_v49  ;;  %11947 = vmatpush3.bf16.msra.mxu1 %v13094_v50  ;;  %v13168_v49 = vld [vmem:[%s18379_s1 + $0x9f0] ss:$28 sps:$4 sm:$0xff]   ;;  %v13165_v50 = vld [vmem:[%s18379_s1 + $0x4a8] ss:$28 sps:$4 sm:$0xff]  }
 0x1a8   :  { %5081 = vmatprep.subr.bf16.mxu0 %v13097_v51  ;;  %11948 = vmatprep.subr.bf16.mxu1 %v13098_v52  ;;  %v13169_v51 = vld [vmem:[%s18379_s1 + $0x830] ss:$28 sps:$4 sm:$0xff]   ;;  %v13172_v52 = vld [vmem:[%s18379_s1 + $0x4e4] ss:$28 sps:$4 sm:$0xff]  }
 0x1ab   :  { %5082 = vmatpush1.bf16.msra.mxu0 %v13095_v53  ;;  %11949 = vmatpush3.bf16.msra.mxu1 %v13099_v54  ;;  %v13173_v53 = vld [vmem:[%s18379_s1 + $0xa28] ss:$28 sps:$4 sm:$0xff]   ;;  %v13170_v54 = vld [vmem:[%s18379_s1 + $0x4e0] ss:$28 sps:$4 sm:$0xff]  }
 0x1ac   :  { %5083 = vmatprep.subr.bf16.mxu0 %v13102_v55  ;;  %11956 = vmatprep.subr.bf16.mxu1 %v13103_v56  ;;  %v13174_v55 = vld [vmem:[%s18379_s1 + $0x868] ss:$28 sps:$4 sm:$0xff]   ;;  %v13177_v56 = vld [vmem:[%s18379_s1 + $0x51c] ss:$28 sps:$4 sm:$0xff]  }
 0x1ae   :  { %5401 = vmatmul.mubr.bf16.vlgmr.msra.gmra.mrb[4].mxu1 %v15638_v62 }
 0x1af   :  { %5084 = vmatpush1.bf16.msra.mxu0 %v13100_v57  ;;  %11957 = vmatpush3.bf16.msra.mxu1 %v13104_v58  ;;  %v13178_v57 = vld [vmem:[%s18379_s1 + $0xa60] ss:$28 sps:$4 sm:$0xff]   ;;  %v13175_v58 = vld [vmem:[%s18379_s1 + $0x518] ss:$28 sps:$4 sm:$0xff]  }
 0x1b0   :  { %5085 = vmatprep.subr.bf16.mxu0 %v13107_v59  ;;  %11958 = vmatprep.subr.bf16.mxu1 %v13108_v60  ;;  %v13179_v59 = vld [vmem:[%s18379_s1 + $0x8a0] ss:$28 sps:$4 sm:$0xff]   ;;  %v13182_v60 = vld [vmem:[%s18379_s1 + $0x554] ss:$28 sps:$4 sm:$0xff]  }
 0x1b1   :  { %5441 = vmatprep.mubr.bf16.mxu1 %v15656_v3 }
 0x1b3   :  { %5086 = vmatpush1.bf16.msra.mxu0 %v13105_v61  ;;  %11959 = vmatpush3.bf16.msra.mxu1 %v13109_v63  ;;  %v13183_v61 = vld [vmem:[%s18379_s1 + $0xc58] ss:$28 sps:$4 sm:$0xff]  }
 0x1b4   :  { %5087 = vmatprep.subr.bf16.mxu0 %v13112_v0  ;;  %11960 = vmatprep.subr.bf16.mxu1 %v13113_v1  ;;  %v13184_v63 = vld [vmem:[%s18379_s1 + $0xa98] ss:$28 sps:$4 sm:$0xff]   ;;  %v13187_v0 = vld [vmem:[%s18379_s1 + $0x58c] ss:$28 sps:$4 sm:$0xff]  }
 0x1b5   :  { %v13188_v1 = vld [vmem:[%s18379_s1 + $0xc90] ss:$28 sps:$4 sm:$0xff]  }
 0x1b7   :  { %5088 = vmatpush1.bf16.msra.mxu0 %v13110_v2  ;;  %11961 = vmatpush3.bf16.msra.mxu1 %v13114_v4  ;;  %v15853_v2 = vld [vmem:[%s18380_s0 + $0x10] ss:$52 sps:$4 sm:$0xff]  }
 0x1b8   :  { %5089 = vmatprep.subr.bf16.mxu0 %v13117_v5  ;;  %11962 = vmatprep.subr.bf16.mxu1 %v13118_v6  ;;  %v13189_v4 = vld [vmem:[%s18379_s1 + $0xad0] ss:$28 sps:$4 sm:$0xff]   ;;  %v13192_v5 = vld [vmem:[%s18379_s1 + $0x5c4] ss:$28 sps:$4 sm:$0xff]  }
 0x1b9   :  { %v13193_v6 = vld [vmem:[%s18379_s1 + $0xcc8] ss:$28 sps:$4 sm:$0xff]  }
 0x1bb   :  { %5090 = vmatpush1.bf16.msra.mxu0 %v13115_v7  ;;  %11963 = vmatpush3.bf16.msra.mxu1 %v13119_v8  ;;  %v15871_v7 = vld [vmem:[%s18380_s0 + $0x1c] ss:$52 sps:$4 sm:$0xff]  }
 0x1bc   :  { %5091 = vmatprep.subr.bf16.mxu0 %v13122_v9  ;;  %11964 = vmatprep.subr.bf16.mxu1 %v13123_v10  ;;  %v13190_v8 = vld [vmem:[%s18379_s1 + $0x5c0] ss:$28 sps:$4 sm:$0xff]   ;;  %v13194_v9 = vld [vmem:[%s18379_s1 + $0xb08] ss:$28 sps:$4 sm:$0xff]  }
 0x1bd   :  { %v13197_v10 = vld [vmem:[%s18379_s1 + $0x5fc] ss:$28 sps:$4 sm:$0xff]  }
 0x1bf   :  { %5092 = vmatpush1.bf16.msra.mxu0 %v13120_v11  ;;  %11965 = vmatpush3.bf16.msra.mxu1 %v13124_v12  ;;  %v13198_v11 = vld [vmem:[%s18379_s1 + $0xd00] ss:$28 sps:$4 sm:$0xff]   ;;  %v13195_v12 = vld [vmem:[%s18379_s1 + $0x5f8] ss:$28 sps:$4 sm:$0xff]  }
 0x1c0   :  { %5093 = vmatprep.subr.bf16.mxu0 %v13127_v13  ;;  %11966 = vmatprep.subr.bf16.mxu1 %v13128_v14  ;;  %v13199_v13 = vld [vmem:[%s18379_s1 + $0xb40] ss:$28 sps:$4 sm:$0xff]   ;;  %v13202_v14 = vld [vmem:[%s18379_s1 + $0x634] ss:$28 sps:$4 sm:$0xff]  }
 0x1c3   :  { %5094 = vmatpush1.bf16.msra.mxu0 %v13125_v15  ;;  %11967 = vmatpush3.bf16.msra.mxu1 %v13129_v16  ;;  %v13203_v15 = vld [vmem:[%s18379_s1 + $0xd38] ss:$28 sps:$4 sm:$0xff]   ;;  %v13200_v16 = vld [vmem:[%s18379_s1 + $0x630] ss:$28 sps:$4 sm:$0xff]  }
 0x1c4   :  { %5095 = vmatprep.subr.bf16.mxu0 %v13132_v17  ;;  %11968 = vmatprep.subr.bf16.mxu1 %v13133_v18  ;;  %v13204_v17 = vld [vmem:[%s18379_s1 + $0xb78] ss:$28 sps:$4 sm:$0xff]   ;;  %v13207_v18 = vld [vmem:[%s18379_s1 + $0x66c] ss:$28 sps:$4 sm:$0xff]  }
 0x1c7   :  { %5096 = vmatpush1.bf16.msra.mxu0 %v13130_v19  ;;  %11969 = vmatpush3.bf16.msra.mxu1 %v13134_v20  ;;  %v13208_v19 = vld [vmem:[%s18379_s1 + $0xd70] ss:$28 sps:$4 sm:$0xff]   ;;  %v13205_v20 = vld [vmem:[%s18379_s1 + $0x668] ss:$28 sps:$4 sm:$0xff]  }
 0x1c8   :  { %5097 = vmatprep.subr.bf16.mxu0 %v13137_v21  ;;  %11970 = vmatprep.subr.bf16.mxu1 %v13138_v23  ;;  %v13209_v21 = vld [vmem:[%s18379_s1 + $0xbb0] ss:$28 sps:$4 sm:$0xff]   ;;  %v13212_v23 = vld [vmem:[%s18379_s1 + $0x6a4] ss:$28 sps:$4 sm:$0xff]  }
 0x1cb   :  { %5098 = vmatpush1.bf16.msra.mxu0 %v13135_v24  ;;  %11971 = vmatpush3.bf16.msra.mxu1 %v13139_v25  ;;  %v13213_v24 = vld [vmem:[%s18379_s1 + $0xda8] ss:$28 sps:$4 sm:$0xff]   ;;  %v13210_v25 = vld [vmem:[%s18379_s1 + $0x6a0] ss:$28 sps:$4 sm:$0xff]  }
 0x1cc   :  { %5110 = vmatprep.subr.bf16.mxu0 %v13142_v26  ;;  %11978 = vmatprep.subr.bf16.mxu1 %v13143_v27  ;;  %v13214_v26 = vld [vmem:[%s18379_s1 + $0xbe8] ss:$28 sps:$4 sm:$0xff]   ;;  %v13217_v27 = vld [vmem:[%s18379_s1 + $0x6dc] ss:$28 sps:$4 sm:$0xff]  }
 0x1ce   :  { %5100 = vmatmul.mubr.bf16.vlgmr.msra.gmra.mrb[4].mxu0 %v15638_v62  ;;  %5442 = vmatmul.mubr.bf16.vlgmr.msra.gmra.mrb[8].mxu1 %v15750_v34  ;;  %v13180_v62 = vld [vmem:[%s18379_s1 + $0x550] ss:$28 sps:$4 sm:$0xff]  }
 0x1cf   :  { %5111 = vmatpush1.bf16.msra.mxu0 %v13140_v28  ;;  %11979 = vmatpush3.bf16.msra.mxu1 %v13144_v29  ;;  %v13218_v28 = vld [vmem:[%s18379_s1 + $0xde0] ss:$28 sps:$4 sm:$0xff]   ;;  %v13215_v29 = vld [vmem:[%s18379_s1 + $0x6d8] ss:$28 sps:$4 sm:$0xff]  }
 0x1d0   :  { %5112 = vmatprep.subr.bf16.mxu0 %v13147_v30  ;;  %11980 = vmatprep.subr.bf16.mxu1 %v13148_v31  ;;  %v13219_v30 = vld [vmem:[%s18379_s1 + $0xc20] ss:$28 sps:$4 sm:$0xff]   ;;  %v13222_v31 = vld [vmem:[%s18379_s1 + $0x714] ss:$28 sps:$4 sm:$0xff]  }
 0x1d1   :  { %5482 = vmatprep.mubr.bf16.mxu1 %v15762_v37  ;;  %5142 = vmatprep.mubr.bf16.mxu0 %v15656_v3  ;;  %v13185_v3 = vld [vmem:[%s18379_s1 + $0x588] ss:$28 sps:$4 sm:$0xff]  }
 0x1d3   :  { %5113 = vmatpush1.bf16.msra.mxu0 %v13145_v32  ;;  %11981 = vmatpush3.bf16.msra.mxu1 %v13149_v33  ;;  %v13223_v32 = vld [vmem:[%s18379_s1 + $0xfd8] ss:$28 sps:$4 sm:$0xff]   ;;  %v13220_v33 = vld [vmem:[%s18379_s1 + $0x710] ss:$28 sps:$4 sm:$0xff]  }
 0x1d4   :  { %5114 = vmatprep.subr.bf16.mxu0 %v13152_v35  ;;  %11982 = vmatprep.subr.bf16.mxu1 %v13153_v36  ;;  %v13224_v35 = vld [vmem:[%s18379_s1 + $0xe18] ss:$28 sps:$4 sm:$0xff]   ;;  %v13227_v36 = vld [vmem:[%s18379_s1 + $0x74c] ss:$28 sps:$4 sm:$0xff]  }
 0x1d7   :  { %5115 = vmatpush1.bf16.msra.mxu0 %v13150_v38  ;;  %11983 = vmatpush3.bf16.msra.mxu1 %v13154_v39  ;;  %v13228_v38 = vld [vmem:[%s18379_s1 + $0x1010] ss:$28 sps:$4 sm:$0xff]  }
 0x1d8   :  { %5116 = vmatprep.subr.bf16.mxu0 %v13157_v40  ;;  %11984 = vmatprep.subr.bf16.mxu1 %v13158_v41  ;;  %v15962_v39 = vld [vmem:[%s18380_s0 + $0x18] ss:$52 sps:$4 sm:$0xff]   ;;  %v13225_v40 = vld [vmem:[%s18379_s1 + $0x748] ss:$28 sps:$4 sm:$0xff]  }
 0x1d9   :  { %v13229_v41 = vld [vmem:[%s18379_s1 + $0xe50] ss:$28 sps:$4 sm:$0xff]  }
 0x1db   :  { %5117 = vmatpush1.bf16.msra.mxu0 %v13155_v42  ;;  %11985 = vmatpush3.bf16.msra.mxu1 %v13159_v43  ;;  %v13233_v42 = vld [vmem:[%s18379_s1 + $0x1048] ss:$28 sps:$4 sm:$0xff]   ;;  %v13230_v43 = vld [vmem:[%s18379_s1 + $0x780] ss:$28 sps:$4 sm:$0xff]  }
 0x1dc   :  { %5118 = vmatprep.subr.bf16.mxu0 %v13162_v44  ;;  %11986 = vmatprep.subr.bf16.mxu1 %v13163_v45  ;;  %v15983_v44 = vld [vmem:[%s18380_s0 + $0x24] ss:$52 sps:$4 sm:$0xff]  }
 0x1dd   :  { %v13234_v45 = vld [vmem:[%s18379_s1 + $0xe88] ss:$28 sps:$4 sm:$0xff]  }
 0x1df   :  { %5119 = vmatpush1.bf16.msra.mxu0 %v13160_v46  ;;  %11987 = vmatpush3.bf16.msra.mxu1 %v13164_v47  ;;  %v13237_v46 = vld [vmem:[%s18379_s1 + $0x7bc] ss:$28 sps:$4 sm:$0xff]  }
 0x1e0   :  { %5120 = vmatprep.subr.bf16.mxu0 %v13167_v48  ;;  %11988 = vmatprep.subr.bf16.mxu1 %v13168_v49  ;;  %v13238_v47 = vld [vmem:[%s18379_s1 + $0x1080] ss:$28 sps:$4 sm:$0xff]   ;;  %v13242_v49 = vld [vmem:[%s18379_s1 + $0x7f4] ss:$28 sps:$4 sm:$0xff]  }
 0x1e1   :  { %v13239_v48 = vld [vmem:[%s18379_s1 + $0xec0] ss:$28 sps:$4 sm:$0xff]  }
 0x1e3   :  { %5121 = vmatpush1.bf16.msra.mxu0 %v13165_v50  ;;  %11989 = vmatpush3.bf16.msra.mxu1 %v13169_v51  ;;  %v13243_v50 = vld [vmem:[%s18379_s1 + $0x10b8] ss:$28 sps:$4 sm:$0xff]   ;;  %v13240_v51 = vld [vmem:[%s18379_s1 + $0x7f0] ss:$28 sps:$4 sm:$0xff]  }
 0x1e4   :  { %5122 = vmatprep.subr.bf16.mxu0 %v13172_v52  ;;  %11990 = vmatprep.subr.bf16.mxu1 %v13173_v53  ;;  %v13244_v52 = vld [vmem:[%s18379_s1 + $0xef8] ss:$28 sps:$4 sm:$0xff]   ;;  %v13247_v53 = vld [vmem:[%s18379_s1 + $0x82c] ss:$28 sps:$4 sm:$0xff]  }
 0x1e7   :  { %5123 = vmatpush1.bf16.msra.mxu0 %v13170_v54  ;;  %11991 = vmatpush3.bf16.msra.mxu1 %v13174_v55  ;;  %v13248_v54 = vld [vmem:[%s18379_s1 + $0x10f0] ss:$28 sps:$4 sm:$0xff]   ;;  %v13245_v55 = vld [vmem:[%s18379_s1 + $0x828] ss:$28 sps:$4 sm:$0xff]  }
 0x1e8   :  { %5124 = vmatprep.subr.bf16.mxu0 %v13177_v56  ;;  %11992 = vmatprep.subr.bf16.mxu1 %v13178_v57  ;;  %v13249_v56 = vld [vmem:[%s18379_s1 + $0xf30] ss:$28 sps:$4 sm:$0xff]   ;;  %v13252_v57 = vld [vmem:[%s18379_s1 + $0x864] ss:$28 sps:$4 sm:$0xff]  }
 0x1eb   :  { %5125 = vmatpush1.bf16.msra.mxu0 %v13175_v58  ;;  %11993 = vmatpush3.bf16.msra.mxu1 %v13179_v59  ;;  %v13253_v58 = vld [vmem:[%s18379_s1 + $0x1128] ss:$28 sps:$4 sm:$0xff]   ;;  %v13250_v59 = vld [vmem:[%s18379_s1 + $0x860] ss:$28 sps:$4 sm:$0xff]  }
 0x1ec   :  { %5126 = vmatprep.subr.bf16.mxu0 %v13182_v60  ;;  %12000 = vmatprep.subr.bf16.mxu1 %v13183_v61  ;;  %v13254_v60 = vld [vmem:[%s18379_s1 + $0xf68] ss:$28 sps:$4 sm:$0xff]   ;;  %v13257_v61 = vld [vmem:[%s18379_s1 + $0x89c] ss:$28 sps:$4 sm:$0xff]  }
 0x1ee   :  { %5483 = vmatmul.mubr.bf16.vlgmr.msra.gmra.mrb[12].mxu1 %v15853_v2 }
 0x1ef   :  { %5127 = vmatpush1.bf16.msra.mxu0 %v13180_v62  ;;  %12001 = vmatpush3.bf16.msra.mxu1 %v13184_v63  ;;  %v13258_v62 = vld [vmem:[%s18379_s1 + $0x1160] ss:$28 sps:$4 sm:$0xff]   ;;  %v13255_v63 = vld [vmem:[%s18379_s1 + $0x898] ss:$28 sps:$4 sm:$0xff]  }
 0x1f0   :  { %5128 = vmatprep.subr.bf16.mxu0 %v13187_v0  ;;  %12002 = vmatprep.subr.bf16.mxu1 %v13188_v1  ;;  %v13259_v0 = vld [vmem:[%s18379_s1 + $0xfa0] ss:$28 sps:$4 sm:$0xff]   ;;  %v13262_v1 = vld [vmem:[%s18379_s1 + $0x8d4] ss:$28 sps:$4 sm:$0xff]  }
 0x1f1   :  { %5523 = vmatprep.mubr.bf16.mxu1 %v15871_v7 }
 0x1f3   :  { %5129 = vmatpush1.bf16.msra.mxu0 %v13185_v3  ;;  %12003 = vmatpush3.bf16.msra.mxu1 %v13189_v4  ;;  %v13263_v3 = vld [vmem:[%s18379_s1 + $0x1358] ss:$28 sps:$4 sm:$0xff]   ;;  %v13260_v4 = vld [vmem:[%s18379_s1 + $0x8d0] ss:$28 sps:$4 sm:$0xff]  }
 0x1f4   :  { %5130 = vmatprep.subr.bf16.mxu0 %v13192_v5  ;;  %12004 = vmatprep.subr.bf16.mxu1 %v13193_v6  ;;  %v13264_v5 = vld [vmem:[%s18379_s1 + $0x1198] ss:$28 sps:$4 sm:$0xff]   ;;  %v13267_v6 = vld [vmem:[%s18379_s1 + $0x90c] ss:$28 sps:$4 sm:$0xff]  }
 0x1f7   :  { %5131 = vmatpush1.bf16.msra.mxu0 %v13190_v8  ;;  %12005 = vmatpush3.bf16.msra.mxu1 %v13194_v9  ;;  %v13268_v8 = vld [vmem:[%s18379_s1 + $0x1390] ss:$28 sps:$4 sm:$0xff]   ;;  %v16071_v9 = vld [vmem:[%s18380_s0 + $0x20] ss:$52 sps:$4 sm:$0xff]  }
 0x1f8   :  { %5132 = vmatprep.subr.bf16.mxu0 %v13197_v10  ;;  %12006 = vmatprep.subr.bf16.mxu1 %v13198_v11  ;;  %v13265_v10 = vld [vmem:[%s18379_s1 + $0x908] ss:$28 sps:$4 sm:$0xff]   ;;  %v13269_v11 = vld [vmem:[%s18379_s1 + $0x11d0] ss:$28 sps:$4 sm:$0xff]  }
 0x1fb   :  { %5133 = vmatpush1.bf16.msra.mxu0 %v13195_v12  ;;  %12007 = vmatpush3.bf16.msra.mxu1 %v13199_v13  ;;  %v13272_v12 = vld [vmem:[%s18379_s1 + $0x944] ss:$28 sps:$4 sm:$0xff]  }
 0x1fc   :  { %5134 = vmatprep.subr.bf16.mxu0 %v13202_v14  ;;  %12008 = vmatprep.subr.bf16.mxu1 %v13203_v15  ;;  %v13273_v13 = vld [vmem:[%s18379_s1 + $0x13c8] ss:$28 sps:$4 sm:$0xff]   ;;  %v16089_v14 = vld [vmem:[%s18380_s0 + $0x2c] ss:$52 sps:$4 sm:$0xff]  }
 0x1fd   :  { %v13270_v15 = vld [vmem:[%s18379_s1 + $0x940] ss:$28 sps:$4 sm:$0xff]  }
 0x1ff   :  { %5135 = vmatpush1.bf16.msra.mxu0 %v13200_v16  ;;  %12009 = vmatpush3.bf16.msra.mxu1 %v13204_v17  ;;  %v13274_v16 = vld [vmem:[%s18379_s1 + $0x1208] ss:$28 sps:$4 sm:$0xff]   ;;  %v13277_v17 = vld [vmem:[%s18379_s1 + $0x97c] ss:$28 sps:$4 sm:$0xff]  }
 0x200   :  { %5136 = vmatprep.subr.bf16.mxu0 %v13207_v18  ;;  %12010 = vmatprep.subr.bf16.mxu1 %v13208_v19  ;;  %v13278_v18 = vld [vmem:[%s18379_s1 + $0x1400] ss:$28 sps:$4 sm:$0xff]   ;;  %v13275_v19 = vld [vmem:[%s18379_s1 + $0x978] ss:$28 sps:$4 sm:$0xff]  }
 0x203   :  { %5137 = vmatpush1.bf16.msra.mxu0 %v13205_v20  ;;  %12011 = vmatpush3.bf16.msra.mxu1 %v13209_v21  ;;  %v13279_v20 = vld [vmem:[%s18379_s1 + $0x1240] ss:$28 sps:$4 sm:$0xff]   ;;  %v13282_v21 = vld [vmem:[%s18379_s1 + $0x9b4] ss:$28 sps:$4 sm:$0xff]  }
 0x204   :  { %5138 = vmatprep.subr.bf16.mxu0 %v13212_v23  ;;  %12012 = vmatprep.subr.bf16.mxu1 %v13213_v24  ;;  %v13283_v23 = vld [vmem:[%s18379_s1 + $0x1438] ss:$28 sps:$4 sm:$0xff]   ;;  %v13280_v24 = vld [vmem:[%s18379_s1 + $0x9b0] ss:$28 sps:$4 sm:$0xff]  }
 0x207   :  { %5139 = vmatpush1.bf16.msra.mxu0 %v13210_v25  ;;  %12013 = vmatpush3.bf16.msra.mxu1 %v13214_v26  ;;  %v13284_v25 = vld [vmem:[%s18379_s1 + $0x1278] ss:$28 sps:$4 sm:$0xff]   ;;  %v13287_v26 = vld [vmem:[%s18379_s1 + $0x9ec] ss:$28 sps:$4 sm:$0xff]  }
 0x208   :  { %5140 = vmatprep.subr.bf16.mxu0 %v13217_v27  ;;  %12014 = vmatprep.subr.bf16.mxu1 %v13218_v28  ;;  %v13288_v27 = vld [vmem:[%s18379_s1 + $0x1470] ss:$28 sps:$4 sm:$0xff]   ;;  %v13285_v28 = vld [vmem:[%s18379_s1 + $0x9e8] ss:$28 sps:$4 sm:$0xff]  }
 0x20b   :  { %5141 = vmatpush1.bf16.msra.mxu0 %v13215_v29  ;;  %12015 = vmatpush3.bf16.msra.mxu1 %v13219_v30  ;;  %v13289_v29 = vld [vmem:[%s18379_s1 + $0x12b0] ss:$28 sps:$4 sm:$0xff]   ;;  %v13292_v30 = vld [vmem:[%s18379_s1 + $0xa24] ss:$28 sps:$4 sm:$0xff]  }
 0x20c   :  { %5153 = vmatprep.subr.bf16.mxu0 %v13222_v31  ;;  %12022 = vmatprep.subr.bf16.mxu1 %v13223_v32  ;;  %v13293_v31 = vld [vmem:[%s18379_s1 + $0x14a8] ss:$28 sps:$4 sm:$0xff]   ;;  %v13290_v32 = vld [vmem:[%s18379_s1 + $0xa20] ss:$28 sps:$4 sm:$0xff]  }
 0x20e   :  { %5143 = vmatmul.mubr.bf16.vlgmr.msra.gmra.mrb[4].mxu0 %v15750_v34  ;;  %5524 = vmatmul.mubr.bf16.vlgmr.msra.gmra.mrb[16].mxu1 %v15962_v39  ;;  %v13232_v34 = vld [vmem:[%s18379_s1 + $0x784] ss:$28 sps:$4 sm:$0xff]  }
 0x20f   :  { %5154 = vmatpush1.bf16.msra.mxu0 %v13220_v33  ;;  %12023 = vmatpush3.bf16.msra.mxu1 %v13224_v35  ;;  %v13294_v33 = vld [vmem:[%s18379_s1 + $0x12e8] ss:$28 sps:$4 sm:$0xff]   ;;  %v13297_v35 = vld [vmem:[%s18379_s1 + $0xa5c] ss:$28 sps:$4 sm:$0xff]  }
 0x210   :  { %5155 = vmatprep.subr.bf16.mxu0 %v13227_v36  ;;  %12024 = vmatprep.subr.bf16.mxu1 %v13228_v38  ;;  %v13298_v36 = vld [vmem:[%s18379_s1 + $0x14e0] ss:$28 sps:$4 sm:$0xff]   ;;  %v13295_v38 = vld [vmem:[%s18379_s1 + $0xa58] ss:$28 sps:$4 sm:$0xff]  }
 0x211   :  { %5564 = vmatprep.mubr.bf16.mxu1 %v15983_v44  ;;  %5185 = vmatprep.mubr.bf16.mxu0 %v15762_v37  ;;  %v13235_v37 = vld [vmem:[%s18379_s1 + $0x7b8] ss:$28 sps:$4 sm:$0xff]  }
 0x213   :  { %5156 = vmatpush1.bf16.msra.mxu0 %v13225_v40  ;;  %12025 = vmatpush3.bf16.msra.mxu1 %v13229_v41  ;;  %v13299_v40 = vld [vmem:[%s18379_s1 + $0x1320] ss:$28 sps:$4 sm:$0xff]   ;;  %v13302_v41 = vld [vmem:[%s18379_s1 + $0xa94] ss:$28 sps:$4 sm:$0xff]  }
 0x214   :  { %5157 = vmatprep.subr.bf16.mxu0 %v13232_v34  ;;  %12026 = vmatprep.subr.bf16.mxu1 %v13233_v42  ;;  %v13300_v34 = vld [vmem:[%s18379_s1 + $0xa90] ss:$28 sps:$4 sm:$0xff]   ;;  %v13303_v42 = vld [vmem:[%s18379_s1 + $0x1518] ss:$28 sps:$4 sm:$0xff]  }
 0x217   :  { %5158 = vmatpush1.bf16.msra.mxu0 %v13230_v43  ;;  %12027 = vmatpush3.bf16.msra.mxu1 %v13234_v45  ;;  %v14244_v43 = vmov 0.0   ;;  %v13306_v45 = vld [vmem:[%s18379_s1 + $0xacc] ss:$28 sps:$4 sm:$0xff]  }
 0x218   :  { %5159 = vmatprep.subr.bf16.mxu0 %v13237_v46  ;;  %12028 = vmatprep.subr.bf16.mxu1 %v13238_v47  ;;  %v16175_v46 = vld [vmem:[%s18380_s0 + $0x28] ss:$52 sps:$4 sm:$0xff]  }
 0x219   :  { %v13304_v47 = vld [vmem:[%s18379_s1 + $0xac8] ss:$28 sps:$4 sm:$0xff]  }
 0x21b   :  { %5160 = vmatpush1.bf16.msra.mxu0 %v13235_v37  ;;  %12029 = vmatpush3.bf16.msra.mxu1 %v13239_v48  ;;  %v13307_v37 = vld [vmem:[%s18379_s1 + $0x1550] ss:$28 sps:$4 sm:$0xff]   ;;  %v833_v48 = vlaneseq }
 0x21c   :  { %5161 = vmatprep.subr.bf16.mxu0 %v13242_v49  ;;  %12030 = vmatprep.subr.bf16.mxu1 %v13243_v50  ;;  %v13313_v49 = vld [vmem:[%s18381_s3 + $0x4] ss:$20 sps:$4 sm:$0xff]   ;;  %v13308_v50 = vld [vmem:[%s18379_s1 + $0xb00] ss:$28 sps:$4 sm:$0xff]  }
 0x21f   :  { %5162 = vmatpush1.bf16.msra.mxu0 %v13240_v51  ;;  %12031 = vmatpush3.bf16.msra.mxu1 %v13244_v52  ;;  %v13311_v51 = vld [vmem:[%s18381_s3] ss:$20 sps:$4 sm:$0xff]   ;;  %v13316_v52 = vld [vmem:[%s18379_s1 + $0xb3c] ss:$28 sps:$4 sm:$0xff]  }
 0x220   :  { %5163 = vmatprep.subr.bf16.mxu0 %v13247_v53  ;;  %12032 = vmatprep.subr.bf16.mxu1 %v13248_v54  ;;  %v13319_v53 = vld [vmem:[%s18381_s3 + $0x2c] ss:$20 sps:$4 sm:$0xff]   ;;  %v16206_v54 = vshrl.u32 %v833_v48, 7 }
 0x223   :  { %5164 = vmatpush1.bf16.msra.mxu0 %v13245_v55  ;;  %12033 = vmatpush3.bf16.msra.mxu1 %v13249_v56  ;;  %v13314_v55 = vld [vmem:[%s18379_s1 + $0xb38] ss:$28 sps:$4 sm:$0xff]   ;;  %v16217_v56 = vld [vmem:[%s18380_s0 + $0x30] ss:$52 sps:$4 sm:$0xff]  }
 0x224   :  { %5165 = vmatprep.subr.bf16.mxu0 %v13252_v57  ;;  %12034 = vmatprep.subr.bf16.mxu1 %v13253_v58  ;;  %v13322_v57 = vld [vmem:[%s18379_s1 + $0xb74] ss:$28 sps:$4 sm:$0xff]  }
 0x225   :  { %v13325_v58 = vld [vmem:[%s18381_s3 + $0x54] ss:$20 sps:$4 sm:$0xff]  }
 0x227   :  { %5166 = vmatpush1.bf16.msra.mxu0 %v13250_v59  ;;  %12035 = vmatpush3.bf16.msra.mxu1 %v13254_v60  ;;  %v16228_v59 = vsub.s32 0, %v16206_v54  ;;  %v16231_v60 = vsub.s32 2, %v16206_v54 }
 0x228   :  { %5167 = vmatprep.subr.bf16.mxu0 %v13257_v61  ;;  %12036 = vmatprep.subr.bf16.mxu1 %v13258_v62  ;;  %v13320_v61 = vld [vmem:[%s18379_s1 + $0xb70] ss:$28 sps:$4 sm:$0xff]  }
 0x229   :  { %v13323_v62 = vld [vmem:[%s18381_s3 + $0x50] ss:$20 sps:$4 sm:$0xff]  }
 0x22b   :  { %5168 = vmatpush1.bf16.msra.mxu0 %v13255_v63  ;;  %12037 = vmatpush3.bf16.msra.mxu1 %v13259_v0  ;;  %v16242_v63 = vld [vmem:[%s18382_s2] sm:$0x7f]  ;;  %v13328_v0 = vld [vmem:[%s18379_s1 + $0xbac] ss:$28 sps:$4 sm:$0xff]  }
 0x22c   :  { %5169 = vmatprep.subr.bf16.mxu0 %v13262_v1  ;;  %12044 = vmatprep.subr.bf16.mxu1 %v13263_v3  ;;  %v13331_v1 = vld [vmem:[%s18381_s3 + $0x7c] ss:$20 sps:$4 sm:$0xff]   ;;  %v16251_v3 = vsub.s32 1, %v16206_v54 }
 0x22e   :  { %5565 = vmatmul.mubr.bf16.vlgmr.msra.gmra.mrb[20].mxu1 %v16071_v9 }
 0x22f   :  { %5170 = vmatpush1.bf16.msra.mxu0 %v13260_v4  ;;  %12045 = vmatpush3.bf16.msra.mxu1 %v13264_v5  ;;  %v16254_v4 = vsub.s32 3, %v16206_v54  ;;  %v13326_v5 = vld [vmem:[%s18379_s1 + $0xba8] ss:$28 sps:$4 sm:$0xff]  }
 0x230   :  { %5171 = vmatprep.subr.bf16.mxu0 %v13267_v6  ;;  %12046 = vmatprep.subr.bf16.mxu1 %v13268_v8  ;;  %v13329_v6 = vld [vmem:[%s18381_s3 + $0x78] ss:$20 sps:$4 sm:$0xff]   ;;  %v836_v8 = vrot.slane %v16242_v63, %v16228_v59 }
 0x231   :  { %5605 = vmatprep.mubr.bf16.mxu1 %v16089_v14 }
 0x233   :  { %5172 = vmatpush1.bf16.msra.mxu0 %v13265_v10  ;;  %12047 = vmatpush3.bf16.msra.mxu1 %v13269_v11  ;;  %v844_v10 = vrot.slane %v16242_v63, %v16231_v60  ;;  %v840_v11 = vrot.slane %v16242_v63, %v16251_v3 }
 0x234   :  { %5173 = vmatprep.subr.bf16.mxu0 %v13272_v12  ;;  %12048 = vmatprep.subr.bf16.mxu1 %v13273_v13  ;;  %v848_v12 = vrot.slane %v16242_v63, %v16254_v4  ;;  %v13334_v13 = vld [vmem:[%s18379_s1 + $0xbe4] ss:$28 sps:$4 sm:$0xff]  }
 0x237   :  { %5174 = vmatpush1.bf16.msra.mxu0 %v13270_v15  ;;  %12049 = vmatpush3.bf16.msra.mxu1 %v13274_v16  ;;  %v13337_v15 = vld [vmem:[%s18381_s3 + $0xa4] ss:$20 sps:$4 sm:$0xff]  }
 0x238   :  { %5175 = vmatprep.subr.bf16.mxu0 %v13277_v17  ;;  %12050 = vmatprep.subr.bf16.mxu1 %v13278_v18  ;;  %v13332_v18 = vld [vmem:[%s18379_s1 + $0xbe0] ss:$28 sps:$4 sm:$0xff]  }
 0x23b   :  { %5176 = vmatpush1.bf16.msra.mxu0 %v13275_v19  ;;  %12051 = vmatpush3.bf16.msra.mxu1 %v13279_v20 }
 0x23c   :  { %5177 = vmatprep.subr.bf16.mxu0 %v13282_v21  ;;  %12052 = vmatprep.subr.bf16.mxu1 %v13283_v23 }
 0x23f   :  { %5178 = vmatpush1.bf16.msra.mxu0 %v13280_v24  ;;  %12053 = vmatpush3.bf16.msra.mxu1 %v13284_v25 }
 0x240   :  { %5179 = vmatprep.subr.bf16.mxu0 %v13287_v26  ;;  %12054 = vmatprep.subr.bf16.mxu1 %v13288_v27 }
 0x243   :  { %5180 = vmatpush1.bf16.msra.mxu0 %v13285_v28  ;;  %12055 = vmatpush3.bf16.msra.mxu1 %v13289_v29  ;;  %v13335_v28 = vld [vmem:[%s18381_s3 + $0xa0] ss:$20 sps:$4 sm:$0xff]   ;;  %v13340_v29 = vld [vmem:[%s18379_s1 + $0xc1c] ss:$28 sps:$4 sm:$0xff]  }
 0x244   :  { %5181 = vmatprep.subr.bf16.mxu0 %v13292_v30  ;;  %12056 = vmatprep.subr.bf16.mxu1 %v13293_v31 }
 0x247   :  { %5182 = vmatpush1.bf16.msra.mxu0 %v13290_v32  ;;  %12057 = vmatpush3.bf16.msra.mxu1 %v13294_v33 }
 0x248   :  { %5183 = vmatprep.subr.bf16.mxu0 %v13297_v35  ;;  %12058 = vmatprep.subr.bf16.mxu1 %v13298_v36  ;;  %v13343_v35 = vld [vmem:[%s18381_s3 + $0xcc] ss:$20 sps:$4 sm:$0xff]  }
 0x24b   :  { %5184 = vmatpush1.bf16.msra.mxu0 %v13295_v38  ;;  %12059 = vmatpush3.bf16.msra.mxu1 %v13299_v40 }
 0x24c   :  { %5196 = vmatprep.subr.bf16.mxu0 %v13302_v41  ;;  %12258 = vmatprep.subr.bf16.mxu1 %v14244_v43 }
 0x24e   :  { %5186 = vmatmul.mubr.bf16.vlgmr.msra.gmra.mrb[4].mxu0 %v15853_v2  ;;  %5606 = vmatmul.mubr.bf16.vlgmr.msra.gmra.mrb[24].mxu1 %v16175_v46  ;;  %v13310_v2 = vld [vmem:[%s18379_s1 + $0xb04] ss:$28 sps:$4 sm:$0xff]  }
 0x24f   :  { %5197 = vmatpush1.bf16.msra.mxu0 %v13300_v34  ;;  %12259 = vmatpush3.bf16.msra.mxu1 %v13303_v42  ;;  %v13338_v34 = vld [vmem:[%s18379_s1 + $0xc18] ss:$28 sps:$4 sm:$0xff]   ;;  %v13341_v42 = vld [vmem:[%s18381_s3 + $0xc8] ss:$20 sps:$4 sm:$0xff]  }
 0x250   :  { %5198 = vmatprep.subr.bf16.mxu0 %v13306_v45  ;;  %12260 = vmatprep.subr.bf16.mxu1 %v14244_v43 }
 0x251   :  { %12262 = vmatprep.mubr.msk.bf16.mxu1 %vm14245_vm1, %v14244_v43  ;;  %5228 = vmatprep.mubr.bf16.mxu0 %v15871_v7  ;;  %v13317_v7 = vld [vmem:[%s18381_s3 + $0x28] ss:$20 sps:$4 sm:$0xff]  }
 0x253   :  { %5199 = vmatpush1.bf16.msra.mxu0 %v13304_v47  ;;  %12261 = vmatpush3.bf16.msra.mxu1 %v13307_v37 }
 0x254   :  { %5200 = vmatprep.subr.bf16.mxu0 %v13310_v2  ;;  %7306 = vmatprep.subr.bf16.mxu1 %v13313_v49 }
 0x256   :  { %12263 = vmatmul.mubr.msk.bf16.vlgmr.msra.gmra.mrb[28].mxu1 %vm4461_vm0, %v16217_v56 }
 0x257   :  { %5201 = vmatpush1.bf16.msra.mxu0 %v13308_v50  ;;  %7307 = vmatpush1.bf16.msra.mxu1 %v13311_v51  ;;  %v13346_v50 = vld [vmem:[%s18379_s1 + $0xc54] ss:$28 sps:$4 sm:$0xff]  }
 0x258   :  { %5202 = vmatprep.subr.bf16.mxu0 %v13316_v52  ;;  %7308 = vmatprep.subr.bf16.mxu1 %v13319_v53 }
 0x25b   :  { %5203 = vmatpush1.bf16.msra.mxu0 %v13314_v55  ;;  %7309 = vmatpush1.bf16.msra.mxu1 %v13317_v7  ;;  %v13349_v7 = vld [vmem:[%s18381_s3 + $0xf4] ss:$20 sps:$4 sm:$0xff]  }
 0x25c   :  { %5204 = vmatprep.subr.bf16.mxu0 %v13322_v57  ;;  %7310 = vmatprep.subr.bf16.mxu1 %v13325_v58  ;;  %v13344_v57 = vld [vmem:[%s18379_s1 + $0xc50] ss:$28 sps:$4 sm:$0xff]  }
 0x25d   :  { %v13347_v58 = vld [vmem:[%s18381_s3 + $0xf0] ss:$20 sps:$4 sm:$0xff]  }
 0x25f   :  { %5205 = vmatpush1.bf16.msra.mxu0 %v13320_v61  ;;  %7311 = vmatpush1.bf16.msra.mxu1 %v13323_v62  ;;  %v13352_v61 = vld [vmem:[%s18379_s1 + $0xc8c] ss:$28 sps:$4 sm:$0xff]   ;;  %v13355_v62 = vld [vmem:[%s18381_s3 + $0x11c] ss:$20 sps:$4 sm:$0xff]  }
 0x260   :  { %5206 = vmatprep.subr.bf16.mxu0 %v13328_v0  ;;  %7312 = vmatprep.subr.bf16.mxu1 %v13331_v1  ;;  %v13350_v0 = vld [vmem:[%s18379_s1 + $0xc88] ss:$28 sps:$4 sm:$0xff]   ;;  %v13353_v1 = vld [vmem:[%s18381_s3 + $0x118] ss:$20 sps:$4 sm:$0xff]  }
 0x261   :  { %v4757_v16 = vpop.f32.mrb[0].mxu0  ;;  %v5058_v17 = vpop.f32.mrb[0].mxu1 }
 0x262   :  { %v12298_v19 = vadd.f32 %v4757_v16, %v836_v8  ;;  %v12302_v20 = vadd.f32 %v5058_v17, %v844_v10  ;;  %v4759_v21 = vpop.f32.mrb[1].mxu0  ;;  %v5060_v23 = vpop.f32.mrb[1].mxu1  ;;  %v13370_v16 = vld [vmem:[%s18379_s1 + $0xd34] ss:$28 sps:$4 sm:$0xff]  }
 0x263   :  { %v12299_v24 = vadd.f32 %v4759_v21, %v840_v11  ;;  %v12303_v25 = vadd.f32 %v5060_v23, %v848_v12  ;;  %5207 = vmatpush1.bf16.msra.mxu0 %v13326_v5  ;;  %7313 = vmatpush1.bf16.msra.mxu1 %v13329_v6  ;;  %v4761_v26 = vpop.f32.mrb[2].mxu0  ;;  %v5062_v27 = vpop.f32.mrb[2].mxu1  ;;  %v13358_v5 = vld [vmem:[%s18379_s1 + $0xcc4] ss:$28 sps:$4 sm:$0xff]   ;;  %v13373_v17 = vld [vmem:[%s18381_s3 + $0x194] ss:$20 sps:$4 sm:$0xff]  }
 0x264   :  { %v12300_v30 = vadd.f32 %v4761_v26, %v836_v8  ;;  %v12304_v31 = vadd.f32 %v5062_v27, %v844_v10  ;;  %v4763_v32 = vpop.f32.mrb[3].mxu0  ;;  %v5064_v33 = vpop.f32.mrb[3].mxu1  ;;  %5208 = vmatprep.subr.bf16.mxu0 %v13334_v13  ;;  %7314 = vmatprep.subr.bf16.mxu1 %v13337_v15  ;;  %v5655_v36 = vmax.f32 %v12298_v19, 0.0  ;;  %v5657_v38 = vmax.f32 %v12302_v20, 0.0  ;;  %v13361_v6 = vld [vmem:[%s18381_s3 + $0x144] ss:$20 sps:$4 sm:$0xff]  }
 0x265   :  { %v12301_v40 = vadd.f32 %v4763_v32, %v840_v11  ;;  %v12305_v41 = vadd.f32 %v5064_v33, %v848_v12  ;;  %v5656_v37 = vmax.f32 %v12299_v24, 0.0  ;;  %v5658_v48 = vmax.f32 %v12303_v25, 0.0  ;;  %v13356_v8 = vld [vmem:[%s18379_s1 + $0xcc0] ss:$28 sps:$4 sm:$0xff]   ;;  %v13362_v13 = vld [vmem:[%s18379_s1 + $0xcf8] ss:$28 sps:$4 sm:$0xff]  }
 0x266   :  { %v5662_v45 = vmax.f32 %v12300_v30, 0.0  ;;  %v5664_v47 = vmax.f32 %v12304_v31, 0.0  ;;  %v13359_v10 = vld [vmem:[%s18381_s3 + $0x140] ss:$20 sps:$4 sm:$0xff]   ;;  %v13364_v11 = vld [vmem:[%s18379_s1 + $0xcfc] ss:$28 sps:$4 sm:$0xff]  }
 0x267   :  { %v5663_v2 = vmax.f32 %v12301_v40, 0.0  ;;  %v5665_v49 = vmax.f32 %v12305_v41, 0.0  ;;  %5209 = vmatpush1.bf16.msra.mxu0 %v13332_v18  ;;  %7315 = vmatpush1.bf16.msra.mxu1 %v13335_v28  ;;  %v13367_v12 = vld [vmem:[%s18381_s3 + $0x16c] ss:$20 sps:$4 sm:$0xff]   ;;  %v13365_v15 = vld [vmem:[%s18381_s3 + $0x168] ss:$20 sps:$4 sm:$0xff]  }
 0x268   :  { %v16297_v51 = vpack.c.bf16 %v5662_v45, %v5655_v36  ;;  %v16299_v52 = vpack.c.bf16 %v5664_v47, %v5657_v38  ;;  %5210 = vmatprep.subr.bf16.mxu0 %v13340_v29  ;;  %7316 = vmatprep.subr.bf16.mxu1 %v13343_v35  ;;  %v13368_v18 = vld [vmem:[%s18379_s1 + $0xd30] ss:$28 sps:$4 sm:$0xff]   ;;  %v13374_v23 = vld [vmem:[%s18379_s1 + $0xd68] ss:$28 sps:$4 sm:$0xff]   ;;  %v13380_v27 = vld [vmem:[%s18379_s1 + $0xda0] ss:$28 sps:$4 sm:$0xff]  }
 0x269   :  { %v16301_v53 = vpack.c.bf16 %v5663_v2, %v5656_v37  ;;  %v16303_v55 = vpack.c.bf16 %v5665_v49, %v5658_v48  ;;  %v13371_v19 = vld [vmem:[%s18381_s3 + $0x190] ss:$20 sps:$4 sm:$0xff]   ;;  %v13376_v20 = vld [vmem:[%s18379_s1 + $0xd6c] ss:$28 sps:$4 sm:$0xff]   ;;  %v13383_v28 = vld [vmem:[%s18381_s3 + $0x1e0] ss:$20 sps:$4 sm:$0xff]  }
 0x26a   :  { %v13379_v21 = vld [vmem:[%s18381_s3 + $0x1bc] ss:$20 sps:$4 sm:$0xff]   ;;  %v13377_v24 = vld [vmem:[%s18381_s3 + $0x1b8] ss:$20 sps:$4 sm:$0xff]   ;;  %v13382_v25 = vld [vmem:[%s18379_s1 + $0xda4] ss:$28 sps:$4 sm:$0xff]  }
 0x26b   :  { %5211 = vmatpush1.bf16.msra.mxu0 %v13338_v34  ;;  %7317 = vmatpush1.bf16.msra.mxu1 %v13341_v42  ;;  %v13385_v26 = vld [vmem:[%s18381_s3 + $0x1e4] ss:$20 sps:$4 sm:$0xff]   ;;  %v13391_v30 = vld [vmem:[%s18381_s3 + $0x20c] ss:$20 sps:$4 sm:$0xff]   ;;  %v13389_v32 = vld [vmem:[%s18381_s3 + $0x208] ss:$20 sps:$4 sm:$0xff]  }
 0x26c   :  { %7338 = vmatprep.mubr.bf16.mxu1 %v16301_v53  ;;  %5212 = vmatprep.subr.bf16.mxu0 %v13346_v50  ;;  %v13388_v29 = vld [vmem:[%s18379_s1 + $0xddc] ss:$28 sps:$4 sm:$0xff]   ;;  %v13394_v33 = vld [vmem:[%s18379_s1 + $0xe14] ss:$28 sps:$4 sm:$0xff]   ;;  %v13400_v40 = vld [vmem:[%s18379_s1 + $0xe4c] ss:$28 sps:$4 sm:$0xff]  }
 0x26d   :  { %7318 = vmatprep.subr.bf16.mxu1 %v13349_v7  ;;  %v13386_v31 = vld [vmem:[%s18379_s1 + $0xdd8] ss:$28 sps:$4 sm:$0xff]   ;;  %v13392_v36 = vld [vmem:[%s18379_s1 + $0xe10] ss:$28 sps:$4 sm:$0xff]   ;;  %v13398_v34 = vld [vmem:[%s18379_s1 + $0xe48] ss:$28 sps:$4 sm:$0xff]  }
 0x26e   :  { %v13397_v35 = vld [vmem:[%s18381_s3 + $0x234] ss:$20 sps:$4 sm:$0xff]   ;;  %v13395_v38 = vld [vmem:[%s18381_s3 + $0x230] ss:$20 sps:$4 sm:$0xff]   ;;  %v13401_v42 = vld [vmem:[%s18381_s3 + $0x258] ss:$20 sps:$4 sm:$0xff]  }
 0x26f   :  { %5213 = vmatpush1.bf16.msra.mxu0 %v13344_v57  ;;  %7319 = vmatpush1.bf16.msra.mxu1 %v13347_v58  ;;  %v13403_v41 = vld [vmem:[%s18381_s3 + $0x25c] ss:$20 sps:$4 sm:$0xff]   ;;  %v13406_v45 = vld [vmem:[%s18379_s1 + $0xe84] ss:$28 sps:$4 sm:$0xff]   ;;  %v13410_v2 = vld [vmem:[%s18379_s1 + $0xeb8] ss:$28 sps:$4 sm:$0xff]  }
 0x270   :  { %5214 = vmatprep.subr.bf16.mxu0 %v13352_v61  ;;  %7320 = vmatprep.subr.bf16.mxu1 %v13355_v62  ;;  %v13404_v47 = vld [vmem:[%s18379_s1 + $0xe80] ss:$28 sps:$4 sm:$0xff]   ;;  %v13418_v50 = vld [vmem:[%s18379_s1 + $0xef4] ss:$28 sps:$4 sm:$0xff]   ;;  %v13424_v61 = vld [vmem:[%s18379_s1 + $0xf2c] ss:$28 sps:$4 sm:$0xff]  }
 0x271   :  { %v13407_v37 = vld [vmem:[%s18381_s3 + $0x280] ss:$20 sps:$4 sm:$0xff]   ;;  %v13412_v48 = vld [vmem:[%s18379_s1 + $0xebc] ss:$28 sps:$4 sm:$0xff]   ;;  %v13416_v57 = vld [vmem:[%s18379_s1 + $0xef0] ss:$28 sps:$4 sm:$0xff]  }
 0x272   :  { %v13413_v49 = vld [vmem:[%s18381_s3 + $0x2a8] ss:$20 sps:$4 sm:$0xff]   ;;  %v13419_v58 = vld [vmem:[%s18381_s3 + $0x2d0] ss:$20 sps:$4 sm:$0xff]  }
 0x273   :  { %5215 = vmatpush1.bf16.msra.mxu0 %v13350_v0  ;;  %7321 = vmatpush1.bf16.msra.mxu1 %v13353_v1  ;;  %v13421_v7 = vld [vmem:[%s18381_s3 + $0x2d4] ss:$20 sps:$4 sm:$0xff]   ;;  %v13427_v62 = vld [vmem:[%s18381_s3 + $0x2fc] ss:$20 sps:$4 sm:$0xff]   ;;  %v13425_v1 = vld [vmem:[%s18381_s3 + $0x2f8] ss:$20 sps:$4 sm:$0xff]  }
 0x274   :  { %5216 = vmatprep.subr.bf16.mxu0 %v13358_v5  ;;  %7322 = vmatprep.subr.bf16.mxu1 %v13361_v6  ;;  %v13422_v0 = vld [vmem:[%s18379_s1 + $0xf28] ss:$28 sps:$4 sm:$0xff]  }
 0x275   :  { %v13430_v5 = vld [vmem:[%s18379_s1 + $0xf64] ss:$28 sps:$4 sm:$0xff]  }
 0x276   :  { %v13433_v6 = vld [vmem:[%s18381_s3 + $0x324] ss:$20 sps:$4 sm:$0xff]  }
 0x277   :  { %5217 = vmatpush1.bf16.msra.mxu0 %v13356_v8  ;;  %7323 = vmatpush1.bf16.msra.mxu1 %v13359_v10  ;;  %v13428_v8 = vld [vmem:[%s18379_s1 + $0xf60] ss:$28 sps:$4 sm:$0xff]  }
 0x278   :  { %5218 = vmatprep.subr.bf16.mxu0 %v13364_v11  ;;  %7324 = vmatprep.subr.bf16.mxu1 %v13367_v12  ;;  %v13431_v10 = vld [vmem:[%s18381_s3 + $0x320] ss:$20 sps:$4 sm:$0xff]   ;;  %v13436_v11 = vld [vmem:[%s18379_s1 + $0xf9c] ss:$28 sps:$4 sm:$0xff]  }
 0x279   :  { %v13439_v12 = vld [vmem:[%s18381_s3 + $0x34c] ss:$20 sps:$4 sm:$0xff]  }
 0x27b   :  { %5219 = vmatpush1.bf16.msra.mxu0 %v13362_v13  ;;  %7325 = vmatpush1.bf16.msra.mxu1 %v13365_v15  ;;  %v13434_v13 = vld [vmem:[%s18379_s1 + $0xf98] ss:$28 sps:$4 sm:$0xff]   ;;  %v13437_v15 = vld [vmem:[%s18381_s3 + $0x348] ss:$20 sps:$4 sm:$0xff]  }
 0x27c   :  { %5220 = vmatprep.subr.bf16.mxu0 %v13370_v16  ;;  %7326 = vmatprep.subr.bf16.mxu1 %v13373_v17  ;;  %v13442_v16 = vld [vmem:[%s18379_s1 + $0xfd4] ss:$28 sps:$4 sm:$0xff]  }
 0x27d   :  { %v13445_v17 = vld [vmem:[%s18381_s3 + $0x374] ss:$20 sps:$4 sm:$0xff]  }
 0x27f   :  { %5221 = vmatpush1.bf16.msra.mxu0 %v13368_v18  ;;  %7327 = vmatpush1.bf16.msra.mxu1 %v13371_v19  ;;  %v13440_v18 = vld [vmem:[%s18379_s1 + $0xfd0] ss:$28 sps:$4 sm:$0xff]  }
 0x280   :  { %5222 = vmatprep.subr.bf16.mxu0 %v13376_v20  ;;  %7328 = vmatprep.subr.bf16.mxu1 %v13379_v21  ;;  %v13443_v19 = vld [vmem:[%s18381_s3 + $0x370] ss:$20 sps:$4 sm:$0xff]   ;;  %v13448_v20 = vld [vmem:[%s18379_s1 + $0x100c] ss:$28 sps:$4 sm:$0xff]  }
 0x281   :  { %v13451_v21 = vld [vmem:[%s18381_s3 + $0x39c] ss:$20 sps:$4 sm:$0xff]  }
 0x283   :  { %5223 = vmatpush1.bf16.msra.mxu0 %v13374_v23  ;;  %7329 = vmatpush1.bf16.msra.mxu1 %v13377_v24  ;;  %v13446_v23 = vld [vmem:[%s18379_s1 + $0x1008] ss:$28 sps:$4 sm:$0xff]   ;;  %v13449_v24 = vld [vmem:[%s18381_s3 + $0x398] ss:$20 sps:$4 sm:$0xff]  }
 0x284   :  { %5224 = vmatprep.subr.bf16.mxu0 %v13382_v25  ;;  %7330 = vmatprep.subr.bf16.mxu1 %v13385_v26  ;;  %v13454_v25 = vld [vmem:[%s18379_s1 + $0x1044] ss:$28 sps:$4 sm:$0xff]  }
 0x285   :  { %v13457_v26 = vld [vmem:[%s18381_s3 + $0x3c4] ss:$20 sps:$4 sm:$0xff]  }
 0x287   :  { %5225 = vmatpush1.bf16.msra.mxu0 %v13380_v27  ;;  %7331 = vmatpush1.bf16.msra.mxu1 %v13383_v28  ;;  %v13452_v27 = vld [vmem:[%s18379_s1 + $0x1040] ss:$28 sps:$4 sm:$0xff]  }
 0x288   :  { %5226 = vmatprep.subr.bf16.mxu0 %v13388_v29  ;;  %7332 = vmatprep.subr.bf16.mxu1 %v13391_v30  ;;  %v13455_v28 = vld [vmem:[%s18381_s3 + $0x3c0] ss:$20 sps:$4 sm:$0xff]   ;;  %v13460_v29 = vld [vmem:[%s18379_s1 + $0x107c] ss:$28 sps:$4 sm:$0xff]  }
 0x289   :  { %v13463_v30 = vld [vmem:[%s18381_s3 + $0x3ec] ss:$20 sps:$4 sm:$0xff]  }
 0x28b   :  { %5227 = vmatpush1.bf16.msra.mxu0 %v13386_v31  ;;  %7333 = vmatpush1.bf16.msra.mxu1 %v13389_v32  ;;  %v13458_v31 = vld [vmem:[%s18379_s1 + $0x1078] ss:$28 sps:$4 sm:$0xff]   ;;  %v13461_v32 = vld [vmem:[%s18381_s3 + $0x3e8] ss:$20 sps:$4 sm:$0xff]  }
 0x28c   :  { %5239 = vmatprep.subr.bf16.mxu0 %v13394_v33  ;;  %7334 = vmatprep.subr.bf16.mxu1 %v13397_v35  ;;  %v13466_v33 = vld [vmem:[%s18379_s1 + $0x10b4] ss:$28 sps:$4 sm:$0xff]  }
 0x28d   :  { %v13469_v35 = vld [vmem:[%s18381_s3 + $0x414] ss:$20 sps:$4 sm:$0xff]  }
 0x28e   :  { %5229 = vmatmul.mubr.bf16.vlgmr.msra.gmra.mrb[4].mxu0 %v15962_v39  ;;  %v13409_v39 = vld [vmem:[%s18381_s3 + $0x284] ss:$20 sps:$4 sm:$0xff]  }
 0x28f   :  { %5240 = vmatpush1.bf16.msra.mxu0 %v13392_v36  ;;  %7335 = vmatpush1.bf16.msra.mxu1 %v13395_v38  ;;  %v13464_v36 = vld [vmem:[%s18379_s1 + $0x10b0] ss:$28 sps:$4 sm:$0xff]  }
 0x290   :  { %5241 = vmatprep.subr.bf16.mxu0 %v13400_v40  ;;  %7336 = vmatprep.subr.bf16.mxu1 %v13403_v41  ;;  %v13467_v38 = vld [vmem:[%s18381_s3 + $0x410] ss:$20 sps:$4 sm:$0xff]   ;;  %v13472_v40 = vld [vmem:[%s18379_s1 + $0x10ec] ss:$28 sps:$4 sm:$0xff]  }
 0x291   :  { %5271 = vmatprep.mubr.bf16.mxu0 %v15983_v44  ;;  %v13415_v44 = vld [vmem:[%s18381_s3 + $0x2ac] ss:$20 sps:$4 sm:$0xff]   ;;  %v13475_v41 = vld [vmem:[%s18381_s3 + $0x43c] ss:$20 sps:$4 sm:$0xff]  }
 0x293   :  { %5242 = vmatpush1.bf16.msra.mxu0 %v13398_v34  ;;  %7337 = vmatpush1.bf16.msra.mxu1 %v13401_v42  ;;  %v13470_v34 = vld [vmem:[%s18379_s1 + $0x10e8] ss:$28 sps:$4 sm:$0xff]   ;;  %v13473_v42 = vld [vmem:[%s18381_s3 + $0x438] ss:$20 sps:$4 sm:$0xff]  }
 0x294   :  { %5243 = vmatprep.subr.bf16.mxu0 %v13406_v45  ;;  %7349 = vmatprep.subr.bf16.mxu1 %v13409_v39  ;;  %v13478_v45 = vld [vmem:[%s18379_s1 + $0x1124] ss:$28 sps:$4 sm:$0xff]  }
 0x295   :  { %v13481_v39 = vld [vmem:[%s18381_s3 + $0x464] ss:$20 sps:$4 sm:$0xff]  }
 0x296   :  { %7339 = vmatmul.mubr.bf16.vlgmr.msra.gmra.mrb[32].mxu1 %v16297_v51 }
 0x297   :  { %5244 = vmatpush1.bf16.msra.mxu0 %v13404_v47  ;;  %7350 = vmatpush1.bf16.msra.mxu1 %v13407_v37  ;;  %v13476_v47 = vld [vmem:[%s18379_s1 + $0x1120] ss:$28 sps:$4 sm:$0xff]  }
 0x298   :  { %7381 = vmatprep.mubr.bf16.mxu1 %v16303_v55  ;;  %5245 = vmatprep.subr.bf16.mxu0 %v13412_v48  ;;  %v13479_v37 = vld [vmem:[%s18381_s3 + $0x460] ss:$20 sps:$4 sm:$0xff]   ;;  %v13484_v48 = vld [vmem:[%s18379_s1 + $0x115c] ss:$28 sps:$4 sm:$0xff]  }
 0x299   :  { %7351 = vmatprep.subr.bf16.mxu1 %v13415_v44  ;;  %v13487_v44 = vld [vmem:[%s18381_s3 + $0x48c] ss:$20 sps:$4 sm:$0xff]  }
 0x29b   :  { %5246 = vmatpush1.bf16.msra.mxu0 %v13410_v2  ;;  %7352 = vmatpush1.bf16.msra.mxu1 %v13413_v49  ;;  %v13482_v2 = vld [vmem:[%s18379_s1 + $0x1158] ss:$28 sps:$4 sm:$0xff]   ;;  %v13485_v49 = vld [vmem:[%s18381_s3 + $0x488] ss:$20 sps:$4 sm:$0xff]  }
 0x29c   :  { %5247 = vmatprep.subr.bf16.mxu0 %v13418_v50  ;;  %7353 = vmatprep.subr.bf16.mxu1 %v13421_v7  ;;  %v11950_v50 = vpop.f32.mrb[4].mxu1  ;;  %v859_v7 = vsub.s32 6, %v16206_v54 }
 0x29f   :  { %5248 = vmatpush1.bf16.msra.mxu0 %v13416_v57  ;;  %7354 = vmatpush1.bf16.msra.mxu1 %v13419_v58  ;;  %v13490_v57 = vld [vmem:[%s18379_s1 + $0x1194] ss:$28 sps:$4 sm:$0xff]  }
 0x2a0   :  { %5249 = vmatprep.subr.bf16.mxu0 %v13424_v61  ;;  %7355 = vmatprep.subr.bf16.mxu1 %v13427_v62  ;;  %v13493_v58 = vld [vmem:[%s18381_s3 + $0x4b4] ss:$20 sps:$4 sm:$0xff]   ;;  %v11951_v61 = vpop.f32.mrb[5].mxu1  ;;  %v860_v62 = vrot.slane %v16242_v63, %v859_v7 }
 0x2a1   :  { %v13496_v63 = vld [vmem:[%s18379_s1 + $0x11cc] ss:$28 sps:$4 sm:$0xff]  }
 0x2a3   :  { %5250 = vmatpush1.bf16.msra.mxu0 %v13422_v0  ;;  %7356 = vmatpush1.bf16.msra.mxu1 %v13425_v1  ;;  %v11952_v0 = vadd.f32 %v11951_v61, %v11950_v50  ;;  %v11953_v1 = vpop.f32.mrb[6].mxu1  ;;  %v13520_v61 = vld [vmem:[%s18379_s1 + $0x1354] ss:$28 sps:$4 sm:$0xff]  }
 0x2a4   :  { %5251 = vmatprep.subr.bf16.mxu0 %v13430_v5  ;;  %7357 = vmatprep.subr.bf16.mxu1 %v13433_v6  ;;  %v11954_v5 = vpop.f32.mrb[7].mxu1  ;;  %v13488_v6 = vld [vmem:[%s18379_s1 + $0x1190] ss:$28 sps:$4 sm:$0xff]  }
 0x2a7   :  { %5252 = vmatpush1.bf16.msra.mxu0 %v13428_v8  ;;  %7358 = vmatpush1.bf16.msra.mxu1 %v13431_v10  ;;  %v13491_v8 = vld [vmem:[%s18381_s3 + $0x4b0] ss:$20 sps:$4 sm:$0xff]   ;;  %v5403_v10 = vadd.f32 %v11952_v0, %v860_v62  ;;  %v13523_v0 = vld [vmem:[%s18379_s1 + $0x138c] ss:$28 sps:$4 sm:$0xff]  }
 0x2a8   :  { %5253 = vmatprep.subr.bf16.mxu0 %v13436_v11  ;;  %7359 = vmatprep.subr.bf16.mxu1 %v13439_v12  ;;  %v11955_v11 = vadd.f32 %v11954_v5, %v11953_v1  ;;  %v11972_v12 = vpop.f32.mrb[8].mxu1  ;;  %v13521_v1 = vld [vmem:[%s18379_s1 + $0x1388] ss:$28 sps:$4 sm:$0xff]  }
 0x2a9   :  { %v13526_v5 = vld [vmem:[%s18379_s1 + $0x13c4] ss:$28 sps:$4 sm:$0xff]  }
 0x2ab   :  { %5254 = vmatpush1.bf16.msra.mxu0 %v13434_v13  ;;  %7360 = vmatpush1.bf16.msra.mxu1 %v13437_v15  ;;  %v13499_v13 = vld [vmem:[%s18381_s3 + $0x4dc] ss:$20 sps:$4 sm:$0xff]   ;;  %v11973_v15 = vpop.f32.mrb[9].mxu1 }
 0x2ac   :  { %5255 = vmatprep.subr.bf16.mxu0 %v13442_v16  ;;  %7361 = vmatprep.subr.bf16.mxu1 %v13445_v17  ;;  %v5406_v16 = vadd.f32 %v11955_v11, %v860_v62  ;;  %v11974_v17 = vadd.f32 %v11973_v15, %v11972_v12  ;;  %v13518_v62 = vld [vmem:[%s18379_s1 + $0x1350] ss:$28 sps:$4 sm:$0xff]   ;;  %v13538_v15 = vld [vmem:[%s18379_s1 + $0x14a4] ss:$28 sps:$4 sm:$0xff]  }
 0x2ad   :  { %v13532_v11 = vld [vmem:[%s18379_s1 + $0x1434] ss:$28 sps:$4 sm:$0xff]  }
 0x2ae   :  { %v13530_v12 = vld [vmem:[%s18379_s1 + $0x1430] ss:$28 sps:$4 sm:$0xff]  }
 0x2af   :  { %5256 = vmatpush1.bf16.msra.mxu0 %v13440_v18  ;;  %7362 = vmatpush1.bf16.msra.mxu1 %v13443_v19  ;;  %v11975_v18 = vpop.f32.mrb[10].mxu1 }
 0x2b0   :  { %5257 = vmatprep.subr.bf16.mxu0 %v13448_v20  ;;  %7363 = vmatprep.subr.bf16.mxu1 %v13451_v21  ;;  %v11976_v19 = vpop.f32.mrb[11].mxu1  ;;  %v13494_v20 = vld [vmem:[%s18379_s1 + $0x11c8] ss:$28 sps:$4 sm:$0xff]   ;;  %v13497_v21 = vld [vmem:[%s18381_s3 + $0x4d8] ss:$20 sps:$4 sm:$0xff]  }
 0x2b3   :  { %5258 = vmatpush1.bf16.msra.mxu0 %v13446_v23  ;;  %7364 = vmatpush1.bf16.msra.mxu1 %v13449_v24  ;;  %v5444_v23 = vadd.f32 %v11974_v17, %v5403_v10  ;;  %v11977_v24 = vadd.f32 %v11976_v19, %v11975_v18  ;;  %v13527_v10 = vld [vmem:[%s18379_s1 + $0x13f8] ss:$28 sps:$4 sm:$0xff]   ;;  %v13536_v18 = vld [vmem:[%s18379_s1 + $0x14a0] ss:$28 sps:$4 sm:$0xff]  }
 0x2b4   :  { %5259 = vmatprep.subr.bf16.mxu0 %v13454_v25  ;;  %7365 = vmatprep.subr.bf16.mxu1 %v13457_v26 }
 0x2b7   :  { %5260 = vmatpush1.bf16.msra.mxu0 %v13452_v27  ;;  %7366 = vmatpush1.bf16.msra.mxu1 %v13455_v28  ;;  %v5447_v27 = vadd.f32 %v11977_v24, %v5406_v16 }
 0x2b8   :  { %5261 = vmatprep.subr.bf16.mxu0 %v13460_v29  ;;  %7367 = vmatprep.subr.bf16.mxu1 %v13463_v30 }
 0x2bb   :  { %5262 = vmatpush1.bf16.msra.mxu0 %v13458_v31  ;;  %7368 = vmatpush1.bf16.msra.mxu1 %v13461_v32  ;;  %v13500_v31 = vld [vmem:[%s18379_s1 + $0x1200] ss:$28 sps:$4 sm:$0xff]  }
 0x2bc   :  { %5263 = vmatprep.subr.bf16.mxu0 %v13466_v33  ;;  %7369 = vmatprep.subr.bf16.mxu1 %v13469_v35  ;;  %v13505_v35 = vld [vmem:[%s18379_s1 + $0x123c] ss:$28 sps:$4 sm:$0xff]  }
 0x2bf   :  { %5264 = vmatpush1.bf16.msra.mxu0 %v13464_v36  ;;  %7370 = vmatpush1.bf16.msra.mxu1 %v13467_v38  ;;  %v13508_v38 = vld [vmem:[%s18379_s1 + $0x1274] ss:$28 sps:$4 sm:$0xff]  }
 0x2c0   :  { %5265 = vmatprep.subr.bf16.mxu0 %v13472_v40  ;;  %7371 = vmatprep.subr.bf16.mxu1 %v13475_v41  ;;  %v13506_v40 = vld [vmem:[%s18379_s1 + $0x1270] ss:$28 sps:$4 sm:$0xff]  }
 0x2c1   :  { %v11994_v25 = vpop.f32.mrb[12].mxu1  ;;  %v13511_v41 = vld [vmem:[%s18379_s1 + $0x12ac] ss:$28 sps:$4 sm:$0xff]  }
 0x2c2   :  { %v11995_v26 = vpop.f32.mrb[13].mxu1 }
 0x2c3   :  { %5266 = vmatpush1.bf16.msra.mxu0 %v13470_v34  ;;  %7372 = vmatpush1.bf16.msra.mxu1 %v13473_v42  ;;  %v11996_v28 = vadd.f32 %v11995_v26, %v11994_v25  ;;  %v11997_v29 = vpop.f32.mrb[14].mxu1  ;;  %v13509_v34 = vld [vmem:[%s18379_s1 + $0x12a8] ss:$28 sps:$4 sm:$0xff]  }
 0x2c4   :  { %5267 = vmatprep.subr.bf16.mxu0 %v13478_v45  ;;  %7373 = vmatprep.subr.bf16.mxu1 %v13481_v39  ;;  %v11998_v30 = vpop.f32.mrb[15].mxu1  ;;  %v13514_v42 = vld [vmem:[%s18379_s1 + $0x12e4] ss:$28 sps:$4 sm:$0xff]  }
 0x2c5   :  { %v5485_v32 = vadd.f32 %v11996_v28, %v5444_v23  ;;  %v11999_v33 = vadd.f32 %v11998_v30, %v11997_v29  ;;  %v13542_v28 = vld [vmem:[%s18379_s1 + $0x1510] ss:$28 sps:$4 sm:$0xff]   ;;  %v13545_v30 = vld [vmem:[%s18379_s1 + $0x1548] ss:$28 sps:$4 sm:$0xff]  }
 0x2c6   :  { %v13547_v29 = vld [vmem:[%s18379_s1 + $0x154c] ss:$28 sps:$4 sm:$0xff]  }
 0x2c7   :  { %5268 = vmatpush1.bf16.msra.mxu0 %v13476_v47  ;;  %7374 = vmatpush1.bf16.msra.mxu1 %v13479_v37  ;;  %v5488_v36 = vadd.f32 %v11999_v33, %v5447_v27  ;;  %v13512_v47 = vld [vmem:[%s18379_s1 + $0x12e0] ss:$28 sps:$4 sm:$0xff]   ;;  %v13544_v27 = vld [vmem:[%s18379_s1 + $0x1514] ss:$28 sps:$4 sm:$0xff]  }
 0x2c8   :  { %5269 = vmatprep.subr.bf16.mxu0 %v13484_v48  ;;  %7375 = vmatprep.subr.bf16.mxu1 %v13487_v44  ;;  %v13517_v44 = vld [vmem:[%s18379_s1 + $0x131c] ss:$28 sps:$4 sm:$0xff]   ;;  %v13644_v33 = vld [vmem:[%s18381_s3 + $0x500] ss:$20 sps:$4 sm:$0xff]  }
 0x2cb   :  { %5270 = vmatpush1.bf16.msra.mxu0 %v13482_v2  ;;  %7376 = vmatpush1.bf16.msra.mxu1 %v13485_v49 }
 0x2cc   :  { %5282 = vmatprep.subr.bf16.mxu0 %v13490_v57  ;;  %7377 = vmatprep.subr.bf16.mxu1 %v13493_v58  ;;  %v13515_v57 = vld [vmem:[%s18379_s1 + $0x1318] ss:$28 sps:$4 sm:$0xff]  }
 0x2ce   :  { %5272 = vmatmul.mubr.bf16.vlgmr.msra.gmra.mrb[4].mxu0 %v16071_v9  ;;  %v13502_v9 = vld [vmem:[%s18379_s1 + $0x1204] ss:$28 sps:$4 sm:$0xff]  }
 0x2cf   :  { %5283 = vmatpush1.bf16.msra.mxu0 %v13488_v6  ;;  %7378 = vmatpush1.bf16.msra.mxu1 %v13491_v8  ;;  %v13524_v6 = vld [vmem:[%s18379_s1 + $0x13c0] ss:$28 sps:$4 sm:$0xff]  }
 0x2d0   :  { %5284 = vmatprep.subr.bf16.mxu0 %v13496_v63  ;;  %7379 = vmatprep.subr.bf16.mxu1 %v13499_v13  ;;  %v13529_v8 = vld [vmem:[%s18379_s1 + $0x13fc] ss:$28 sps:$4 sm:$0xff]   ;;  %v13535_v63 = vld [vmem:[%s18379_s1 + $0x146c] ss:$28 sps:$4 sm:$0xff]  }
 0x2d1   :  { %5314 = vmatprep.mubr.bf16.mxu0 %v16089_v14  ;;  %v13503_v14 = vld [vmem:[%s18379_s1 + $0x1238] ss:$28 sps:$4 sm:$0xff]   ;;  %v13533_v13 = vld [vmem:[%s18379_s1 + $0x1468] ss:$28 sps:$4 sm:$0xff]  }
 0x2d3   :  { %5285 = vmatpush1.bf16.msra.mxu0 %v13494_v20  ;;  %7380 = vmatpush1.bf16.msra.mxu1 %v13497_v21  ;;  %v13541_v21 = vld [vmem:[%s18379_s1 + $0x14dc] ss:$28 sps:$4 sm:$0xff]  }
 0x2d4   :  { %5286 = vmatprep.subr.bf16.mxu0 %v13502_v9  ;;  %v13539_v9 = vld [vmem:[%s18379_s1 + $0x14d8] ss:$28 sps:$4 sm:$0xff]  }
 0x2d6   :  { %7382 = vmatmul.mubr.bf16.vlgmr.msra.gmra.mrb[32].mxu1 %v16299_v52 }
 0x2d7   :  { %5287 = vmatpush1.bf16.msra.mxu0 %v13500_v31  ;;  %v13550_v31 = vld [vmem:[%s18381_s3 + $0xc] ss:$20 sps:$4 sm:$0xff]  }
 0x2d8   :  { %5288 = vmatprep.subr.bf16.mxu0 %v13505_v35  ;;  %v13646_v35 = vld [vmem:[%s18381_s3 + $0x504] ss:$20 sps:$4 sm:$0xff]  }
 0x2d9   :  { %7392 = vmatprep.subr.bf16.mxu1 %v13646_v35  ;;  %v13580_v35 = vld [vmem:[%s18381_s3 + $0x19c] ss:$20 sps:$4 sm:$0xff]  }
 0x2da   :  { %7393 = vmatpush1.bf16.msra.mxu1 %v13644_v33  ;;  %v13700_v33 = vld [vmem:[%s18381_s3 + $0x66c] ss:$20 sps:$4 sm:$0xff]  }
 0x2db   :  { %5289 = vmatpush1.bf16.msra.mxu0 %v13503_v14  ;;  %v13652_v14 = vld [vmem:[%s18381_s3 + $0x52c] ss:$20 sps:$4 sm:$0xff]  }
 0x2dc   :  { %5290 = vmatprep.subr.bf16.mxu0 %v13508_v38  ;;  %v13650_v38 = vld [vmem:[%s18381_s3 + $0x528] ss:$20 sps:$4 sm:$0xff]   ;;  %7394 = vmatprep.subr.bf16.mxu1 %v13652_v14  ;;  %v13578_v14 = vld [vmem:[%s18381_s3 + $0x198] ss:$20 sps:$4 sm:$0xff]  }
 0x2de   :  { %7395 = vmatpush1.bf16.msra.mxu1 %v13650_v38  ;;  %v13583_v38 = vld [vmem:[%s18381_s3 + $0x1c4] ss:$20 sps:$4 sm:$0xff]  }
 0x2df   :  { %5291 = vmatpush1.bf16.msra.mxu0 %v13506_v40  ;;  %v13554_v40 = vld [vmem:[%s18381_s3 + $0x58] ss:$20 sps:$4 sm:$0xff]  }
 0x2e0   :  { %5292 = vmatprep.subr.bf16.mxu0 %v13511_v41  ;;  %v13658_v41 = vld [vmem:[%s18381_s3 + $0x554] ss:$20 sps:$4 sm:$0xff]  }
 0x2e1   :  { %v12016_v45 = vpop.f32.mrb[16].mxu1  ;;  %7396 = vmatprep.subr.bf16.mxu1 %v13658_v41  ;;  %v13581_v41 = vld [vmem:[%s18381_s3 + $0x1c0] ss:$20 sps:$4 sm:$0xff]  }
 0x2e2   :  { %v12017_v39 = vpop.f32.mrb[17].mxu1 }
 0x2e3   :  { %5293 = vmatpush1.bf16.msra.mxu0 %v13509_v34  ;;  %v12018_v37 = vadd.f32 %v12017_v39, %v12016_v45  ;;  %v12019_v48 = vpop.f32.mrb[18].mxu1  ;;  %v13559_v34 = vld [vmem:[%s18381_s3 + $0x84] ss:$20 sps:$4 sm:$0xff]  }
 0x2e4   :  { %5294 = vmatprep.subr.bf16.mxu0 %v13514_v42  ;;  %v12020_v2 = vpop.f32.mrb[19].mxu1  ;;  %v13656_v45 = vld [vmem:[%s18381_s3 + $0x550] ss:$20 sps:$4 sm:$0xff]  }
 0x2e5   :  { %v5526_v49 = vadd.f32 %v12018_v37, %v5485_v32  ;;  %v12021_v50 = vadd.f32 %v12020_v2, %v12019_v48  ;;  %v13548_v32 = vld [vmem:[%s18381_s3 + $0x8] ss:$20 sps:$4 sm:$0xff]   ;;  %v13562_v2 = vld [vmem:[%s18381_s3 + $0xac] ss:$20 sps:$4 sm:$0xff]   ;;  %7397 = vmatpush1.bf16.msra.mxu1 %v13656_v45 }
 0x2e6   :  { %v13710_v45 = vld [vmem:[%s18381_s3 + $0x6b8] ss:$20 sps:$4 sm:$0xff]  }
 0x2e7   :  { %5295 = vmatpush1.bf16.msra.mxu0 %v13512_v47  ;;  %v5529_v58 = vadd.f32 %v12021_v50, %v5488_v36  ;;  %v13551_v36 = vld [vmem:[%s18381_s3 + $0x30] ss:$20 sps:$4 sm:$0xff]   ;;  %v13557_v47 = vld [vmem:[%s18381_s3 + $0x80] ss:$20 sps:$4 sm:$0xff]  }
 0x2e8   :  { %5296 = vmatprep.subr.bf16.mxu0 %v13517_v44  ;;  %v13664_v44 = vld [vmem:[%s18381_s3 + $0x57c] ss:$20 sps:$4 sm:$0xff]  }
 0x2e9   :  { %7398 = vmatprep.subr.bf16.mxu1 %v13664_v44  ;;  %v13587_v44 = vld [vmem:[%s18381_s3 + $0x210] ss:$20 sps:$4 sm:$0xff]  }
 0x2eb   :  { %5297 = vmatpush1.bf16.msra.mxu0 %v13515_v57 }
 0x2ec   :  { %5298 = vmatprep.subr.bf16.mxu0 %v13520_v61  ;;  %v13560_v61 = vld [vmem:[%s18381_s3 + $0xa8] ss:$20 sps:$4 sm:$0xff]  }
 0x2ef   :  { %5299 = vmatpush1.bf16.msra.mxu0 %v13518_v62 }
 0x2f0   :  { %5300 = vmatprep.subr.bf16.mxu0 %v13523_v0  ;;  %v13670_v0 = vld [vmem:[%s18381_s3 + $0x5a4] ss:$20 sps:$4 sm:$0xff]  }
 0x2f3   :  { %5301 = vmatpush1.bf16.msra.mxu0 %v13521_v1  ;;  %v13565_v1 = vld [vmem:[%s18381_s3 + $0xd4] ss:$20 sps:$4 sm:$0xff]  }
 0x2f4   :  { %5302 = vmatprep.subr.bf16.mxu0 %v13526_v5 }
 0x2f7   :  { %5303 = vmatpush1.bf16.msra.mxu0 %v13524_v6  ;;  %v13668_v6 = vld [vmem:[%s18381_s3 + $0x5a0] ss:$20 sps:$4 sm:$0xff]  }
 0x2f8   :  { %5304 = vmatprep.subr.bf16.mxu0 %v13529_v8 }
 0x2fb   :  { %5305 = vmatpush1.bf16.msra.mxu0 %v13527_v10 }
 0x2fc   :  { %5306 = vmatprep.subr.bf16.mxu0 %v13532_v11  ;;  %v13563_v11 = vld [vmem:[%s18381_s3 + $0xd0] ss:$20 sps:$4 sm:$0xff]  }
 0x2ff   :  { %5307 = vmatpush1.bf16.msra.mxu0 %v13530_v12 }
 0x300   :  { %5308 = vmatprep.subr.bf16.mxu0 %v13535_v63  ;;  %v13676_v63 = vld [vmem:[%s18381_s3 + $0x5cc] ss:$20 sps:$4 sm:$0xff]  }
 0x301   :  { %v12038_v16 = vpop.f32.mrb[20].mxu1 }
 0x302   :  { %v12039_v17 = vpop.f32.mrb[21].mxu1 }
 0x303   :  { %5309 = vmatpush1.bf16.msra.mxu0 %v13533_v13  ;;  %v12040_v19 = vadd.f32 %v12039_v17, %v12038_v16  ;;  %v12041_v20 = vpop.f32.mrb[22].mxu1  ;;  %v13568_v13 = vld [vmem:[%s18381_s3 + $0xfc] ss:$20 sps:$4 sm:$0xff]  }
 0x304   :  { %5310 = vmatprep.subr.bf16.mxu0 %v13538_v15  ;;  %v12042_v23 = vpop.f32.mrb[23].mxu1 }
 0x305   :  { %v5567_v24 = vadd.f32 %v12040_v19, %v5526_v49  ;;  %v12043_v25 = vadd.f32 %v12042_v23, %v12041_v20  ;;  %v13566_v20 = vld [vmem:[%s18381_s3 + $0xf8] ss:$20 sps:$4 sm:$0xff]  }
 0x306   :  { %v13571_v23 = vld [vmem:[%s18381_s3 + $0x124] ss:$20 sps:$4 sm:$0xff]  }
 0x307   :  { %5311 = vmatpush1.bf16.msra.mxu0 %v13536_v18  ;;  %v5570_v26 = vadd.f32 %v12043_v25, %v5529_v58  ;;  %v13662_v58 = vld [vmem:[%s18381_s3 + $0x578] ss:$20 sps:$4 sm:$0xff]   ;;  %v13674_v18 = vld [vmem:[%s18381_s3 + $0x5c8] ss:$20 sps:$4 sm:$0xff]   ;;  %v13680_v25 = vld [vmem:[%s18381_s3 + $0x5f0] ss:$20 sps:$4 sm:$0xff]  }
 0x308   :  { %5312 = vmatprep.subr.bf16.mxu0 %v13541_v21  ;;  %7399 = vmatpush1.bf16.msra.mxu1 %v13662_v58  ;;  %v13682_v21 = vld [vmem:[%s18381_s3 + $0x5f4] ss:$20 sps:$4 sm:$0xff]   ;;  %v13595_v58 = vld [vmem:[%s18381_s3 + $0x264] ss:$20 sps:$4 sm:$0xff]  }
 0x309   :  { %7400 = vmatprep.subr.bf16.mxu1 %v13670_v0  ;;  %v13596_v0 = vld [vmem:[%s18381_s3 + $0x288] ss:$20 sps:$4 sm:$0xff]  }
 0x30b   :  { %5313 = vmatpush1.bf16.msra.mxu0 %v13539_v9  ;;  %v13569_v9 = vld [vmem:[%s18381_s3 + $0x120] ss:$20 sps:$4 sm:$0xff]  }
 0x30c   :  { %5325 = vmatprep.subr.bf16.mxu0 %v13544_v27  ;;  %7401 = vmatpush1.bf16.msra.mxu1 %v13668_v6  ;;  %v13574_v27 = vld [vmem:[%s18381_s3 + $0x14c] ss:$20 sps:$4 sm:$0xff]   ;;  %v13604_v6 = vld [vmem:[%s18381_s3 + $0x2dc] ss:$20 sps:$4 sm:$0xff]  }
 0x30d   :  { %7402 = vmatprep.subr.bf16.mxu1 %v13676_v63  ;;  %v13608_v63 = vld [vmem:[%s18381_s3 + $0x328] ss:$20 sps:$4 sm:$0xff]  }
 0x30e   :  { %5315 = vmatmul.mubr.bf16.vlgmr.msra.gmra.mrb[4].mxu0 %v16175_v46  ;;  %v13553_v46 = vld [vmem:[%s18381_s3 + $0x34] ss:$20 sps:$4 sm:$0xff]  }
 0x30f   :  { %5326 = vmatpush1.bf16.msra.mxu0 %v13542_v28  ;;  %5357 = vmatprep.mubr.bf16.mxu0 %v14243_v22  ;;  %v13686_v28 = vld [vmem:[%s18381_s3 + $0x618] ss:$20 sps:$4 sm:$0xff]  }
 0x310   :  { %5327 = vmatprep.subr.bf16.mxu0 %v13547_v29  ;;  %7403 = vmatpush1.bf16.msra.mxu1 %v13674_v18  ;;  %v13572_v29 = vld [vmem:[%s18381_s3 + $0x148] ss:$20 sps:$4 sm:$0xff]  }
 0x311   :  { %7404 = vmatprep.subr.bf16.mxu1 %v13682_v21  ;;  %v13730_v18 = vld [vmem:[%s18381_s3 + $0x734] ss:$20 sps:$4 sm:$0xff]  }
 0x312   :  { %v13617_v21 = vld [vmem:[%s18381_s3 + $0x3a0] ss:$20 sps:$4 sm:$0xff]  }
 0x313   :  { %5328 = vmatpush1.bf16.msra.mxu0 %v13545_v30  ;;  %v13694_v30 = vld [vmem:[%s18381_s3 + $0x644] ss:$20 sps:$4 sm:$0xff]  }
 0x314   :  { %7478 = vmatprep.subr.bf16.mxu0 %v13550_v31  ;;  %7405 = vmatpush1.bf16.msra.mxu1 %v13680_v25  ;;  %v13577_v31 = vld [vmem:[%s18381_s3 + $0x174] ss:$20 sps:$4 sm:$0xff]   ;;  %v13622_v25 = vld [vmem:[%s18381_s3 + $0x3cc] ss:$20 sps:$4 sm:$0xff]  }
 0x31a   :  { %11354 = vmatmul.mubr.msk.bf16.vlgmr.msra.gmra.mrb[4].mxu0 %vm4461_vm0, %v16217_v56  ;;  %v13556_v56 = vld [vmem:[%s18381_s3 + $0x5c] ss:$20 sps:$4 sm:$0xff]  }
 0x31b   :  { %7479 = vmatpush1.bf16.msra.mxu0 %v13548_v32  ;;  %7510 = vmatprep.mubr.bf16.mxu0 %v16301_v53  ;;  %v13692_v32 = vld [vmem:[%s18381_s3 + $0x640] ss:$20 sps:$4 sm:$0xff]  }
 0x31c   :  { %7480 = vmatprep.subr.bf16.mxu0 %v13553_v46  ;;  %v13575_v46 = vld [vmem:[%s18381_s3 + $0x170] ss:$20 sps:$4 sm:$0xff]  }
 0x31f   :  { %7481 = vmatpush1.bf16.msra.mxu0 %v13551_v36  ;;  %v13698_v36 = vld [vmem:[%s18381_s3 + $0x668] ss:$20 sps:$4 sm:$0xff]  }
 0x320   :  { %7482 = vmatprep.subr.bf16.mxu0 %v13556_v56  ;;  %v13706_v56 = vld [vmem:[%s18381_s3 + $0x694] ss:$20 sps:$4 sm:$0xff]  }
 0x321   :  { %v12060_v42 = vpop.f32.mrb[24].mxu1 }
 0x322   :  { %v12061_v39 = vpop.f32.mrb[25].mxu1 }
 0x323   :  { %7483 = vmatpush1.bf16.msra.mxu0 %v13554_v40  ;;  %v12062_v37 = vadd.f32 %v12061_v39, %v12060_v42  ;;  %v12063_v48 = vpop.f32.mrb[26].mxu1  ;;  %v13704_v40 = vld [vmem:[%s18381_s3 + $0x690] ss:$20 sps:$4 sm:$0xff]   ;;  %v13586_v42 = vld [vmem:[%s18381_s3 + $0x1ec] ss:$20 sps:$4 sm:$0xff]  }
 0x324   :  { %7484 = vmatprep.subr.bf16.mxu0 %v13559_v34  ;;  %v12064_v49 = vpop.f32.mrb[27].mxu1  ;;  %v13712_v34 = vld [vmem:[%s18381_s3 + $0x6bc] ss:$20 sps:$4 sm:$0xff]  }
 0x325   :  { %v12065_v50 = vadd.f32 %v12064_v49, %v12063_v48  ;;  %v5608_v57 = vadd.f32 %v12062_v37, %v5567_v24  ;;  %v13584_v39 = vld [vmem:[%s18381_s3 + $0x1e8] ss:$20 sps:$4 sm:$0xff]   ;;  %v13716_v48 = vld [vmem:[%s18381_s3 + $0x6e0] ss:$20 sps:$4 sm:$0xff]  }
 0x326   :  { %v13589_v37 = vld [vmem:[%s18381_s3 + $0x214] ss:$20 sps:$4 sm:$0xff]   ;;  %v13592_v49 = vld [vmem:[%s18381_s3 + $0x23c] ss:$20 sps:$4 sm:$0xff]  }
 0x327   :  { %7485 = vmatpush1.bf16.msra.mxu0 %v13557_v47  ;;  %v5611_v62 = vadd.f32 %v12065_v50, %v5570_v26  ;;  %v13688_v26 = vld [vmem:[%s18381_s3 + $0x61c] ss:$20 sps:$4 sm:$0xff]   ;;  %v13718_v47 = vld [vmem:[%s18381_s3 + $0x6e4] ss:$20 sps:$4 sm:$0xff]  }
 0x328   :  { %7486 = vmatprep.subr.bf16.mxu0 %v13562_v2  ;;  %7406 = vmatprep.subr.bf16.mxu1 %v13688_v26  ;;  %v13724_v2 = vld [vmem:[%s18381_s3 + $0x70c] ss:$20 sps:$4 sm:$0xff]   ;;  %v13722_v50 = vld [vmem:[%s18381_s3 + $0x708] ss:$20 sps:$4 sm:$0xff]  }
 0x329   :  { %v5648_v5 = vpop.f32.mrb[28].mxu1  ;;  %7407 = vmatpush1.bf16.msra.mxu1 %v13686_v28  ;;  %v13620_v26 = vld [vmem:[%s18381_s3 + $0x3c8] ss:$20 sps:$4 sm:$0xff]   ;;  %v13742_v28 = vld [vmem:[%s18381_s3 + $0x784] ss:$20 sps:$4 sm:$0xff]  }
 0x32a   :  { %v5649_v8 = vadd.f32 %v5648_v5, %v5608_v57  ;;  %v12264_v10 = vpop.f32.mrb[29].mxu1  ;;  %7408 = vmatprep.subr.bf16.mxu1 %v13694_v30  ;;  %v13590_v57 = vld [vmem:[%s18381_s3 + $0x238] ss:$20 sps:$4 sm:$0xff]   ;;  %v13599_v5 = vld [vmem:[%s18381_s3 + $0x2b0] ss:$20 sps:$4 sm:$0xff]  }
 0x32b   :  { %7487 = vmatpush1.bf16.msra.mxu0 %v13560_v61  ;;  %v5651_v12 = vpop.f32.mrb[30].mxu1  ;;  %v13593_v61 = vld [vmem:[%s18381_s3 + $0x260] ss:$20 sps:$4 sm:$0xff]   ;;  %v13607_v10 = vld [vmem:[%s18381_s3 + $0x304] ss:$20 sps:$4 sm:$0xff]  }
 0x32c   :  { %7488 = vmatprep.subr.bf16.mxu0 %v13565_v1  ;;  %v5661_v15 = vmax.f32 %v5649_v8, 0.0  ;;  %v5652_v16 = vadd.f32 %v5651_v12, %v5611_v62  ;;  %v12265_v17 = vpop.f32.mrb[31].mxu1  ;;  %v13598_v62 = vld [vmem:[%s18381_s3 + $0x28c] ss:$20 sps:$4 sm:$0xff]   ;;  %v13601_v1 = vld [vmem:[%s18381_s3 + $0x2b4] ss:$20 sps:$4 sm:$0xff]  }
 0x32d   :  { %7409 = vmatpush1.bf16.msra.mxu1 %v13692_v32  ;;  %v13602_v8 = vld [vmem:[%s18381_s3 + $0x2d8] ss:$20 sps:$4 sm:$0xff]   ;;  %v13628_v30 = vld [vmem:[%s18381_s3 + $0x41c] ss:$20 sps:$4 sm:$0xff]  }
 0x32e   :  { %v5668_v19 = vmax.f32 %v5652_v16, 0.0  ;;  %7410 = vmatprep.subr.bf16.mxu1 %v13700_v33  ;;  %v13610_v12 = vld [vmem:[%s18381_s3 + $0x32c] ss:$20 sps:$4 sm:$0xff]   ;;  %v13616_v16 = vld [vmem:[%s18381_s3 + $0x37c] ss:$20 sps:$4 sm:$0xff]  }
 0x32f   :  { %7489 = vmatpush1.bf16.msra.mxu0 %v13563_v11  ;;  %v13605_v11 = vld [vmem:[%s18381_s3 + $0x300] ss:$20 sps:$4 sm:$0xff]   ;;  %v13614_v17 = vld [vmem:[%s18381_s3 + $0x378] ss:$20 sps:$4 sm:$0xff]  }
 0x330   :  { %7490 = vmatprep.subr.bf16.mxu0 %v13568_v13  ;;  %v16811_v24 = vpack.c.bf16 %v5668_v19, %v5661_v15  ;;  %v13613_v13 = vld [vmem:[%s18381_s3 + $0x354] ss:$20 sps:$4 sm:$0xff]   ;;  %v13611_v15 = vld [vmem:[%s18381_s3 + $0x350] ss:$20 sps:$4 sm:$0xff]   ;;  %v13634_v33 = vld [vmem:[%s18381_s3 + $0x46c] ss:$20 sps:$4 sm:$0xff]  }
 0x331   :  { %7411 = vmatpush1.bf16.msra.mxu1 %v13698_v36  ;;  %v13619_v19 = vld [vmem:[%s18381_s3 + $0x3a4] ss:$20 sps:$4 sm:$0xff]   ;;  %v13637_v36 = vld [vmem:[%s18381_s3 + $0x494] ss:$20 sps:$4 sm:$0xff]  }
 0x332   :  { %7412 = vmatprep.subr.bf16.mxu1 %v13706_v56  ;;  %v13631_v32 = vld [vmem:[%s18381_s3 + $0x444] ss:$20 sps:$4 sm:$0xff]   ;;  %v13640_v56 = vld [vmem:[%s18381_s3 + $0x4bc] ss:$20 sps:$4 sm:$0xff]  }
 0x333   :  { %7491 = vmatpush1.bf16.msra.mxu0 %v13566_v20  ;;  %v13728_v20 = vld [vmem:[%s18381_s3 + $0x730] ss:$20 sps:$4 sm:$0xff]  }
 0x334   :  { %7492 = vmatprep.subr.bf16.mxu0 %v13571_v23  ;;  %v13736_v23 = vld [vmem:[%s18381_s3 + $0x75c] ss:$20 sps:$4 sm:$0xff]  }
 0x335   :  { %7413 = vmatpush1.bf16.msra.mxu1 %v13704_v40  ;;  %v13643_v40 = vld [vmem:[%s18381_s3 + $0x4e4] ss:$20 sps:$4 sm:$0xff]  }
 0x336   :  { %7414 = vmatprep.subr.bf16.mxu1 %v13712_v34  ;;  %v13649_v34 = vld [vmem:[%s18381_s3 + $0x50c] ss:$20 sps:$4 sm:$0xff]  }
 0x337   :  { %7493 = vmatpush1.bf16.msra.mxu0 %v13569_v9  ;;  %v13734_v9 = vld [vmem:[%s18381_s3 + $0x758] ss:$20 sps:$4 sm:$0xff]  }
 0x338   :  { %7494 = vmatprep.subr.bf16.mxu0 %v13574_v27  ;;  %v13625_v27 = vld [vmem:[%s18381_s3 + $0x3f4] ss:$20 sps:$4 sm:$0xff]  }
 0x339   :  { %7415 = vmatpush1.bf16.msra.mxu1 %v13710_v45  ;;  %v13655_v45 = vld [vmem:[%s18381_s3 + $0x534] ss:$20 sps:$4 sm:$0xff]  }
 0x33a   :  { %7416 = vmatprep.subr.bf16.mxu1 %v13718_v47  ;;  %v13661_v47 = vld [vmem:[%s18381_s3 + $0x55c] ss:$20 sps:$4 sm:$0xff]  }
 0x33b   :  { %7495 = vmatpush1.bf16.msra.mxu0 %v13572_v29  ;;  %v13623_v29 = vld [vmem:[%s18381_s3 + $0x3f0] ss:$20 sps:$4 sm:$0xff]  }
 0x33c   :  { %7496 = vmatprep.subr.bf16.mxu0 %v13577_v31  ;;  %v13626_v31 = vld [vmem:[%s18381_s3 + $0x418] ss:$20 sps:$4 sm:$0xff]  }
 0x33d   :  { %7417 = vmatpush1.bf16.msra.mxu1 %v13716_v48  ;;  %v13667_v48 = vld [vmem:[%s18381_s3 + $0x584] ss:$20 sps:$4 sm:$0xff]  }
 0x33e   :  { %7418 = vmatprep.subr.bf16.mxu1 %v13724_v2  ;;  %v13673_v2 = vld [vmem:[%s18381_s3 + $0x5ac] ss:$20 sps:$4 sm:$0xff]  }
 0x33f   :  { %7497 = vmatpush1.bf16.msra.mxu0 %v13575_v46  ;;  %v13629_v46 = vld [vmem:[%s18381_s3 + $0x440] ss:$20 sps:$4 sm:$0xff]  }
 0x340   :  { %7498 = vmatprep.subr.bf16.mxu0 %v13580_v35  ;;  %v13632_v35 = vld [vmem:[%s18381_s3 + $0x468] ss:$20 sps:$4 sm:$0xff]  }
 0x341   :  { %7419 = vmatpush1.bf16.msra.mxu1 %v13722_v50  ;;  %v13679_v50 = vld [vmem:[%s18381_s3 + $0x5d4] ss:$20 sps:$4 sm:$0xff]  }
 0x342   :  { %7420 = vmatprep.subr.bf16.mxu1 %v13730_v18  ;;  %v13733_v18 = vld [vmem:[%s18381_s3 + $0x73c] ss:$20 sps:$4 sm:$0xff]  }
 0x343   :  { %7499 = vmatpush1.bf16.msra.mxu0 %v13578_v14  ;;  %v13635_v14 = vld [vmem:[%s18381_s3 + $0x490] ss:$20 sps:$4 sm:$0xff]  }
 0x344   :  { %7500 = vmatprep.subr.bf16.mxu0 %v13583_v38  ;;  %v13638_v38 = vld [vmem:[%s18381_s3 + $0x4b8] ss:$20 sps:$4 sm:$0xff]  }
 0x345   :  { %7421 = vmatpush1.bf16.msra.mxu1 %v13728_v20  ;;  %v13739_v20 = vld [vmem:[%s18381_s3 + $0x764] ss:$20 sps:$4 sm:$0xff]  }
 0x346   :  { %7422 = vmatprep.subr.bf16.mxu1 %v13736_v23  ;;  %v13745_v23 = vld [vmem:[%s18381_s3 + $0x78c] ss:$20 sps:$4 sm:$0xff]  }
 0x347   :  { %7501 = vmatpush1.bf16.msra.mxu0 %v13581_v41  ;;  %v13641_v41 = vld [vmem:[%s18381_s3 + $0x4e0] ss:$20 sps:$4 sm:$0xff]  }
 0x348   :  { %7502 = vmatprep.subr.bf16.mxu0 %v13586_v42  ;;  %v13647_v42 = vld [vmem:[%s18381_s3 + $0x508] ss:$20 sps:$4 sm:$0xff]  }
 0x349   :  { %7423 = vmatpush1.bf16.msra.mxu1 %v13734_v9  ;;  %v855_v9 = vsub.s32 5, %v16206_v54 }
 0x34a   :  { %7435 = vmatprep.subr.bf16.mxu1 %v13742_v28 }
 0x34b   :  { %7503 = vmatpush1.bf16.msra.mxu0 %v13584_v39  ;;  %v13653_v39 = vld [vmem:[%s18381_s3 + $0x530] ss:$20 sps:$4 sm:$0xff]  }
 0x34c   :  { %7504 = vmatprep.subr.bf16.mxu0 %v13589_v37  ;;  %v13659_v37 = vld [vmem:[%s18381_s3 + $0x558] ss:$20 sps:$4 sm:$0xff]  }
 0x34f   :  { %7505 = vmatpush1.bf16.msra.mxu0 %v13587_v44  ;;  %v13665_v44 = vld [vmem:[%s18381_s3 + $0x580] ss:$20 sps:$4 sm:$0xff]  }
 0x350   :  { %7506 = vmatprep.subr.bf16.mxu0 %v13592_v49  ;;  %v13671_v49 = vld [vmem:[%s18381_s3 + $0x5a8] ss:$20 sps:$4 sm:$0xff]  }
 0x353   :  { %7507 = vmatpush1.bf16.msra.mxu0 %v13590_v57  ;;  %v13677_v57 = vld [vmem:[%s18381_s3 + $0x5d0] ss:$20 sps:$4 sm:$0xff]  }
 0x354   :  { %7508 = vmatprep.subr.bf16.mxu0 %v13595_v58  ;;  %v13685_v58 = vld [vmem:[%s18381_s3 + $0x5fc] ss:$20 sps:$4 sm:$0xff]  }
 0x357   :  { %7509 = vmatpush1.bf16.msra.mxu0 %v13593_v61  ;;  %v13683_v61 = vld [vmem:[%s18381_s3 + $0x5f8] ss:$20 sps:$4 sm:$0xff]  }
 0x358   :  { %7521 = vmatprep.subr.bf16.mxu0 %v13598_v62  ;;  %v13691_v62 = vld [vmem:[%s18381_s3 + $0x624] ss:$20 sps:$4 sm:$0xff]  }
 0x35a   :  { %7511 = vmatmul.mubr.bf16.vlgmr.msra.gmra.mrb[8].mxu0 %v16297_v51 }
 0x35b   :  { %7522 = vmatpush1.bf16.msra.mxu0 %v13596_v0  ;;  %7553 = vmatprep.mubr.bf16.mxu0 %v16303_v55  ;;  %v13689_v0 = vld [vmem:[%s18381_s3 + $0x620] ss:$20 sps:$4 sm:$0xff]  }
 0x35c   :  { %7523 = vmatprep.subr.bf16.mxu0 %v13601_v1  ;;  %v13697_v1 = vld [vmem:[%s18381_s3 + $0x64c] ss:$20 sps:$4 sm:$0xff]  }
 0x35f   :  { %7524 = vmatpush1.bf16.msra.mxu0 %v13599_v5  ;;  %v13695_v5 = vld [vmem:[%s18381_s3 + $0x648] ss:$20 sps:$4 sm:$0xff]  }
 0x360   :  { %7525 = vmatprep.subr.bf16.mxu0 %v13604_v6  ;;  %v13703_v6 = vld [vmem:[%s18381_s3 + $0x674] ss:$20 sps:$4 sm:$0xff]  }
 0x363   :  { %7526 = vmatpush1.bf16.msra.mxu0 %v13602_v8  ;;  %v13701_v8 = vld [vmem:[%s18381_s3 + $0x670] ss:$20 sps:$4 sm:$0xff]  }
 0x364   :  { %7527 = vmatprep.subr.bf16.mxu0 %v13607_v10  ;;  %v13709_v10 = vld [vmem:[%s18381_s3 + $0x69c] ss:$20 sps:$4 sm:$0xff]  }
 0x367   :  { %7528 = vmatpush1.bf16.msra.mxu0 %v13605_v11  ;;  %v13707_v11 = vld [vmem:[%s18381_s3 + $0x698] ss:$20 sps:$4 sm:$0xff]  }
 0x368   :  { %7529 = vmatprep.subr.bf16.mxu0 %v13610_v12  ;;  %v13715_v12 = vld [vmem:[%s18381_s3 + $0x6c4] ss:$20 sps:$4 sm:$0xff]  }
 0x36b   :  { %7530 = vmatpush1.bf16.msra.mxu0 %v13608_v63  ;;  %v13713_v63 = vld [vmem:[%s18381_s3 + $0x6c0] ss:$20 sps:$4 sm:$0xff]  }
 0x36c   :  { %7531 = vmatprep.subr.bf16.mxu0 %v13613_v13  ;;  %v13721_v13 = vld [vmem:[%s18381_s3 + $0x6ec] ss:$20 sps:$4 sm:$0xff]  }
 0x36f   :  { %7532 = vmatpush1.bf16.msra.mxu0 %v13611_v15  ;;  %v13719_v15 = vld [vmem:[%s18381_s3 + $0x6e8] ss:$20 sps:$4 sm:$0xff]  }
 0x370   :  { %7533 = vmatprep.subr.bf16.mxu0 %v13616_v16  ;;  %v13727_v16 = vld [vmem:[%s18381_s3 + $0x714] ss:$20 sps:$4 sm:$0xff]  }
 0x373   :  { %7534 = vmatpush1.bf16.msra.mxu0 %v13614_v17  ;;  %v13725_v17 = vld [vmem:[%s18381_s3 + $0x710] ss:$20 sps:$4 sm:$0xff]  }
 0x374   :  { %7535 = vmatprep.subr.bf16.mxu0 %v13619_v19  ;;  %v13731_v19 = vld [vmem:[%s18381_s3 + $0x738] ss:$20 sps:$4 sm:$0xff]  }
 0x377   :  { %7536 = vmatpush1.bf16.msra.mxu0 %v13617_v21  ;;  %v13737_v21 = vld [vmem:[%s18381_s3 + $0x760] ss:$20 sps:$4 sm:$0xff]  }
 0x378   :  { %7537 = vmatprep.subr.bf16.mxu0 %v13622_v25  ;;  %v17123_v25 = vsub.s32 4, %v16206_v54 }
 0x37b   :  { %7538 = vmatpush1.bf16.msra.mxu0 %v13620_v26  ;;  %v14242_v26 = vld [vmem:[%s18382_s2] sm:$0x7f] }
 0x37c   :  { %7539 = vmatprep.subr.bf16.mxu0 %v13625_v27  ;;  %v852_v27 = vrot.slane %v14242_v26, %v17123_v25  ;;  %v856_v28 = vrot.slane %v14242_v26, %v855_v9  ;;  %v13766_v26 = vld [vmem:[%s18381_s3 + $0x268] ss:$20 sps:$4 sm:$0xff]  }
 0x37f   :  { %7540 = vmatpush1.bf16.msra.mxu0 %v13623_v29 }
 0x380   :  { %7541 = vmatprep.subr.bf16.mxu0 %v13628_v30 }
 0x383   :  { %7542 = vmatpush1.bf16.msra.mxu0 %v13626_v31 }
 0x384   :  { %7543 = vmatprep.subr.bf16.mxu0 %v13631_v32 }
 0x387   :  { %7544 = vmatpush1.bf16.msra.mxu0 %v13629_v46 }
 0x388   :  { %7545 = vmatprep.subr.bf16.mxu0 %v13634_v33 }
 0x38b   :  { %7546 = vmatpush1.bf16.msra.mxu0 %v13632_v35 }
 0x38c   :  { %7547 = vmatprep.subr.bf16.mxu0 %v13637_v36 }
 0x38f   :  { %7548 = vmatpush1.bf16.msra.mxu0 %v13635_v14 }
 0x390   :  { %7549 = vmatprep.subr.bf16.mxu0 %v13640_v56 }
 0x393   :  { %7550 = vmatpush1.bf16.msra.mxu0 %v13638_v38 }
 0x394   :  { %7551 = vmatprep.subr.bf16.mxu0 %v13643_v40 }
 0x397   :  { %7552 = vmatpush1.bf16.msra.mxu0 %v13641_v41 }
 0x398   :  { %7564 = vmatprep.subr.bf16.mxu0 %v13649_v34  ;;  %v13740_v34 = vld [vmem:[%s18381_s3 + $0x780] ss:$20 sps:$4 sm:$0xff]  }
 0x39a   :  { %7554 = vmatmul.mubr.bf16.vlgmr.msra.gmra.mrb[8].mxu0 %v16299_v52 }
 0x39b   :  { %7565 = vmatpush1.bf16.msra.mxu0 %v13647_v42  ;;  %v13743_v42 = vld [vmem:[%s18381_s3 + $0x788] ss:$20 sps:$4 sm:$0xff]  }
 0x39c   :  { %7566 = vmatprep.subr.bf16.mxu0 %v13655_v45 }
 0x39f   :  { %7567 = vmatpush1.bf16.msra.mxu0 %v13653_v39  ;;  %v13748_v39 = vld [vmem:[%s18381_s3 + $0x7ac] ss:$20 sps:$4 sm:$0xff]  }
 0x3a0   :  { %7568 = vmatprep.subr.bf16.mxu0 %v13661_v47  ;;  %v13751_v47 = vld [vmem:[%s18381_s3 + $0x7b4] ss:$20 sps:$4 sm:$0xff]  }
 0x3a3   :  { %7569 = vmatpush1.bf16.msra.mxu0 %v13659_v37  ;;  %v13746_v37 = vld [vmem:[%s18381_s3 + $0x7a8] ss:$20 sps:$4 sm:$0xff]  }
 0x3a4   :  { %7570 = vmatprep.subr.bf16.mxu0 %v13667_v48  ;;  %v13749_v48 = vld [vmem:[%s18381_s3 + $0x7b0] ss:$20 sps:$4 sm:$0xff]  }
 0x3a7   :  { %7571 = vmatpush1.bf16.msra.mxu0 %v13665_v44  ;;  %v13752_v44 = vld [vmem:[%s18381_s3 + $0x150] ss:$20 sps:$4 sm:$0xff]  }
 0x3a8   :  { %7572 = vmatprep.subr.bf16.mxu0 %v13673_v2  ;;  %v13807_v2 = vld [vmem:[%s18383_s5 + $0xc] ss:$28 sps:$4 sm:$0xff]  }
 0x3ab   :  { %7573 = vmatpush1.bf16.msra.mxu0 %v13671_v49  ;;  %v13753_v49 = vld [vmem:[%s18381_s3 + $0x10] ss:$20 sps:$4 sm:$0xff]  }
 0x3ac   :  { %7574 = vmatprep.subr.bf16.mxu0 %v13679_v50  ;;  %v13754_v50 = vld [vmem:[%s18381_s3 + $0x178] ss:$20 sps:$4 sm:$0xff]  }
 0x3af   :  { %7575 = vmatpush1.bf16.msra.mxu0 %v13677_v57  ;;  %v13805_v57 = vld [vmem:[%s18383_s5 + $0x8] ss:$28 sps:$4 sm:$0xff]  }
 0x3b0   :  { %7576 = vmatprep.subr.bf16.mxu0 %v13685_v58  ;;  %v13813_v58 = vld [vmem:[%s18383_s5 + $0x44] ss:$28 sps:$4 sm:$0xff]  }
 0x3b3   :  { %7577 = vmatpush1.bf16.msra.mxu0 %v13683_v61  ;;  %v13755_v61 = vld [vmem:[%s18381_s3 + $0x38] ss:$20 sps:$4 sm:$0xff]  }
 0x3b4   :  { %7578 = vmatprep.subr.bf16.mxu0 %v13691_v62  ;;  %v13756_v62 = vld [vmem:[%s18381_s3 + $0x1a0] ss:$20 sps:$4 sm:$0xff]  }
 0x3b7   :  { %7579 = vmatpush1.bf16.msra.mxu0 %v13689_v0  ;;  %v13811_v0 = vld [vmem:[%s18383_s5 + $0x40] ss:$28 sps:$4 sm:$0xff]  }
 0x3b8   :  { %7580 = vmatprep.subr.bf16.mxu0 %v13697_v1  ;;  %v13819_v1 = vld [vmem:[%s18383_s5 + $0x7c] ss:$28 sps:$4 sm:$0xff]  }
 0x3bb   :  { %7581 = vmatpush1.bf16.msra.mxu0 %v13695_v5  ;;  %v13758_v5 = vld [vmem:[%s18381_s3 + $0x1c8] ss:$20 sps:$4 sm:$0xff]  }
 0x3bc   :  { %7582 = vmatprep.subr.bf16.mxu0 %v13703_v6  ;;  %v13817_v6 = vld [vmem:[%s18383_s5 + $0x78] ss:$28 sps:$4 sm:$0xff]  }
 0x3bf   :  { %7583 = vmatpush1.bf16.msra.mxu0 %v13701_v8  ;;  %v13825_v8 = vld [vmem:[%s18383_s5 + $0xb4] ss:$28 sps:$4 sm:$0xff]  }
 0x3c0   :  { %7584 = vmatprep.subr.bf16.mxu0 %v13709_v10  ;;  %v13759_v10 = vld [vmem:[%s18381_s3 + $0x88] ss:$20 sps:$4 sm:$0xff]  }
 0x3c3   :  { %7585 = vmatpush1.bf16.msra.mxu0 %v13707_v11  ;;  %v13760_v11 = vld [vmem:[%s18381_s3 + $0x1f0] ss:$20 sps:$4 sm:$0xff]  }
 0x3c4   :  { %7586 = vmatprep.subr.bf16.mxu0 %v13715_v12  ;;  %v13823_v12 = vld [vmem:[%s18383_s5 + $0xb0] ss:$28 sps:$4 sm:$0xff]  }
 0x3c7   :  { %7587 = vmatpush1.bf16.msra.mxu0 %v13713_v63  ;;  %v13831_v63 = vld [vmem:[%s18383_s5 + $0xec] ss:$28 sps:$4 sm:$0xff]  }
 0x3c8   :  { %7588 = vmatprep.subr.bf16.mxu0 %v13721_v13  ;;  %v13761_v13 = vld [vmem:[%s18381_s3 + $0xb0] ss:$20 sps:$4 sm:$0xff]  }
 0x3cb   :  { %7589 = vmatpush1.bf16.msra.mxu0 %v13719_v15  ;;  %v13762_v15 = vld [vmem:[%s18381_s3 + $0x218] ss:$20 sps:$4 sm:$0xff]  }
 0x3cc   :  { %7590 = vmatprep.subr.bf16.mxu0 %v13727_v16  ;;  %v13829_v16 = vld [vmem:[%s18383_s5 + $0xe8] ss:$28 sps:$4 sm:$0xff]  }
 0x3cf   :  { %7591 = vmatpush1.bf16.msra.mxu0 %v13725_v17  ;;  %v13837_v17 = vld [vmem:[%s18383_s5 + $0x124] ss:$28 sps:$4 sm:$0xff]  }
 0x3d0   :  { %7592 = vmatprep.subr.bf16.mxu0 %v13733_v18  ;;  %v13763_v18 = vld [vmem:[%s18381_s3 + $0xd8] ss:$20 sps:$4 sm:$0xff]  }
 0x3d3   :  { %7593 = vmatpush1.bf16.msra.mxu0 %v13731_v19  ;;  %v13764_v19 = vld [vmem:[%s18381_s3 + $0x240] ss:$20 sps:$4 sm:$0xff]  }
 0x3d4   :  { %7594 = vmatprep.subr.bf16.mxu0 %v13739_v20  ;;  %v13835_v20 = vld [vmem:[%s18383_s5 + $0x120] ss:$28 sps:$4 sm:$0xff]  }
 0x3d7   :  { %7595 = vmatpush1.bf16.msra.mxu0 %v13737_v21  ;;  %v13843_v21 = vld [vmem:[%s18383_s5 + $0x15c] ss:$28 sps:$4 sm:$0xff]  }
 0x3d8   :  { %7607 = vmatprep.subr.bf16.mxu0 %v13745_v23  ;;  %v13765_v23 = vld [vmem:[%s18381_s3 + $0x100] ss:$20 sps:$4 sm:$0xff]  }
 0x3ed   :  { %v5359_v29 = vpop.f32.mrb[4].mxu0 }
 0x3ee   :  { %v12306_v30 = vadd.f32 %v5359_v29, %v852_v27  ;;  %v5361_v31 = vpop.f32.mrb[5].mxu0  ;;  %v13767_v29 = vld [vmem:[%s18381_s3 + $0x128] ss:$20 sps:$4 sm:$0xff]  }
 0x3ef   :  { %v12307_v32 = vadd.f32 %v5361_v31, %v856_v28  ;;  %v5363_v46 = vpop.f32.mrb[6].mxu0  ;;  %v13847_v31 = vld [vmem:[%s18383_s5 + $0x190] ss:$28 sps:$4 sm:$0xff]  }
 0x3f0   :  { %v12308_v33 = vadd.f32 %v5363_v46, %v852_v27  ;;  %v5365_v35 = vpop.f32.mrb[7].mxu0  ;;  %v5659_v14 = vmax.f32 %v12306_v30, 0.0  ;;  %v13841_v27 = vld [vmem:[%s18383_s5 + $0x158] ss:$28 sps:$4 sm:$0xff]   ;;  %v13768_v30 = vld [vmem:[%s18381_s3 + $0x3d0] ss:$20 sps:$4 sm:$0xff]  }
 0x3f1   :  { %v12309_v36 = vadd.f32 %v5365_v35, %v856_v28  ;;  %v5660_v38 = vmax.f32 %v12307_v32, 0.0  ;;  %v13849_v28 = vld [vmem:[%s18383_s5 + $0x194] ss:$28 sps:$4 sm:$0xff]   ;;  %v13855_v32 = vld [vmem:[%s18383_s5 + $0x1cc] ss:$28 sps:$4 sm:$0xff]  }
 0x3f2   :  { %v5666_v56 = vmax.f32 %v12308_v33, 0.0  ;;  %v13769_v46 = vld [vmem:[%s18381_s3 + $0x290] ss:$20 sps:$4 sm:$0xff]   ;;  %v13770_v33 = vld [vmem:[%s18381_s3 + $0x3f8] ss:$20 sps:$4 sm:$0xff]  }
 0x3f3   :  { %v5667_v40 = vmax.f32 %v12309_v36, 0.0  ;;  %v13853_v35 = vld [vmem:[%s18383_s5 + $0x1c8] ss:$28 sps:$4 sm:$0xff]  }
 0x3f4   :  { %v17132_v41 = vpack.c.bf16 %v5666_v56, %v5659_v14  ;;  %v13861_v36 = vld [vmem:[%s18383_s5 + $0x204] ss:$28 sps:$4 sm:$0xff]   ;;  %v13771_v14 = vld [vmem:[%s18381_s3 + $0x2b8] ss:$20 sps:$4 sm:$0xff]  }
 0x3f5   :  { %v17140_v45 = vpack.c.bf16 %v5667_v40, %v5660_v38  ;;  %v13772_v56 = vld [vmem:[%s18381_s3 + $0x420] ss:$20 sps:$4 sm:$0xff]   ;;  %v13867_v40 = vld [vmem:[%s18383_s5 + $0x23c] ss:$28 sps:$4 sm:$0xff]  }
 0x3f6   :  { %v13859_v38 = vld [vmem:[%s18383_s5 + $0x200] ss:$28 sps:$4 sm:$0xff]  }
 0x3f7   :  { %7424 = vmatprep.mubr.bf16.mxu1 %v17140_v45  ;;  %7596 = vmatprep.mubr.bf16.mxu0 %v17140_v45 }
 0x3f8   :  { %7425 = vmatmul.mubr.bf16.vlgmr.msra.gmra.mrb[32].mxu1 %v17132_v41  ;;  %7597 = vmatmul.mubr.bf16.vlgmr.msra.gmra.mrb[8].mxu0 %v17132_v41 }
 0x3f9   :  { %7436 = vmatpush1.bf16.msra.mxu1 %v13740_v34  ;;  %7608 = vmatpush1.bf16.msra.mxu0 %v13743_v42  ;;  %v13774_v34 = vld [vmem:[%s18381_s3 + $0x448] ss:$20 sps:$4 sm:$0xff]   ;;  %v13865_v42 = vld [vmem:[%s18383_s5 + $0x238] ss:$28 sps:$4 sm:$0xff]  }
 0x3fa   :  { %7437 = vmatprep.subr.bf16.mxu1 %v13748_v39  ;;  %7609 = vmatprep.subr.bf16.mxu0 %v13751_v47  ;;  %v13775_v39 = vld [vmem:[%s18381_s3 + $0x308] ss:$20 sps:$4 sm:$0xff]   ;;  %v13776_v47 = vld [vmem:[%s18381_s3 + $0x470] ss:$20 sps:$4 sm:$0xff]  }
 0x3fb   :  { %7467 = vmatprep.mubr.bf16.mxu1 %v14243_v22  ;;  %7639 = vmatprep.mubr.bf16.mxu0 %v14243_v22 }
 0x3fd   :  { %7438 = vmatpush1.bf16.msra.mxu1 %v13746_v37  ;;  %7610 = vmatpush1.bf16.msra.mxu0 %v13749_v48  ;;  %v13871_v37 = vld [vmem:[%s18383_s5 + $0x270] ss:$28 sps:$4 sm:$0xff]  }
 0x3fe   :  { %12069 = vmatprep.subr.bf16.mxu1 %v13752_v44  ;;  %9671 = vmatprep.subr.bf16.mxu0 %v13807_v2  ;;  %v13879_v48 = vld [vmem:[%s18383_s5 + $0x2ac] ss:$28 sps:$4 sm:$0xff]   ;;  %v13777_v44 = vld [vmem:[%s18381_s3 + $0x330] ss:$20 sps:$4 sm:$0xff]  }
 0x3ff   :  { %v13778_v2 = vld [vmem:[%s18381_s3 + $0x498] ss:$20 sps:$4 sm:$0xff]  }
 0x404   :  { %11606 = vmatmul.mubr.msk.bf16.vlgmr.msra.gmra.mrb[32].mxu1 %vm4461_vm0, %v16811_v24  ;;  %11607 = vmatmul.mubr.msk.bf16.vlgmr.msra.gmra.mrb[8].mxu0 %vm4461_vm0, %v16811_v24 }
 0x405   :  { %12070 = vmatpush3.bf16.msra.mxu1 %v13753_v49  ;;  %7682 = vmatprep.mubr.bf16.mxu1 %v16301_v53  ;;  %v13757_v53 = vld [vmem:[%s18381_s3 + $0x60] ss:$20 sps:$4 sm:$0xff]   ;;  %v13877_v49 = vld [vmem:[%s18383_s5 + $0x2a8] ss:$28 sps:$4 sm:$0xff]  }
 0x406   :  { %12071 = vmatprep.subr.bf16.mxu1 %v13754_v50  ;;  %9672 = vmatpush1.bf16.msra.mxu0 %v13805_v57  ;;  %v13885_v50 = vld [vmem:[%s18383_s5 + $0x2e4] ss:$28 sps:$4 sm:$0xff]   ;;  %v13779_v57 = vld [vmem:[%s18381_s3 + $0x358] ss:$20 sps:$4 sm:$0xff]  }
 0x407   :  { %9673 = vmatprep.subr.bf16.mxu0 %v13813_v58  ;;  %v13780_v58 = vld [vmem:[%s18381_s3 + $0x4c0] ss:$20 sps:$4 sm:$0xff]  }
 0x409   :  { %12072 = vmatpush3.bf16.msra.mxu1 %v13755_v61  ;;  %v13883_v61 = vld [vmem:[%s18383_s5 + $0x2e0] ss:$28 sps:$4 sm:$0xff]  }
 0x40a   :  { %12073 = vmatprep.subr.bf16.mxu1 %v13756_v62  ;;  %9674 = vmatpush1.bf16.msra.mxu0 %v13811_v0  ;;  %v13781_v62 = vld [vmem:[%s18381_s3 + $0x380] ss:$20 sps:$4 sm:$0xff]   ;;  %v13782_v0 = vld [vmem:[%s18381_s3 + $0x4e8] ss:$20 sps:$4 sm:$0xff]  }
 0x40b   :  { %9675 = vmatprep.subr.bf16.mxu0 %v13819_v1  ;;  %v13783_v1 = vld [vmem:[%s18381_s3 + $0x3a8] ss:$20 sps:$4 sm:$0xff]  }
 0x40d   :  { %12074 = vmatpush3.bf16.msra.mxu1 %v13757_v53  ;;  %v13784_v53 = vld [vmem:[%s18381_s3 + $0x650] ss:$20 sps:$4 sm:$0xff]  }
 0x40e   :  { %12075 = vmatprep.subr.bf16.mxu1 %v13758_v5  ;;  %9676 = vmatpush1.bf16.msra.mxu0 %v13817_v6  ;;  %v13785_v5 = vld [vmem:[%s18381_s3 + $0x510] ss:$20 sps:$4 sm:$0xff]   ;;  %v13786_v6 = vld [vmem:[%s18381_s3 + $0x678] ss:$20 sps:$4 sm:$0xff]  }
 0x40f   :  { %9677 = vmatprep.subr.bf16.mxu0 %v13825_v8  ;;  %v13787_v8 = vld [vmem:[%s18381_s3 + $0x538] ss:$20 sps:$4 sm:$0xff]  }
 0x411   :  { %12076 = vmatpush3.bf16.msra.mxu1 %v13759_v10  ;;  %v13788_v10 = vld [vmem:[%s18381_s3 + $0x6a0] ss:$20 sps:$4 sm:$0xff]  }
 0x412   :  { %12077 = vmatprep.subr.bf16.mxu1 %v13760_v11  ;;  %9678 = vmatpush1.bf16.msra.mxu0 %v13823_v12  ;;  %v13789_v11 = vld [vmem:[%s18381_s3 + $0x560] ss:$20 sps:$4 sm:$0xff]   ;;  %v13790_v12 = vld [vmem:[%s18381_s3 + $0x6c8] ss:$20 sps:$4 sm:$0xff]  }
 0x413   :  { %9679 = vmatprep.subr.bf16.mxu0 %v13831_v63  ;;  %v13792_v63 = vld [vmem:[%s18381_s3 + $0x6f0] ss:$20 sps:$4 sm:$0xff]  }
 0x415   :  { %12078 = vmatpush3.bf16.msra.mxu1 %v13761_v13  ;;  %v13794_v13 = vld [vmem:[%s18381_s3 + $0x718] ss:$20 sps:$4 sm:$0xff]  }
 0x416   :  { %12079 = vmatprep.subr.bf16.mxu1 %v13762_v15  ;;  %9680 = vmatpush1.bf16.msra.mxu0 %v13829_v16  ;;  %v13795_v15 = vld [vmem:[%s18381_s3 + $0x5d8] ss:$20 sps:$4 sm:$0xff]   ;;  %v13796_v16 = vld [vmem:[%s18381_s3 + $0x740] ss:$20 sps:$4 sm:$0xff]  }
 0x417   :  { %9681 = vmatprep.subr.bf16.mxu0 %v13837_v17  ;;  %v13797_v17 = vld [vmem:[%s18381_s3 + $0x600] ss:$20 sps:$4 sm:$0xff]  }
 0x419   :  { %12080 = vmatpush3.bf16.msra.mxu1 %v13763_v18  ;;  %v13891_v18 = vld [vmem:[%s18383_s5 + $0x31c] ss:$28 sps:$4 sm:$0xff]  }
 0x41a   :  { %12081 = vmatprep.subr.bf16.mxu1 %v13764_v19  ;;  %9682 = vmatpush1.bf16.msra.mxu0 %v13835_v20  ;;  %v13798_v19 = vld [vmem:[%s18381_s3 + $0x768] ss:$20 sps:$4 sm:$0xff]   ;;  %v13889_v20 = vld [vmem:[%s18383_s5 + $0x318] ss:$28 sps:$4 sm:$0xff]  }
 0x41b   :  { %9683 = vmatprep.subr.bf16.mxu0 %v13843_v21  ;;  %v13897_v21 = vld [vmem:[%s18383_s5 + $0x354] ss:$28 sps:$4 sm:$0xff]  }
 0x41d   :  { %12082 = vmatpush3.bf16.msra.mxu1 %v13765_v23  ;;  %v13799_v23 = vld [vmem:[%s18381_s3 + $0x628] ss:$20 sps:$4 sm:$0xff]  }
 0x41e   :  { %12083 = vmatprep.subr.bf16.mxu1 %v13766_v26  ;;  %9684 = vmatpush1.bf16.msra.mxu0 %v13841_v27  ;;  %v13895_v26 = vld [vmem:[%s18383_s5 + $0x350] ss:$28 sps:$4 sm:$0xff]  }
 0x41f   :  { %9685 = vmatprep.subr.bf16.mxu0 %v13849_v28  ;;  %v13903_v27 = vld [vmem:[%s18383_s5 + $0x38c] ss:$28 sps:$4 sm:$0xff]   ;;  %v13800_v28 = vld [vmem:[%s18381_s3 + $0x790] ss:$20 sps:$4 sm:$0xff]  }
 0x421   :  { %12084 = vmatpush3.bf16.msra.mxu1 %v13767_v29  ;;  %v13801_v29 = vld [vmem:[%s18381_s3 + $0x7b8] ss:$20 sps:$4 sm:$0xff]  }
 0x422   :  { %12091 = vmatprep.subr.bf16.mxu1 %v13768_v30  ;;  %9686 = vmatpush1.bf16.msra.mxu0 %v13847_v31  ;;  %v13804_v30 = vld [vmem:[%s18383_s5 + $0x4] ss:$28 sps:$4 sm:$0xff]  }
 0x423   :  { %9687 = vmatprep.subr.bf16.mxu0 %v13855_v32  ;;  %v13802_v31 = vld [vmem:[%s18383_s5] ss:$28 sps:$4 sm:$0xff]   ;;  %v13808_v32 = vld [vmem:[%s18383_s5 + $0x38] ss:$28 sps:$4 sm:$0xff]  }
 0x424   :  { %7683 = vmatmul.mubr.bf16.vlgmr.msra.gmra.mrb[36].mxu1 %v16297_v51  ;;  %v13773_v51 = vld [vmem:[%s18381_s3 + $0x2e0] ss:$20 sps:$4 sm:$0xff]  }
 0x425   :  { %12092 = vmatpush3.bf16.msra.mxu1 %v13769_v46  ;;  %7723 = vmatprep.mubr.bf16.mxu1 %v16303_v55  ;;  %v13873_v55 = vld [vmem:[%s18383_s5 + $0x274] ss:$28 sps:$4 sm:$0xff]  }
 0x426   :  { %12093 = vmatprep.subr.bf16.mxu1 %v13770_v33  ;;  %9688 = vmatpush1.bf16.msra.mxu0 %v13853_v35  ;;  %v13816_v46 = vld [vmem:[%s18383_s5 + $0x74] ss:$28 sps:$4 sm:$0xff]   ;;  %v13820_v35 = vld [vmem:[%s18383_s5 + $0xa8] ss:$28 sps:$4 sm:$0xff]  }
 0x427   :  { %9689 = vmatprep.subr.bf16.mxu0 %v13861_v36  ;;  %v13814_v33 = vld [vmem:[%s18383_s5 + $0x70] ss:$28 sps:$4 sm:$0xff]   ;;  %v13828_v36 = vld [vmem:[%s18383_s5 + $0xe4] ss:$28 sps:$4 sm:$0xff]  }
 0x429   :  { %12094 = vmatpush3.bf16.msra.mxu1 %v13771_v14  ;;  %v13826_v14 = vld [vmem:[%s18383_s5 + $0xe0] ss:$28 sps:$4 sm:$0xff]  }
 0x42a   :  { %12095 = vmatprep.subr.bf16.mxu1 %v13772_v56  ;;  %9690 = vmatpush1.bf16.msra.mxu0 %v13859_v38  ;;  %v13834_v56 = vld [vmem:[%s18383_s5 + $0x11c] ss:$28 sps:$4 sm:$0xff]  }
 0x42b   :  { %9691 = vmatprep.subr.bf16.mxu0 %v13867_v40  ;;  %v13832_v38 = vld [vmem:[%s18383_s5 + $0x118] ss:$28 sps:$4 sm:$0xff]  }
 0x42c   :  { %v13840_v40 = vld [vmem:[%s18383_s5 + $0x154] ss:$28 sps:$4 sm:$0xff]  }
 0x42d   :  { %12096 = vmatpush3.bf16.msra.mxu1 %v13773_v51  ;;  %v13838_v51 = vld [vmem:[%s18383_s5 + $0x150] ss:$28 sps:$4 sm:$0xff]  }
 0x42e   :  { %12097 = vmatprep.subr.bf16.mxu1 %v13774_v34  ;;  %9692 = vmatpush1.bf16.msra.mxu0 %v13865_v42  ;;  %v13846_v34 = vld [vmem:[%s18383_s5 + $0x18c] ss:$28 sps:$4 sm:$0xff]  }
 0x42f   :  { %9693 = vmatprep.subr.bf16.mxu0 %v13873_v55  ;;  %v13844_v42 = vld [vmem:[%s18383_s5 + $0x188] ss:$28 sps:$4 sm:$0xff]  }
 0x430   :  { %v13852_v55 = vld [vmem:[%s18383_s5 + $0x1c4] ss:$28 sps:$4 sm:$0xff]  }
 0x431   :  { %12098 = vmatpush3.bf16.msra.mxu1 %v13775_v39  ;;  %v13850_v39 = vld [vmem:[%s18383_s5 + $0x1c0] ss:$28 sps:$4 sm:$0xff]  }
 0x432   :  { %12099 = vmatprep.subr.bf16.mxu1 %v13776_v47  ;;  %9694 = vmatpush1.bf16.msra.mxu0 %v13871_v37  ;;  %v13858_v47 = vld [vmem:[%s18383_s5 + $0x1fc] ss:$28 sps:$4 sm:$0xff]  }
 0x433   :  { %9695 = vmatprep.subr.bf16.mxu0 %v13879_v48  ;;  %v13856_v37 = vld [vmem:[%s18383_s5 + $0x1f8] ss:$28 sps:$4 sm:$0xff]  }
 0x434   :  { %v13864_v48 = vld [vmem:[%s18383_s5 + $0x234] ss:$28 sps:$4 sm:$0xff]  }
 0x435   :  { %12100 = vmatpush3.bf16.msra.mxu1 %v13777_v44  ;;  %v13862_v44 = vld [vmem:[%s18383_s5 + $0x230] ss:$28 sps:$4 sm:$0xff]  }
 0x436   :  { %12101 = vmatprep.subr.bf16.mxu1 %v13778_v2  ;;  %9696 = vmatpush1.bf16.msra.mxu0 %v13877_v49  ;;  %v13870_v2 = vld [vmem:[%s18383_s5 + $0x26c] ss:$28 sps:$4 sm:$0xff]  }
 0x437   :  { %9697 = vmatprep.subr.bf16.mxu0 %v13885_v50  ;;  %v13868_v49 = vld [vmem:[%s18383_s5 + $0x268] ss:$28 sps:$4 sm:$0xff]  }
 0x438   :  { %v13876_v50 = vld [vmem:[%s18383_s5 + $0x2a4] ss:$28 sps:$4 sm:$0xff]  }
 0x439   :  { %12102 = vmatpush3.bf16.msra.mxu1 %v13779_v57  ;;  %v13874_v57 = vld [vmem:[%s18383_s5 + $0x2a0] ss:$28 sps:$4 sm:$0xff]  }
 0x43a   :  { %12103 = vmatprep.subr.bf16.mxu1 %v13780_v58  ;;  %9698 = vmatpush1.bf16.msra.mxu0 %v13883_v61  ;;  %v13882_v58 = vld [vmem:[%s18383_s5 + $0x2dc] ss:$28 sps:$4 sm:$0xff]  }
 0x43b   :  { %9699 = vmatprep.subr.bf16.mxu0 %v13891_v18  ;;  %v13880_v61 = vld [vmem:[%s18383_s5 + $0x2d8] ss:$28 sps:$4 sm:$0xff]  }
 0x43d   :  { %12104 = vmatpush3.bf16.msra.mxu1 %v13781_v62  ;;  %v13888_v62 = vld [vmem:[%s18383_s5 + $0x314] ss:$28 sps:$4 sm:$0xff]  }
 0x43e   :  { %12105 = vmatprep.subr.bf16.mxu1 %v13782_v0  ;;  %9700 = vmatpush1.bf16.msra.mxu0 %v13889_v20  ;;  %v13886_v0 = vld [vmem:[%s18383_s5 + $0x310] ss:$28 sps:$4 sm:$0xff]  }
 0x43f   :  { %9701 = vmatprep.subr.bf16.mxu0 %v13897_v21 }
 0x441   :  { %12106 = vmatpush3.bf16.msra.mxu1 %v13783_v1  ;;  %v13894_v1 = vld [vmem:[%s18383_s5 + $0x34c] ss:$28 sps:$4 sm:$0xff]  }
 0x442   :  { %12113 = vmatprep.subr.bf16.mxu1 %v13784_v53  ;;  %9702 = vmatpush1.bf16.msra.mxu0 %v13895_v26  ;;  %v13892_v53 = vld [vmem:[%s18383_s5 + $0x348] ss:$28 sps:$4 sm:$0xff]  }
 0x443   :  { %9714 = vmatprep.subr.bf16.mxu0 %v13903_v27 }
 0x444   :  { %7724 = vmatmul.mubr.bf16.vlgmr.msra.gmra.mrb[40].mxu1 %v16299_v52  ;;  %v13791_v52 = vld [vmem:[%s18381_s3 + $0x588] ss:$20 sps:$4 sm:$0xff]  }
 0x445   :  { %12114 = vmatpush3.bf16.msra.mxu1 %v13785_v5  ;;  %7764 = vmatprep.mubr.bf16.mxu1 %v17140_v45  ;;  %v13793_v45 = vld [vmem:[%s18381_s3 + $0x5b0] ss:$20 sps:$4 sm:$0xff]  }
 0x446   :  { %12115 = vmatprep.subr.bf16.mxu1 %v13786_v6  ;;  %v13900_v5 = vld [vmem:[%s18383_s5 + $0x384] ss:$28 sps:$4 sm:$0xff]  }
 0x447   :  { %v17527_v6 = vld [vmem:[%s18384_s4] sm:$0x1f] }
 0x449   :  { %12116 = vmatpush3.bf16.msra.mxu1 %v13787_v8  ;;  %v5981_v8 = vrot.slane %v17527_v6, %v16228_v59 }
 0x44a   :  { %12117 = vmatprep.subr.bf16.mxu1 %v13788_v10  ;;  %v5989_v10 = vrot.slane %v17527_v6, %v16231_v60 }
 0x44d   :  { %12118 = vmatpush3.bf16.msra.mxu1 %v13789_v11  ;;  %v5985_v11 = vrot.slane %v17527_v6, %v16251_v3 }
 0x44e   :  { %12119 = vmatprep.subr.bf16.mxu1 %v13790_v12  ;;  %v5993_v12 = vrot.slane %v17527_v6, %v16254_v4 }
 0x451   :  { %12120 = vmatpush3.bf16.msra.mxu1 %v13791_v52 }
 0x452   :  { %12121 = vmatprep.subr.bf16.mxu1 %v13792_v63 }
 0x455   :  { %12122 = vmatpush3.bf16.msra.mxu1 %v13793_v45 }
 0x456   :  { %12123 = vmatprep.subr.bf16.mxu1 %v13794_v13 }
 0x459   :  { %12124 = vmatpush3.bf16.msra.mxu1 %v13795_v15 }
 0x45a   :  { %12125 = vmatprep.subr.bf16.mxu1 %v13796_v16 }
 0x45d   :  { %12126 = vmatpush3.bf16.msra.mxu1 %v13797_v17 }
 0x45e   :  { %12127 = vmatprep.subr.bf16.mxu1 %v13798_v19 }
 0x461   :  { %12128 = vmatpush3.bf16.msra.mxu1 %v13799_v23 }
 0x462   :  { %12266 = vmatprep.subr.bf16.mxu1 %v14244_v43 }
 0x464   :  { %7765 = vmatmul.mubr.bf16.vlgmr.msra.gmra.mrb[44].mxu1 %v17132_v41  ;;  %v13810_v41 = vld [vmem:[%s18383_s5 + $0x3c] ss:$28 sps:$4 sm:$0xff]  }
 0x465   :  { %12267 = vmatpush3.bf16.msra.mxu1 %v13800_v28  ;;  %12270 = vmatprep.mubr.msk.bf16.mxu1 %vm14245_vm1, %v14244_v43 }
 0x466   :  { %12268 = vmatprep.subr.bf16.mxu1 %v14244_v43 }
 0x469   :  { %12269 = vmatpush3.bf16.msra.mxu1 %v13801_v29 }
 0x46a   :  { %9542 = vmatprep.subr.bf16.mxu1 %v13804_v30 }
 0x46c   :  { %12271 = vmatmul.mubr.msk.bf16.vlgmr.msra.gmra.mrb[48].mxu1 %vm4461_vm0, %v16811_v24  ;;  %v13822_v24 = vld [vmem:[%s18383_s5 + $0xac] ss:$28 sps:$4 sm:$0xff]  }
 0x46d   :  { %9543 = vmatpush1.bf16.msra.mxu1 %v13802_v31 }
 0x46e   :  { %9544 = vmatprep.subr.bf16.mxu1 %v13810_v41 }
 0x471   :  { %9545 = vmatpush1.bf16.msra.mxu1 %v13808_v32 }
 0x472   :  { %9546 = vmatprep.subr.bf16.mxu1 %v13816_v46 }
 0x475   :  { %9547 = vmatpush1.bf16.msra.mxu1 %v13814_v33 }
 0x476   :  { %9548 = vmatprep.subr.bf16.mxu1 %v13822_v24 }
 0x479   :  { %9549 = vmatpush1.bf16.msra.mxu1 %v13820_v35 }
 0x47a   :  { %9550 = vmatprep.subr.bf16.mxu1 %v13828_v36 }
 0x47d   :  { %9551 = vmatpush1.bf16.msra.mxu1 %v13826_v14 }
 0x47e   :  { %9552 = vmatprep.subr.bf16.mxu1 %v13834_v56 }
 0x481   :  { %9553 = vmatpush1.bf16.msra.mxu1 %v13832_v38 }
 0x482   :  { %9554 = vmatprep.subr.bf16.mxu1 %v13840_v40  ;;  %v13898_v40 = vld [vmem:[%s18383_s5 + $0x380] ss:$28 sps:$4 sm:$0xff]  }
 0x485   :  { %9555 = vmatpush1.bf16.msra.mxu1 %v13838_v51  ;;  %v13901_v51 = vld [vmem:[%s18383_s5 + $0x388] ss:$28 sps:$4 sm:$0xff]  }
 0x486   :  { %9556 = vmatprep.subr.bf16.mxu1 %v13846_v34  ;;  %v13906_v34 = vld [vmem:[%s18383_s5 + $0x3bc] ss:$28 sps:$4 sm:$0xff]  }
 0x489   :  { %9557 = vmatpush1.bf16.msra.mxu1 %v13844_v42  ;;  %v13909_v42 = vld [vmem:[%s18383_s5 + $0x3c4] ss:$28 sps:$4 sm:$0xff]  }
 0x48a   :  { %9558 = vmatprep.subr.bf16.mxu1 %v13852_v55  ;;  %v13904_v55 = vld [vmem:[%s18383_s5 + $0x3b8] ss:$28 sps:$4 sm:$0xff]  }
 0x48d   :  { %9559 = vmatpush1.bf16.msra.mxu1 %v13850_v39  ;;  %v13907_v39 = vld [vmem:[%s18383_s5 + $0x3c0] ss:$28 sps:$4 sm:$0xff]  }
 0x48e   :  { %9560 = vmatprep.subr.bf16.mxu1 %v13858_v47  ;;  %v13912_v47 = vld [vmem:[%s18383_s5 + $0x3f4] ss:$28 sps:$4 sm:$0xff]  }
 0x491   :  { %9561 = vmatpush1.bf16.msra.mxu1 %v13856_v37  ;;  %v13915_v37 = vld [vmem:[%s18383_s5 + $0x3fc] ss:$28 sps:$4 sm:$0xff]  }
 0x492   :  { %9562 = vmatprep.subr.bf16.mxu1 %v13864_v48  ;;  %v13910_v48 = vld [vmem:[%s18383_s5 + $0x3f0] ss:$28 sps:$4 sm:$0xff]  }
 0x495   :  { %9563 = vmatpush1.bf16.msra.mxu1 %v13862_v44  ;;  %v13913_v44 = vld [vmem:[%s18383_s5 + $0x3f8] ss:$28 sps:$4 sm:$0xff]  }
 0x496   :  { %9564 = vmatprep.subr.bf16.mxu1 %v13870_v2  ;;  %v13918_v2 = vld [vmem:[%s18383_s5 + $0x42c] ss:$28 sps:$4 sm:$0xff]  }
 0x499   :  { %9565 = vmatpush1.bf16.msra.mxu1 %v13868_v49  ;;  %v13921_v49 = vld [vmem:[%s18383_s5 + $0x434] ss:$28 sps:$4 sm:$0xff]  }
 0x49a   :  { %9566 = vmatprep.subr.bf16.mxu1 %v13876_v50  ;;  %v13916_v50 = vld [vmem:[%s18383_s5 + $0x428] ss:$28 sps:$4 sm:$0xff]  }
 0x49d   :  { %9567 = vmatpush1.bf16.msra.mxu1 %v13874_v57  ;;  %v13919_v57 = vld [vmem:[%s18383_s5 + $0x430] ss:$28 sps:$4 sm:$0xff]  }
 0x49e   :  { %9568 = vmatprep.subr.bf16.mxu1 %v13882_v58  ;;  %v13924_v58 = vld [vmem:[%s18383_s5 + $0x464] ss:$28 sps:$4 sm:$0xff]  }
 0x4a1   :  { %9569 = vmatpush1.bf16.msra.mxu1 %v13880_v61  ;;  %v13927_v61 = vld [vmem:[%s18383_s5 + $0x46c] ss:$28 sps:$4 sm:$0xff]  }
 0x4a2   :  { %9570 = vmatprep.subr.bf16.mxu1 %v13888_v62  ;;  %v13922_v62 = vld [vmem:[%s18383_s5 + $0x460] ss:$28 sps:$4 sm:$0xff]  }
 0x4a5   :  { %9571 = vmatpush1.bf16.msra.mxu1 %v13886_v0  ;;  %v13925_v0 = vld [vmem:[%s18383_s5 + $0x468] ss:$28 sps:$4 sm:$0xff]  }
 0x4a6   :  { %9572 = vmatprep.subr.bf16.mxu1 %v13894_v1  ;;  %v13930_v1 = vld [vmem:[%s18383_s5 + $0x49c] ss:$28 sps:$4 sm:$0xff]  }
 0x4a9   :  { %9573 = vmatpush1.bf16.msra.mxu1 %v13892_v53  ;;  %v13933_v53 = vld [vmem:[%s18383_s5 + $0x4a4] ss:$28 sps:$4 sm:$0xff]  }
 0x4aa   :  { %9585 = vmatprep.subr.bf16.mxu1 %v13900_v5  ;;  %v13928_v5 = vld [vmem:[%s18383_s5 + $0x498] ss:$28 sps:$4 sm:$0xff]  }
 0x4d7   :  { %v7469_v52 = vpop.f32.mrb[32].mxu1  ;;  %v7641_v63 = vpop.f32.mrb[8].mxu0 }
 0x4d8   :  { %v12310_v45 = vadd.f32 %v7469_v52, %v5981_v8  ;;  %v12314_v13 = vadd.f32 %v7641_v63, %v5989_v10  ;;  %v7471_v15 = vpop.f32.mrb[33].mxu1  ;;  %v7643_v16 = vpop.f32.mrb[9].mxu0  ;;  %v13934_v52 = vld [vmem:[%s18383_s5 + $0x4d0] ss:$28 sps:$4 sm:$0xff]   ;;  %v13937_v63 = vld [vmem:[%s18383_s5 + $0x4d8] ss:$28 sps:$4 sm:$0xff]  }
 0x4d9   :  { %v12311_v17 = vadd.f32 %v7471_v15, %v5985_v11  ;;  %v12315_v18 = vadd.f32 %v7643_v16, %v5993_v12  ;;  %v7473_v19 = vpop.f32.mrb[34].mxu1  ;;  %v7645_v20 = vpop.f32.mrb[10].mxu0  ;;  %v13945_v15 = vld [vmem:[%s18383_s5 + $0x514] ss:$28 sps:$4 sm:$0xff]  }
 0x4da   :  { %v12312_v21 = vadd.f32 %v7473_v19, %v5981_v8  ;;  %v12316_v23 = vadd.f32 %v7645_v20, %v5989_v10  ;;  %v7475_v26 = vpop.f32.mrb[35].mxu1  ;;  %v7647_v27 = vpop.f32.mrb[11].mxu0  ;;  %v7814_v30 = vmax.f32 %v12310_v45, 0.0  ;;  %v7816_v31 = vmax.f32 %v12314_v13, 0.0  ;;  %v13931_v8 = vld [vmem:[%s18383_s5 + $0x4a0] ss:$28 sps:$4 sm:$0xff]  }
 0x4db   :  { %v12313_v28 = vadd.f32 %v7475_v26, %v5985_v11  ;;  %v12317_v29 = vadd.f32 %v7647_v27, %v5993_v12  ;;  %v7815_v46 = vmax.f32 %v12311_v17, 0.0  ;;  %v7817_v33 = vmax.f32 %v12315_v18, 0.0  ;;  %v13936_v10 = vld [vmem:[%s18383_s5 + $0x4d4] ss:$28 sps:$4 sm:$0xff]   ;;  %v13939_v11 = vld [vmem:[%s18383_s5 + $0x4dc] ss:$28 sps:$4 sm:$0xff]  }
 0x4dc   :  { %v7819_v41 = vmax.f32 %v12312_v21, 0.0  ;;  %v7821_v32 = vmax.f32 %v12316_v23, 0.0  ;;  %v13942_v13 = vld [vmem:[%s18383_s5 + $0x50c] ss:$28 sps:$4 sm:$0xff]   ;;  %v13948_v23 = vld [vmem:[%s18383_s5 + $0x544] ss:$28 sps:$4 sm:$0xff]  }
 0x4dd   :  { %v7820_v24 = vmax.f32 %v12313_v28, 0.0  ;;  %v7822_v35 = vmax.f32 %v12317_v29, 0.0  ;;  %v13940_v20 = vld [vmem:[%s18383_s5 + $0x508] ss:$28 sps:$4 sm:$0xff]   ;;  %v13943_v21 = vld [vmem:[%s18383_s5 + $0x510] ss:$28 sps:$4 sm:$0xff]  }
 0x4de   :  { %v17537_v36 = vpack.c.bf16 %v7819_v41, %v7814_v30  ;;  %v17539_v14 = vpack.c.bf16 %v7821_v32, %v7816_v31  ;;  %v13951_v26 = vld [vmem:[%s18383_s5 + $0x54c] ss:$28 sps:$4 sm:$0xff]   ;;  %v13946_v27 = vld [vmem:[%s18383_s5 + $0x540] ss:$28 sps:$4 sm:$0xff]   ;;  %v13952_v31 = vld [vmem:[%s18383_s5 + $0x578] ss:$28 sps:$4 sm:$0xff]  }
 0x4df   :  { %v17541_v56 = vpack.c.bf16 %v7820_v24, %v7815_v46  ;;  %v17543_v38 = vpack.c.bf16 %v7822_v35, %v7817_v33  ;;  %v13949_v28 = vld [vmem:[%s18383_s5 + $0x548] ss:$28 sps:$4 sm:$0xff]   ;;  %v13954_v29 = vld [vmem:[%s18383_s5 + $0x57c] ss:$28 sps:$4 sm:$0xff]   ;;  %v13960_v32 = vld [vmem:[%s18383_s5 + $0x5b4] ss:$28 sps:$4 sm:$0xff]  }
 0x4e0   :  { %v13957_v30 = vld [vmem:[%s18383_s5 + $0x584] ss:$28 sps:$4 sm:$0xff]   ;;  %v13963_v46 = vld [vmem:[%s18383_s5 + $0x5bc] ss:$28 sps:$4 sm:$0xff]   ;;  %v13958_v33 = vld [vmem:[%s18383_s5 + $0x5b0] ss:$28 sps:$4 sm:$0xff]  }
 0x4e1   :  { %9574 = vmatprep.mubr.bf16.mxu1 %v17541_v56  ;;  %9703 = vmatprep.mubr.bf16.mxu0 %v17541_v56  ;;  %v13955_v41 = vld [vmem:[%s18383_s5 + $0x580] ss:$28 sps:$4 sm:$0xff]   ;;  %v13961_v24 = vld [vmem:[%s18383_s5 + $0x5b8] ss:$28 sps:$4 sm:$0xff]   ;;  %v13966_v35 = vld [vmem:[%s18383_s5 + $0x5ec] ss:$28 sps:$4 sm:$0xff]  }
 0x4e2   :  { %9575 = vmatmul.mubr.bf16.vlgmr.msra.gmra.mrb[52].mxu1 %v17537_v36  ;;  %9704 = vmatmul.mubr.bf16.vlgmr.msra.gmra.mrb[12].mxu0 %v17537_v36 }
 0x4e3   :  { %9586 = vmatpush1.bf16.msra.mxu1 %v13898_v40  ;;  %9715 = vmatpush1.bf16.msra.mxu0 %v13901_v51  ;;  %v13969_v40 = vld [vmem:[%s18383_s5 + $0x5f4] ss:$28 sps:$4 sm:$0xff]   ;;  %v13964_v51 = vld [vmem:[%s18383_s5 + $0x5e8] ss:$28 sps:$4 sm:$0xff]  }
 0x4e4   :  { %9617 = vmatprep.mubr.bf16.mxu1 %v17543_v38  ;;  %9746 = vmatprep.mubr.bf16.mxu0 %v17543_v38 }
 0x4e5   :  { %9587 = vmatprep.subr.bf16.mxu1 %v13906_v34  ;;  %9716 = vmatprep.subr.bf16.mxu0 %v13909_v42  ;;  %v13967_v34 = vld [vmem:[%s18383_s5 + $0x5f0] ss:$28 sps:$4 sm:$0xff]   ;;  %v13972_v42 = vld [vmem:[%s18383_s5 + $0x624] ss:$28 sps:$4 sm:$0xff]  }
 0x4e7   :  { %9588 = vmatpush1.bf16.msra.mxu1 %v13904_v55  ;;  %9717 = vmatpush1.bf16.msra.mxu0 %v13907_v39  ;;  %v13975_v55 = vld [vmem:[%s18383_s5 + $0x62c] ss:$28 sps:$4 sm:$0xff]   ;;  %v13970_v39 = vld [vmem:[%s18383_s5 + $0x620] ss:$28 sps:$4 sm:$0xff]  }
 0x4e8   :  { %9589 = vmatprep.subr.bf16.mxu1 %v13912_v47  ;;  %9718 = vmatprep.subr.bf16.mxu0 %v13915_v37  ;;  %v13973_v47 = vld [vmem:[%s18383_s5 + $0x628] ss:$28 sps:$4 sm:$0xff]   ;;  %v13978_v37 = vld [vmem:[%s18383_s5 + $0x65c] ss:$28 sps:$4 sm:$0xff]  }
 0x4eb   :  { %9590 = vmatpush1.bf16.msra.mxu1 %v13910_v48  ;;  %9719 = vmatpush1.bf16.msra.mxu0 %v13913_v44  ;;  %v13981_v48 = vld [vmem:[%s18383_s5 + $0x664] ss:$28 sps:$4 sm:$0xff]   ;;  %v13976_v44 = vld [vmem:[%s18383_s5 + $0x658] ss:$28 sps:$4 sm:$0xff]  }
 0x4ec   :  { %9591 = vmatprep.subr.bf16.mxu1 %v13918_v2  ;;  %9720 = vmatprep.subr.bf16.mxu0 %v13921_v49  ;;  %v13979_v2 = vld [vmem:[%s18383_s5 + $0x660] ss:$28 sps:$4 sm:$0xff]   ;;  %v13984_v49 = vld [vmem:[%s18383_s5 + $0x694] ss:$28 sps:$4 sm:$0xff]  }
 0x4ef   :  { %9592 = vmatpush1.bf16.msra.mxu1 %v13916_v50  ;;  %9721 = vmatpush1.bf16.msra.mxu0 %v13919_v57  ;;  %v13987_v50 = vld [vmem:[%s18383_s5 + $0x69c] ss:$28 sps:$4 sm:$0xff]   ;;  %v5997_v57 = vrot.slane %v17527_v6, %v17123_v25  ;;  %v13993_v6 = vld [vmem:[%s18383_s5 + $0x6d4] ss:$28 sps:$4 sm:$0xff]  }
 0x4f0   :  { %9593 = vmatprep.subr.bf16.mxu1 %v13924_v58  ;;  %9722 = vmatprep.subr.bf16.mxu0 %v13927_v61  ;;  %v13982_v61 = vld [vmem:[%s18383_s5 + $0x690] ss:$28 sps:$4 sm:$0xff]  }
 0x4f3   :  { %9594 = vmatpush1.bf16.msra.mxu1 %v13922_v62  ;;  %9723 = vmatpush1.bf16.msra.mxu0 %v13925_v0  ;;  %v13985_v62 = vld [vmem:[%s18383_s5 + $0x698] ss:$28 sps:$4 sm:$0xff]  }
 0x4f4   :  { %9595 = vmatprep.subr.bf16.mxu1 %v13930_v1  ;;  %9724 = vmatprep.subr.bf16.mxu0 %v13933_v53  ;;  %v13990_v1 = vld [vmem:[%s18383_s5 + $0x6cc] ss:$28 sps:$4 sm:$0xff]  }
 0x4f7   :  { %v12085_v12 = vpop.f32.mrb[36].mxu1  ;;  %9596 = vmatpush1.bf16.msra.mxu1 %v13928_v5  ;;  %9725 = vmatpush1.bf16.msra.mxu0 %v13931_v8 }
 0x4f8   :  { %v12086_v45 = vpop.f32.mrb[37].mxu1  ;;  %9597 = vmatprep.subr.bf16.mxu1 %v13936_v10  ;;  %9726 = vmatprep.subr.bf16.mxu0 %v13939_v11 }
 0x4f9   :  { %v17635_v16 = vadd.f32 %v12086_v45, %v12085_v12  ;;  %v12088_v17 = vpop.f32.mrb[38].mxu1  ;;  %v13991_v45 = vld [vmem:[%s18383_s5 + $0x6d0] ss:$28 sps:$4 sm:$0xff]  }
 0x4fa   :  { %v12089_v18 = vpop.f32.mrb[39].mxu1 }
 0x4fb   :  { %v17637_v19 = vadd.f32 %v12089_v18, %v12088_v17  ;;  %9598 = vmatpush1.bf16.msra.mxu1 %v13934_v52  ;;  %9727 = vmatpush1.bf16.msra.mxu0 %v13937_v63  ;;  %v7685_v53 = vadd.f32 %v17635_v16, %v5997_v57  ;;  %v13988_v63 = vld [vmem:[%s18383_s5 + $0x6c8] ss:$28 sps:$4 sm:$0xff]   ;;  %v13994_v17 = vld [vmem:[%s18383_s5 + $0x700] ss:$28 sps:$4 sm:$0xff]  }
 0x4fc   :  { %9599 = vmatprep.subr.bf16.mxu1 %v13942_v13  ;;  %9728 = vmatprep.subr.bf16.mxu0 %v13945_v15  ;;  %v13996_v13 = vld [vmem:[%s18383_s5 + $0x704] ss:$28 sps:$4 sm:$0xff]   ;;  %v13999_v15 = vld [vmem:[%s18383_s5 + $0x70c] ss:$28 sps:$4 sm:$0xff]  }
 0x4fd   :  { %v7688_v11 = vadd.f32 %v17637_v19, %v5997_v57  ;;  %v13997_v18 = vld [vmem:[%s18383_s5 + $0x708] ss:$28 sps:$4 sm:$0xff]   ;;  %v14002_v19 = vld [vmem:[%s18383_s5 + $0x73c] ss:$28 sps:$4 sm:$0xff]  }
 0x4ff   :  { %9600 = vmatpush1.bf16.msra.mxu1 %v13940_v20  ;;  %9729 = vmatpush1.bf16.msra.mxu0 %v13943_v21  ;;  %v14005_v20 = vld [vmem:[%s18383_s5 + $0x744] ss:$28 sps:$4 sm:$0xff]   ;;  %v14000_v21 = vld [vmem:[%s18383_s5 + $0x738] ss:$28 sps:$4 sm:$0xff]  }
 0x500   :  { %9601 = vmatprep.subr.bf16.mxu1 %v13948_v23  ;;  %9730 = vmatprep.subr.bf16.mxu0 %v13951_v26  ;;  %v14003_v23 = vld [vmem:[%s18383_s5 + $0x740] ss:$28 sps:$4 sm:$0xff]   ;;  %v14008_v26 = vld [vmem:[%s18383_s5 + $0x774] ss:$28 sps:$4 sm:$0xff]  }
 0x503   :  { %9602 = vmatpush1.bf16.msra.mxu1 %v13946_v27  ;;  %9731 = vmatpush1.bf16.msra.mxu0 %v13949_v28  ;;  %v14011_v27 = vld [vmem:[%s18383_s5 + $0x77c] ss:$28 sps:$4 sm:$0xff]   ;;  %v14006_v28 = vld [vmem:[%s18383_s5 + $0x770] ss:$28 sps:$4 sm:$0xff]  }
 0x504   :  { %9603 = vmatprep.subr.bf16.mxu1 %v13954_v29  ;;  %9732 = vmatprep.subr.bf16.mxu0 %v13957_v30  ;;  %v14009_v29 = vld [vmem:[%s18383_s5 + $0x778] ss:$28 sps:$4 sm:$0xff]   ;;  %v14014_v30 = vld [vmem:[%s18383_s5 + $0x7ac] ss:$28 sps:$4 sm:$0xff]  }
 0x507   :  { %9604 = vmatpush1.bf16.msra.mxu1 %v13952_v31  ;;  %9733 = vmatpush1.bf16.msra.mxu0 %v13955_v41  ;;  %v14017_v31 = vld [vmem:[%s18383_s5 + $0x7b4] ss:$28 sps:$4 sm:$0xff]   ;;  %v14012_v41 = vld [vmem:[%s18383_s5 + $0x7a8] ss:$28 sps:$4 sm:$0xff]  }
 0x508   :  { %9605 = vmatprep.subr.bf16.mxu1 %v13960_v32  ;;  %9734 = vmatprep.subr.bf16.mxu0 %v13963_v46  ;;  %v14015_v32 = vld [vmem:[%s18383_s5 + $0x7b0] ss:$28 sps:$4 sm:$0xff]   ;;  %v14020_v46 = vld [vmem:[%s18383_s5 + $0x7e4] ss:$28 sps:$4 sm:$0xff]  }
 0x50b   :  { %9606 = vmatpush1.bf16.msra.mxu1 %v13958_v33  ;;  %9735 = vmatpush1.bf16.msra.mxu0 %v13961_v24  ;;  %v14023_v33 = vld [vmem:[%s18383_s5 + $0x7ec] ss:$28 sps:$4 sm:$0xff]   ;;  %v8125_v24 = vld [vmem:[%s18383_s5 + $0x818] sm:$0xff] }
 0x50c   :  { %9607 = vmatprep.subr.bf16.mxu1 %v13966_v35  ;;  %9736 = vmatprep.subr.bf16.mxu0 %v13969_v40  ;;  %v8126_v35 = vld [vmem:[%s18383_s5 + $0x820] sm:$0xff] }
 0x50d   :  { %v14018_v40 = vld [vmem:[%s18383_s5 + $0x7e0] ss:$28 sps:$4 sm:$0xff]  }
 0x50f   :  { %9608 = vmatpush1.bf16.msra.mxu1 %v13964_v51  ;;  %9737 = vmatpush1.bf16.msra.mxu0 %v13967_v34  ;;  %v14021_v51 = vld [vmem:[%s18383_s5 + $0x7e8] ss:$28 sps:$4 sm:$0xff]   ;;  %v11869_v34 = vcombine.high %v8125_v24, %v8125_v24 }
 0x510   :  { %9609 = vmatprep.subr.bf16.mxu1 %v13972_v42  ;;  %9738 = vmatprep.subr.bf16.mxu0 %v13975_v55  ;;  %v11871_v42 = vcombine.high %v8126_v35, %v8126_v35  ;;  %v11868_v55 = vcombine.low %v8125_v24, %v8125_v24  ;;  %v14060_v24 = vld [vmem:[%s18383_s5 + $0x164] ss:$28 sps:$4 sm:$0xff]  }
 0x513   :  { %9610 = vmatpush1.bf16.msra.mxu1 %v13970_v39  ;;  %9739 = vmatpush1.bf16.msra.mxu0 %v13973_v47  ;;  %v11870_v39 = vcombine.low %v8126_v35, %v8126_v35  ;;  %v9522_v47 = vsel %vm9520_vm2, %v11868_v55, 0  ;;  %v14061_v35 = vld [vmem:[%s18383_s5 + $0x328] ss:$28 sps:$4 sm:$0xff]   ;;  %v14063_v55 = vld [vmem:[%s18383_s5 + $0x198] ss:$28 sps:$4 sm:$0xff]  }
 0x514   :  { %9611 = vmatprep.subr.bf16.mxu1 %v13978_v37  ;;  %9740 = vmatprep.subr.bf16.mxu0 %v13981_v48  ;;  %v14030_v48 = vld [vmem:[%s18383_s5 + $0x14] ss:$28 sps:$4 sm:$0xff]  }
 0x515   :  { %v9528_v37 = vsel %vm9520_vm2, %v11870_v39, 0  ;;  %v14067_v39 = vld [vmem:[%s18383_s5 + $0x1a0] ss:$28 sps:$4 sm:$0xff]  }
 0x517   :  { %v12107_v58 = vpop.f32.mrb[40].mxu1  ;;  %9612 = vmatpush1.bf16.msra.mxu1 %v13976_v44  ;;  %9741 = vmatpush1.bf16.msra.mxu0 %v13979_v2  ;;  %v14031_v44 = vld [vmem:[%s18383_s5 + $0x1d8] ss:$28 sps:$4 sm:$0xff]  }
 0x518   :  { %v12108_v0 = vpop.f32.mrb[41].mxu1  ;;  %9613 = vmatprep.subr.bf16.mxu1 %v13984_v49  ;;  %9742 = vmatprep.subr.bf16.mxu0 %v13987_v50 }
 0x519   :  { %v12109_v5 = vadd.f32 %v12108_v0, %v12107_v58  ;;  %v12110_v8 = vpop.f32.mrb[42].mxu1 }
 0x51a   :  { %v12111_v10 = vpop.f32.mrb[43].mxu1 }
 0x51b   :  { %v17739_v12 = vadd.f32 %v12109_v5, %v7685_v53  ;;  %v12112_v52 = vadd.f32 %v12111_v10, %v12110_v8  ;;  %9614 = vmatpush1.bf16.msra.mxu1 %v13982_v61  ;;  %9743 = vmatpush1.bf16.msra.mxu0 %v13985_v62 }
 0x51c   :  { %9615 = vmatprep.subr.bf16.mxu1 %v13990_v1  ;;  %9744 = vmatprep.subr.bf16.mxu0 %v13993_v6 }
 0x51d   :  { %v17753_v16 = vadd.f32 %v12112_v52, %v7688_v11 }
 0x51f   :  { %9616 = vmatpush1.bf16.msra.mxu1 %v13988_v63  ;;  %9745 = vmatpush1.bf16.msra.mxu0 %v13991_v45  ;;  %v14028_v63 = vld [vmem:[%s18383_s5 + $0x10] ss:$28 sps:$4 sm:$0xff]   ;;  %v14032_v45 = vld [vmem:[%s18383_s5 + $0x18] ss:$28 sps:$4 sm:$0xff]  }
 0x520   :  { %9628 = vmatprep.subr.bf16.mxu1 %v13996_v13  ;;  %9757 = vmatprep.subr.bf16.mxu0 %v13999_v15  ;;  %v14035_v13 = vld [vmem:[%s18383_s5 + $0x4c] ss:$28 sps:$4 sm:$0xff]  }
 0x521   :  { %v14036_v15 = vld [vmem:[%s18383_s5 + $0x210] ss:$28 sps:$4 sm:$0xff]  }
 0x522   :  { %9618 = vmatmul.mubr.bf16.vlgmr.msra.gmra.mrb[52].mxu1 %v17539_v14  ;;  %9747 = vmatmul.mubr.bf16.vlgmr.msra.gmra.mrb[12].mxu0 %v17539_v14 }
 0x523   :  { %9629 = vmatpush1.bf16.msra.mxu1 %v13994_v17  ;;  %9758 = vmatpush1.bf16.msra.mxu0 %v13997_v18  ;;  %v14037_v17 = vld [vmem:[%s18383_s5 + $0x50] ss:$28 sps:$4 sm:$0xff]   ;;  %v14040_v18 = vld [vmem:[%s18383_s5 + $0x84] ss:$28 sps:$4 sm:$0xff]  }
 0x524   :  { %9630 = vmatprep.subr.bf16.mxu1 %v14002_v19  ;;  %9759 = vmatprep.subr.bf16.mxu0 %v14005_v20  ;;  %v14041_v19 = vld [vmem:[%s18383_s5 + $0x248] ss:$28 sps:$4 sm:$0xff]   ;;  %v14038_v20 = vld [vmem:[%s18383_s5 + $0x80] ss:$28 sps:$4 sm:$0xff]  }
 0x525   :  { %9660 = vmatprep.mubr.bf16.mxu1 %v14243_v22  ;;  %9789 = vmatprep.mubr.bf16.mxu0 %v14243_v22 }
 0x527   :  { %9631 = vmatpush1.bf16.msra.mxu1 %v14000_v21  ;;  %9760 = vmatpush1.bf16.msra.mxu0 %v14003_v23  ;;  %v14045_v21 = vld [vmem:[%s18383_s5 + $0xbc] ss:$28 sps:$4 sm:$0xff]  }
 0x528   :  { %9632 = vmatprep.subr.bf16.mxu1 %v14008_v26  ;;  %9761 = vmatprep.subr.bf16.mxu0 %v14011_v27  ;;  %v14046_v23 = vld [vmem:[%s18383_s5 + $0x280] ss:$28 sps:$4 sm:$0xff]   ;;  %v14043_v26 = vld [vmem:[%s18383_s5 + $0xb8] ss:$28 sps:$4 sm:$0xff]  }
 0x529   :  { %v14047_v27 = vld [vmem:[%s18383_s5 + $0xc0] ss:$28 sps:$4 sm:$0xff]  }
 0x52b   :  { %9633 = vmatpush1.bf16.msra.mxu1 %v14006_v28  ;;  %9762 = vmatpush1.bf16.msra.mxu0 %v14009_v29  ;;  %v14050_v28 = vld [vmem:[%s18383_s5 + $0xf4] ss:$28 sps:$4 sm:$0xff]  }
 0x52c   :  { %9634 = vmatprep.subr.bf16.mxu1 %v14014_v30  ;;  %9763 = vmatprep.subr.bf16.mxu0 %v14017_v31  ;;  %v14051_v29 = vld [vmem:[%s18383_s5 + $0x2b8] ss:$28 sps:$4 sm:$0xff]   ;;  %v14048_v30 = vld [vmem:[%s18383_s5 + $0xf0] ss:$28 sps:$4 sm:$0xff]  }
 0x52d   :  { %v14052_v31 = vld [vmem:[%s18383_s5 + $0xf8] ss:$28 sps:$4 sm:$0xff]  }
 0x52f   :  { %9635 = vmatpush1.bf16.msra.mxu1 %v14012_v41  ;;  %9764 = vmatpush1.bf16.msra.mxu0 %v14015_v32  ;;  %v14055_v41 = vld [vmem:[%s18383_s5 + $0x12c] ss:$28 sps:$4 sm:$0xff]  }
 0x530   :  { %9636 = vmatprep.subr.bf16.mxu1 %v14020_v46  ;;  %9765 = vmatprep.subr.bf16.mxu0 %v14023_v33  ;;  %v14056_v32 = vld [vmem:[%s18383_s5 + $0x2f0] ss:$28 sps:$4 sm:$0xff]   ;;  %v14053_v46 = vld [vmem:[%s18383_s5 + $0x128] ss:$28 sps:$4 sm:$0xff]  }
 0x531   :  { %v14057_v33 = vld [vmem:[%s18383_s5 + $0x130] ss:$28 sps:$4 sm:$0xff]  }
 0x533   :  { %9637 = vmatpush1.bf16.msra.mxu1 %v14018_v40  ;;  %9766 = vmatpush1.bf16.msra.mxu0 %v14021_v51  ;;  %v14058_v40 = vld [vmem:[%s18383_s5 + $0x160] ss:$28 sps:$4 sm:$0xff]   ;;  %v14062_v51 = vld [vmem:[%s18383_s5 + $0x168] ss:$28 sps:$4 sm:$0xff]  }
 0x534   :  { %11875 = vmatprep.subr.msk.bf16.mxu1 %vm9520_vm2, %v11869_v34  ;;  %11877 = vmatprep.subr.msk.bf16.mxu0 %vm9520_vm2, %v11871_v42  ;;  %v14065_v34 = vld [vmem:[%s18383_s5 + $0x19c] ss:$28 sps:$4 sm:$0xff]  }
 0x535   :  { %v14066_v42 = vld [vmem:[%s18383_s5 + $0x360] ss:$28 sps:$4 sm:$0xff]  }
 0x537   :  { %v12129_v2 = vpop.f32.mrb[44].mxu1  ;;  %9639 = vmatpush1.bf16.msra.mxu1 %v9522_v47  ;;  %9768 = vmatpush1.bf16.msra.mxu0 %v9528_v37  ;;  %v14070_v47 = vld [vmem:[%s18383_s5 + $0x1d4] ss:$28 sps:$4 sm:$0xff]  }
 0x538   :  { %v12130_v49 = vpop.f32.mrb[45].mxu1  ;;  %9800 = vmatprep.subr.bf16.mxu1 %v14030_v48  ;;  %12138 = vmatprep.subr.bf16.mxu0 %v14031_v44  ;;  %v14071_v37 = vld [vmem:[%s18383_s5 + $0x558] ss:$28 sps:$4 sm:$0xff]   ;;  %v14068_v48 = vld [vmem:[%s18383_s5 + $0x1d0] ss:$28 sps:$4 sm:$0xff]  }
 0x539   :  { %v12131_v50 = vadd.f32 %v12130_v49, %v12129_v2  ;;  %v12132_v57 = vpop.f32.mrb[46].mxu1  ;;  %v14072_v44 = vld [vmem:[%s18383_s5 + $0x398] ss:$28 sps:$4 sm:$0xff]   ;;  %v14075_v2 = vld [vmem:[%s18383_s5 + $0x20c] ss:$28 sps:$4 sm:$0xff]  }
 0x53a   :  { %v12133_v58 = vpop.f32.mrb[47].mxu1  ;;  %v14073_v49 = vld [vmem:[%s18383_s5 + $0x208] ss:$28 sps:$4 sm:$0xff]  }
 0x53b   :  { %v12134_v61 = vadd.f32 %v12133_v58, %v12132_v57  ;;  %v7767_v62 = vadd.f32 %v12131_v50, %v17739_v12  ;;  %v14076_v50 = vld [vmem:[%s18383_s5 + $0x590] ss:$28 sps:$4 sm:$0xff]   ;;  %v14080_v58 = vld [vmem:[%s18383_s5 + $0x244] ss:$28 sps:$4 sm:$0xff]  }
 0x53c   :  { %v14077_v57 = vld [vmem:[%s18383_s5 + $0x3d0] ss:$28 sps:$4 sm:$0xff]  }
 0x53d   :  { %v7770_v0 = vadd.f32 %v12134_v61, %v17753_v16  ;;  %v14033_v16 = vld [vmem:[%s18383_s5 + $0x48] ss:$28 sps:$4 sm:$0xff]  }
 0x53e   :  { %v14081_v61 = vld [vmem:[%s18383_s5 + $0x5c8] ss:$28 sps:$4 sm:$0xff]  }
 0x53f   :  { %v7807_v1 = vpop.f32.mrb[48].mxu1 }
 0x540   :  { %v7808_v6 = vadd.f32 %v7807_v1, %v7767_v62  ;;  %v12272_v53 = vpop.f32.mrb[49].mxu1  ;;  %v14078_v62 = vld [vmem:[%s18383_s5 + $0x240] ss:$28 sps:$4 sm:$0xff]  }
 0x541   :  { %v7810_v5 = vpop.f32.mrb[50].mxu1  ;;  %v14085_v1 = vld [vmem:[%s18383_s5 + $0x27c] ss:$28 sps:$4 sm:$0xff]  }
 0x542   :  { %v7811_v8 = vadd.f32 %v7810_v5, %v7770_v0  ;;  %v12273_v10 = vpop.f32.mrb[51].mxu1  ;;  %v7818_v11 = vmax.f32 %v7808_v6, 0.0  ;;  %v14082_v0 = vld [vmem:[%s18383_s5 + $0x408] ss:$28 sps:$4 sm:$0xff]   ;;  %v14086_v6 = vld [vmem:[%s18383_s5 + $0x600] ss:$28 sps:$4 sm:$0xff]  }
 0x543   :  { %v14083_v53 = vld [vmem:[%s18383_s5 + $0x278] ss:$28 sps:$4 sm:$0xff]   ;;  %v14087_v5 = vld [vmem:[%s18383_s5 + $0x440] ss:$28 sps:$4 sm:$0xff]  }
 0x544   :  { %v7823_v52 = vmax.f32 %v7811_v8, 0.0  ;;  %v14090_v8 = vld [vmem:[%s18383_s5 + $0x2b4] ss:$28 sps:$4 sm:$0xff]  }
 0x545   :  { %v14091_v10 = vld [vmem:[%s18383_s5 + $0x638] ss:$28 sps:$4 sm:$0xff]  }
 0x546   :  { %v17837_v12 = vpack.c.bf16 %v7823_v52, %v7818_v11  ;;  %v14088_v11 = vld [vmem:[%s18383_s5 + $0x2b0] ss:$28 sps:$4 sm:$0xff]   ;;  %v14092_v52 = vld [vmem:[%s18383_s5 + $0x478] ss:$28 sps:$4 sm:$0xff]  }
 0x548   :  { %11876 = vmatmul.mubr.msk.bf16.vlgmr.msra.gmra.mrb[52].mxu1 %vm9516_vm3, %v17837_v12  ;;  %11878 = vmatmul.mubr.msk.bf16.vlgmr.msra.gmra.mrb[12].mxu0 %vm9516_vm3, %v17837_v12 }
 0x549   :  { %9801 = vmatpush1.bf16.msra.mxu1 %v14028_v63  ;;  %12139 = vmatpush3.bf16.msra.mxu0 %v14032_v45  ;;  %v14095_v63 = vld [vmem:[%s18383_s5 + $0x2ec] ss:$28 sps:$4 sm:$0xff]  }
 0x54a   :  { %9832 = vmatprep.mubr.bf16.mxu1 %v17541_v56  ;;  %9961 = vmatprep.mubr.bf16.mxu0 %v17541_v56  ;;  %v14042_v56 = vld [vmem:[%s18383_s5 + $0x88] ss:$28 sps:$4 sm:$0xff]   ;;  %v14096_v45 = vld [vmem:[%s18383_s5 + $0x670] ss:$28 sps:$4 sm:$0xff]  }
 0x54b   :  { %9802 = vmatprep.subr.bf16.mxu1 %v14035_v13  ;;  %12140 = vmatprep.subr.bf16.mxu0 %v14036_v15  ;;  %v14093_v13 = vld [vmem:[%s18383_s5 + $0x2e8] ss:$28 sps:$4 sm:$0xff]   ;;  %v14097_v15 = vld [vmem:[%s18383_s5 + $0x4b0] ss:$28 sps:$4 sm:$0xff]  }
 0x54d   :  { %9803 = vmatpush1.bf16.msra.mxu1 %v14033_v16  ;;  %12141 = vmatpush3.bf16.msra.mxu0 %v14037_v17  ;;  %v14100_v16 = vld [vmem:[%s18383_s5 + $0x324] ss:$28 sps:$4 sm:$0xff]  }
 0x54e   :  { %9804 = vmatprep.subr.bf16.mxu1 %v14040_v18  ;;  %12142 = vmatprep.subr.bf16.mxu0 %v14041_v19  ;;  %v14101_v17 = vld [vmem:[%s18383_s5 + $0x6a8] ss:$28 sps:$4 sm:$0xff]   ;;  %v14098_v18 = vld [vmem:[%s18383_s5 + $0x320] ss:$28 sps:$4 sm:$0xff]  }
 0x54f   :  { %v14102_v19 = vld [vmem:[%s18383_s5 + $0x4e8] ss:$28 sps:$4 sm:$0xff]  }
 0x551   :  { %9805 = vmatpush1.bf16.msra.mxu1 %v14038_v20  ;;  %12143 = vmatpush3.bf16.msra.mxu0 %v14042_v56  ;;  %v14105_v20 = vld [vmem:[%s18383_s5 + $0x35c] ss:$28 sps:$4 sm:$0xff]  }
 0x552   :  { %9806 = vmatprep.subr.bf16.mxu1 %v14045_v21  ;;  %12144 = vmatprep.subr.bf16.mxu0 %v14046_v23  ;;  %v14106_v56 = vld [vmem:[%s18383_s5 + $0x6e0] ss:$28 sps:$4 sm:$0xff]   ;;  %v14103_v21 = vld [vmem:[%s18383_s5 + $0x358] ss:$28 sps:$4 sm:$0xff]  }
 0x553   :  { %v14107_v23 = vld [vmem:[%s18383_s5 + $0x520] ss:$28 sps:$4 sm:$0xff]  }
 0x555   :  { %9807 = vmatpush1.bf16.msra.mxu1 %v14043_v26  ;;  %12145 = vmatpush3.bf16.msra.mxu0 %v14047_v27  ;;  %v14110_v26 = vld [vmem:[%s18383_s5 + $0x394] ss:$28 sps:$4 sm:$0xff]  }
 0x556   :  { %9808 = vmatprep.subr.bf16.mxu1 %v14050_v28  ;;  %12146 = vmatprep.subr.bf16.mxu0 %v14051_v29  ;;  %v14108_v27 = vld [vmem:[%s18383_s5 + $0x390] ss:$28 sps:$4 sm:$0xff]   ;;  %v14111_v28 = vld [vmem:[%s18383_s5 + $0x718] ss:$28 sps:$4 sm:$0xff]  }
 0x557   :  { %v14114_v29 = vld [vmem:[%s18383_s5 + $0x3cc] ss:$28 sps:$4 sm:$0xff]  }
 0x559   :  { %9809 = vmatpush1.bf16.msra.mxu1 %v14048_v30  ;;  %12147 = vmatpush3.bf16.msra.mxu0 %v14052_v31  ;;  %v14112_v30 = vld [vmem:[%s18383_s5 + $0x3c8] ss:$28 sps:$4 sm:$0xff]   ;;  %v14115_v31 = vld [vmem:[%s18383_s5 + $0x750] ss:$28 sps:$4 sm:$0xff]  }
 0x55a   :  { %9810 = vmatprep.subr.bf16.mxu1 %v14055_v41  ;;  %12148 = vmatprep.subr.bf16.mxu0 %v14056_v32  ;;  %v14118_v41 = vld [vmem:[%s18383_s5 + $0x404] ss:$28 sps:$4 sm:$0xff]   ;;  %v14122_v32 = vld [vmem:[%s18383_s5 + $0x43c] ss:$28 sps:$4 sm:$0xff]  }
 0x55d   :  { %9811 = vmatpush1.bf16.msra.mxu1 %v14053_v46  ;;  %12149 = vmatpush3.bf16.msra.mxu0 %v14057_v33  ;;  %v14120_v46 = vld [vmem:[%s18383_s5 + $0x438] ss:$28 sps:$4 sm:$0xff]   ;;  %v14123_v33 = vld [vmem:[%s18383_s5 + $0x7c0] ss:$28 sps:$4 sm:$0xff]  }
 0x55e   :  { %9812 = vmatprep.subr.bf16.mxu1 %v14060_v24  ;;  %12150 = vmatprep.subr.bf16.mxu0 %v14061_v35  ;;  %v14126_v24 = vld [vmem:[%s18383_s5 + $0x474] ss:$28 sps:$4 sm:$0xff]  }
 0x55f   :  { %v14124_v35 = vld [vmem:[%s18383_s5 + $0x470] ss:$28 sps:$4 sm:$0xff]  }
 0x561   :  { %9813 = vmatpush1.bf16.msra.mxu1 %v14058_v40  ;;  %12151 = vmatpush3.bf16.msra.mxu0 %v14062_v51  ;;  %v14127_v40 = vld [vmem:[%s18383_s5 + $0x7f8] ss:$28 sps:$4 sm:$0xff]   ;;  %v14130_v51 = vld [vmem:[%s18383_s5 + $0x4ac] ss:$28 sps:$4 sm:$0xff]  }
 0x562   :  { %9814 = vmatprep.subr.bf16.mxu1 %v14065_v34  ;;  %12152 = vmatprep.subr.bf16.mxu0 %v14066_v42  ;;  %v14131_v34 = vld [vmem:[%s18383_s5 + $0x830] ss:$0 sps:$4 sm:$0xff]   ;;  %v14128_v42 = vld [vmem:[%s18383_s5 + $0x4a8] ss:$28 sps:$4 sm:$0xff]  }
 0x565   :  { %9815 = vmatpush1.bf16.msra.mxu1 %v14063_v55  ;;  %12153 = vmatpush3.bf16.msra.mxu0 %v14067_v39  ;;  %v14134_v55 = vld [vmem:[%s18383_s5 + $0x4e4] ss:$28 sps:$4 sm:$0xff]   ;;  %v9540_v39 = vsel %vm9520_vm2, %v14131_v34, 0 }
 0x566   :  { %9816 = vmatprep.subr.bf16.mxu1 %v14070_v47  ;;  %12160 = vmatprep.subr.bf16.mxu0 %v14071_v37  ;;  %v14180_v47 = vld [vmem:[%s18385_s7 + $0xc0] sm:$0xff]  }
 0x567   :  { %v14132_v37 = vld [vmem:[%s18383_s5 + $0x4e0] ss:$28 sps:$4 sm:$0xff]  }
 0x568   :  { %9962 = vmatmul.mubr.bf16.vlgmr.msra.gmra.mrb[16].mxu0 %v17537_v36  ;;  %v14181_v34 = vld [vmem:[%s18385_s7] sm:$0xff]  }
 0x569   :  { %9817 = vmatpush1.bf16.msra.mxu1 %v14068_v48  ;;  %12161 = vmatpush3.bf16.msra.mxu0 %v14072_v44  ;;  %v14137_v48 = vld [vmem:[%s18383_s5 + $0x51c] ss:$28 sps:$4 sm:$0xff]   ;;  %v14182_v44 = vld [vmem:[%s18385_s7 + $0x80] sm:$0xff]  }
 0x56a   :  { %10002 = vmatprep.mubr.bf16.mxu0 %v17543_v38  ;;  %9818 = vmatprep.subr.bf16.mxu1 %v14075_v2  ;;  %v14184_v2 = vld [vmem:[%s18385_s7 + $0xc8] sm:$0xff]  }
 0x56b   :  { %12162 = vmatprep.subr.bf16.mxu0 %v14076_v50  ;;  %v14140_v50 = vld [vmem:[%s18383_s5 + $0x554] ss:$28 sps:$4 sm:$0xff]  }
 0x56d   :  { %9819 = vmatpush1.bf16.msra.mxu1 %v14073_v49  ;;  %12163 = vmatpush3.bf16.msra.mxu0 %v14077_v57  ;;  %v14135_v49 = vld [vmem:[%s18383_s5 + $0x518] ss:$28 sps:$4 sm:$0xff]   ;;  %v14186_v57 = vld [vmem:[%s18385_s7 + $0x88] sm:$0xff]  }
 0x56e   :  { %9820 = vmatprep.subr.bf16.mxu1 %v14080_v58  ;;  %12164 = vmatprep.subr.bf16.mxu0 %v14081_v61  ;;  %v14188_v58 = vld [vmem:[%s18385_s7 + $0xd0] sm:$0xff]  }
 0x56f   :  { %v14138_v61 = vld [vmem:[%s18383_s5 + $0x550] ss:$28 sps:$4 sm:$0xff]  }
 0x571   :  { %9821 = vmatpush1.bf16.msra.mxu1 %v14078_v62  ;;  %12165 = vmatpush3.bf16.msra.mxu0 %v14082_v0  ;;  %v14143_v62 = vld [vmem:[%s18383_s5 + $0x58c] ss:$28 sps:$4 sm:$0xff]   ;;  %v14190_v0 = vld [vmem:[%s18385_s7 + $0x90] sm:$0xff]  }
 0x572   :  { %9822 = vmatprep.subr.bf16.mxu1 %v14085_v1  ;;  %12166 = vmatprep.subr.bf16.mxu0 %v14086_v6  ;;  %v14192_v1 = vld [vmem:[%s18385_s7 + $0xd8] sm:$0xff]   ;;  %v14141_v6 = vld [vmem:[%s18383_s5 + $0x588] ss:$28 sps:$4 sm:$0xff]  }
 0x575   :  { %9823 = vmatpush1.bf16.msra.mxu1 %v14083_v53  ;;  %12167 = vmatpush3.bf16.msra.mxu0 %v14087_v5  ;;  %v14146_v53 = vld [vmem:[%s18383_s5 + $0x5c4] ss:$28 sps:$4 sm:$0xff]   ;;  %v14194_v5 = vld [vmem:[%s18385_s7 + $0x98] sm:$0xff]  }
 0x576   :  { %9824 = vmatprep.subr.bf16.mxu1 %v14090_v8  ;;  %12168 = vmatprep.subr.bf16.mxu0 %v14091_v10  ;;  %v14196_v8 = vld [vmem:[%s18385_s7 + $0xe0] sm:$0xff]  }
 0x577   :  { %v14144_v10 = vld [vmem:[%s18383_s5 + $0x5c0] ss:$28 sps:$4 sm:$0xff]  }
 0x579   :  { %9825 = vmatpush1.bf16.msra.mxu1 %v14088_v11  ;;  %12169 = vmatpush3.bf16.msra.mxu0 %v14092_v52  ;;  %v14149_v11 = vld [vmem:[%s18383_s5 + $0x5fc] ss:$28 sps:$4 sm:$0xff]   ;;  %v14198_v52 = vld [vmem:[%s18385_s7 + $0xa0] sm:$0xff]  }
 0x57a   :  { %9826 = vmatprep.subr.bf16.mxu1 %v14095_v63  ;;  %12170 = vmatprep.subr.bf16.mxu0 %v14096_v45  ;;  %v14200_v63 = vld [vmem:[%s18385_s7 + $0xe8] sm:$0xff]   ;;  %v14147_v45 = vld [vmem:[%s18383_s5 + $0x5f8] ss:$28 sps:$4 sm:$0xff]  }
 0x57d   :  { %9827 = vmatpush1.bf16.msra.mxu1 %v14093_v13  ;;  %12171 = vmatpush3.bf16.msra.mxu0 %v14097_v15  ;;  %v14152_v13 = vld [vmem:[%s18383_s5 + $0x634] ss:$28 sps:$4 sm:$0xff]   ;;  %v14202_v15 = vld [vmem:[%s18385_s7 + $0xa8] sm:$0xff]  }
 0x57e   :  { %9828 = vmatprep.subr.bf16.mxu1 %v14100_v16  ;;  %12172 = vmatprep.subr.bf16.mxu0 %v14101_v17  ;;  %v14204_v16 = vld [vmem:[%s18385_s7 + $0xf0] sm:$0xff]  }
 0x57f   :  { %v14150_v17 = vld [vmem:[%s18383_s5 + $0x630] ss:$28 sps:$4 sm:$0xff]  }
 0x581   :  { %9829 = vmatpush1.bf16.msra.mxu1 %v14098_v18  ;;  %12173 = vmatpush3.bf16.msra.mxu0 %v14102_v19  ;;  %v14155_v18 = vld [vmem:[%s18383_s5 + $0x66c] ss:$28 sps:$4 sm:$0xff]   ;;  %v14206_v19 = vld [vmem:[%s18385_s7 + $0xb0] sm:$0xff]  }
 0x582   :  { %9830 = vmatprep.subr.bf16.mxu1 %v14105_v20  ;;  %12174 = vmatprep.subr.bf16.mxu0 %v14106_v56  ;;  %v14208_v20 = vld [vmem:[%s18385_s7 + $0xf8] sm:$0xff]   ;;  %v14153_v56 = vld [vmem:[%s18383_s5 + $0x668] ss:$28 sps:$4 sm:$0xff]  }
 0x585   :  { %9831 = vmatpush1.bf16.msra.mxu1 %v14103_v21  ;;  %12175 = vmatpush3.bf16.msra.mxu0 %v14107_v23  ;;  %v14158_v21 = vld [vmem:[%s18383_s5 + $0x6a4] ss:$28 sps:$4 sm:$0xff]   ;;  %v14210_v23 = vld [vmem:[%s18385_s7 + $0xb8] sm:$0xff]  }
 0x586   :  { %9843 = vmatprep.subr.bf16.mxu1 %v14110_v26  ;;  %12274 = vmatprep.subr.bf16.mxu0 %v14244_v43  ;;  %v14156_v26 = vld [vmem:[%s18383_s5 + $0x6a0] ss:$28 sps:$4 sm:$0xff]  }
 0x588   :  { %9833 = vmatmul.mubr.bf16.vlgmr.msra.gmra.mrb[56].mxu1 %v17537_v36  ;;  %10003 = vmatmul.mubr.bf16.vlgmr.msra.gmra.mrb[20].mxu0 %v17539_v14  ;;  %v14116_v36 = vld [vmem:[%s18383_s5 + $0x400] ss:$28 sps:$4 sm:$0xff]  }
 0x589   :  { %9844 = vmatpush1.bf16.msra.mxu1 %v14108_v27  ;;  %9875 = vmatprep.mubr.bf16.mxu1 %v17543_v38  ;;  %v14119_v38 = vld [vmem:[%s18383_s5 + $0x788] ss:$28 sps:$4 sm:$0xff]   ;;  %v14161_v27 = vld [vmem:[%s18383_s5 + $0x6dc] ss:$28 sps:$4 sm:$0xff]  }
 0x58a   :  { %12275 = vmatpush3.bf16.msra.mxu0 %v14111_v28  ;;  %9845 = vmatprep.subr.bf16.mxu1 %v14114_v29  ;;  %v14159_v28 = vld [vmem:[%s18383_s5 + $0x6d8] ss:$28 sps:$4 sm:$0xff]  }
 0x58b   :  { %12276 = vmatprep.subr.bf16.mxu0 %v14244_v43  ;;  %12286 = vmatprep.mubr.msk.bf16.mxu0 %vm14245_vm1, %v14244_v43  ;;  %v14164_v29 = vld [vmem:[%s18383_s5 + $0x714] ss:$28 sps:$4 sm:$0xff]  }
 0x58d   :  { %9846 = vmatpush1.bf16.msra.mxu1 %v14112_v30  ;;  %v14162_v30 = vld [vmem:[%s18383_s5 + $0x710] ss:$28 sps:$4 sm:$0xff]  }
 0x58e   :  { %12277 = vmatpush3.bf16.msra.mxu0 %v14115_v31  ;;  %9847 = vmatprep.subr.bf16.mxu1 %v14118_v41  ;;  %v14167_v31 = vld [vmem:[%s18383_s5 + $0x74c] ss:$28 sps:$4 sm:$0xff]  }
 0x58f   :  { %12278 = vmatprep.subr.bf16.mxu0 %v14244_v43  ;;  %v14165_v41 = vld [vmem:[%s18383_s5 + $0x748] ss:$28 sps:$4 sm:$0xff]  }
 0x591   :  { %9848 = vmatpush1.bf16.msra.mxu1 %v14116_v36  ;;  %v14170_v36 = vld [vmem:[%s18383_s5 + $0x784] ss:$28 sps:$4 sm:$0xff]  }
 0x592   :  { %12279 = vmatpush3.bf16.msra.mxu0 %v14119_v38  ;;  %9849 = vmatprep.subr.bf16.mxu1 %v14122_v32  ;;  %v14168_v38 = vld [vmem:[%s18383_s5 + $0x780] ss:$28 sps:$4 sm:$0xff]   ;;  %v14176_v32 = vld [vmem:[%s18383_s5 + $0x7f4] ss:$28 sps:$4 sm:$0xff]  }
 0x593   :  { %12280 = vmatprep.subr.bf16.mxu0 %v14244_v43 }
 0x595   :  { %9850 = vmatpush1.bf16.msra.mxu1 %v14120_v46  ;;  %v8127_v46 = vld [vmem:[%s18383_s5 + $0x828] sm:$0xff] }
 0x596   :  { %12281 = vmatpush3.bf16.msra.mxu0 %v14123_v33  ;;  %9851 = vmatprep.subr.bf16.mxu1 %v14126_v24  ;;  %v14174_v33 = vld [vmem:[%s18383_s5 + $0x7f0] ss:$28 sps:$4 sm:$0xff]   ;;  %v11873_v24 = vcombine.high %v8127_v46, %v8127_v46 }
 0x597   :  { %12282 = vmatprep.subr.bf16.mxu0 %v14244_v43 }
 0x599   :  { %9852 = vmatpush1.bf16.msra.mxu1 %v14124_v35  ;;  %v11872_v35 = vcombine.low %v8127_v46, %v8127_v46  ;;  %v14216_v46 = vld [vmem:[%s18385_s7 + $0x108] sm:$0xff]  }
 0x59a   :  { %12283 = vmatpush3.bf16.msra.mxu0 %v14127_v40  ;;  %9853 = vmatprep.subr.bf16.mxu1 %v14130_v51  ;;  %v14179_v51 = vld [vmem:[%s18385_s7 + $0x40] sm:$0xff]  }
 0x59b   :  { %12284 = vmatprep.subr.bf16.mxu0 %v14244_v43  ;;  %v9534_v40 = vsel %vm9520_vm2, %v11872_v35, 0  ;;  %v14220_v35 = vld [vmem:[%s18385_s7 + $0x118] sm:$0xff]  }
 0x59d   :  { %9854 = vmatpush1.bf16.msra.mxu1 %v14128_v42  ;;  %v14183_v42 = vld [vmem:[%s18385_s7 + $0x48] sm:$0xff]  }
 0x59e   :  { %12285 = vmatpush3.bf16.msra.mxu0 %v9540_v39  ;;  %9855 = vmatprep.subr.bf16.mxu1 %v14134_v55  ;;  %v14185_v55 = vld [vmem:[%s18385_s7 + $0x8] sm:$0xff]   ;;  %v14187_v39 = vld [vmem:[%s18385_s7 + $0x50] sm:$0xff]  }
 0x59f   :  { %12211 = vmatprep.subr.bf16.mxu0 %v14180_v47  ;;  %v14189_v47 = vld [vmem:[%s18385_s7 + $0x10] sm:$0xff]  }
 0x5a1   :  { %12287 = vmatmul.mubr.msk.bf16.vlgmr.msra.gmra.mrb[24].mxu0 %vm9516_vm3, %v17837_v12  ;;  %9856 = vmatpush1.bf16.msra.mxu1 %v14132_v37  ;;  %v14193_v37 = vld [vmem:[%s18385_s7 + $0x18] sm:$0xff]  }
 0x5a2   :  { %9857 = vmatprep.subr.bf16.mxu1 %v14137_v48  ;;  %12212 = vmatpush3.bf16.msra.mxu0 %v14182_v44  ;;  %v14195_v48 = vld [vmem:[%s18385_s7 + $0x60] sm:$0xff]  }
 0x5a3   :  { %12213 = vmatprep.subr.bf16.mxu0 %v14184_v2  ;;  %v14197_v44 = vld [vmem:[%s18385_s7 + $0x20] sm:$0xff]   ;;  %v14199_v2 = vld [vmem:[%s18385_s7 + $0x68] sm:$0xff]  }
 0x5a5   :  { %9858 = vmatpush1.bf16.msra.mxu1 %v14135_v49  ;;  %v14201_v49 = vld [vmem:[%s18385_s7 + $0x28] sm:$0xff]  }
 0x5a6   :  { %9859 = vmatprep.subr.bf16.mxu1 %v14140_v50  ;;  %12214 = vmatpush3.bf16.msra.mxu0 %v14186_v57  ;;  %v14203_v50 = vld [vmem:[%s18385_s7 + $0x70] sm:$0xff]  }
 0x5a7   :  { %12215 = vmatprep.subr.bf16.mxu0 %v14188_v58  ;;  %v14205_v57 = vld [vmem:[%s18385_s7 + $0x30] sm:$0xff]   ;;  %v14207_v58 = vld [vmem:[%s18385_s7 + $0x78] sm:$0xff]  }
 0x5a9   :  { %9860 = vmatpush1.bf16.msra.mxu1 %v14138_v61  ;;  %v14209_v61 = vld [vmem:[%s18385_s7 + $0x38] sm:$0xff]  }
 0x5aa   :  { %9861 = vmatprep.subr.bf16.mxu1 %v14143_v62  ;;  %12216 = vmatpush3.bf16.msra.mxu0 %v14190_v0  ;;  %v14213_v62 = vld [vmem:[%s18385_s7 + $0x140] sm:$0xff]  }
 0x5ab   :  { %12217 = vmatprep.subr.bf16.mxu0 %v14192_v1  ;;  %v18297_v0 = vld [vmem:[%s18386_s6] sm:$0x7f] }
 0x5ac   :  { %v8134_v1 = vrot.slane %v18297_v0, %v16228_v59 }
 0x5ad   :  { %9862 = vmatpush1.bf16.msra.mxu1 %v14141_v6  ;;  %v8142_v6 = vrot.slane %v18297_v0, %v16231_v60 }
 0x5ae   :  { %9863 = vmatprep.subr.bf16.mxu1 %v14146_v53  ;;  %12218 = vmatpush3.bf16.msra.mxu0 %v14194_v5  ;;  %v8138_v53 = vrot.slane %v18297_v0, %v16251_v3  ;;  %v8146_v5 = vrot.slane %v18297_v0, %v16254_v4 }
 0x5af   :  { %12219 = vmatprep.subr.bf16.mxu0 %v14196_v8 }
 0x5b1   :  { %9864 = vmatpush1.bf16.msra.mxu1 %v14144_v10 }
 0x5b2   :  { %9865 = vmatprep.subr.bf16.mxu1 %v14149_v11  ;;  %12220 = vmatpush3.bf16.msra.mxu0 %v14198_v52 }
 0x5b3   :  { %12221 = vmatprep.subr.bf16.mxu0 %v14200_v63 }
 0x5b5   :  { %9866 = vmatpush1.bf16.msra.mxu1 %v14147_v45 }
 0x5b6   :  { %9867 = vmatprep.subr.bf16.mxu1 %v14152_v13  ;;  %12222 = vmatpush3.bf16.msra.mxu0 %v14202_v15 }
 0x5b7   :  { %12223 = vmatprep.subr.bf16.mxu0 %v14204_v16 }
 0x5b9   :  { %9868 = vmatpush1.bf16.msra.mxu1 %v14150_v17 }
 0x5ba   :  { %9869 = vmatprep.subr.bf16.mxu1 %v14155_v18  ;;  %12224 = vmatpush3.bf16.msra.mxu0 %v14206_v19 }
 0x5bb   :  { %12225 = vmatprep.subr.bf16.mxu0 %v14208_v20 }
 0x5bd   :  { %9870 = vmatpush1.bf16.msra.mxu1 %v14153_v56 }
 0x5be   :  { %9871 = vmatprep.subr.bf16.mxu1 %v14158_v21  ;;  %12226 = vmatpush3.bf16.msra.mxu0 %v14210_v23 }
 0x5bf   :  { %12290 = vmatprep.subr.bf16.mxu0 %v14244_v43 }
 0x5c1   :  { %9872 = vmatpush1.bf16.msra.mxu1 %v14156_v26 }
 0x5c2   :  { %9873 = vmatprep.subr.bf16.mxu1 %v14161_v27 }
 0x5c5   :  { %9874 = vmatpush1.bf16.msra.mxu1 %v14159_v28 }
 0x5c6   :  { %9886 = vmatprep.subr.bf16.mxu1 %v14164_v29 }
 0x5c8   :  { %9876 = vmatmul.mubr.bf16.vlgmr.msra.gmra.mrb[56].mxu1 %v17539_v14  ;;  %v14173_v14 = vld [vmem:[%s18383_s5 + $0x7bc] ss:$28 sps:$4 sm:$0xff]  }
 0x5c9   :  { %9887 = vmatpush1.bf16.msra.mxu1 %v14162_v30  ;;  %9918 = vmatprep.mubr.bf16.mxu1 %v14243_v22  ;;  %v14171_v22 = vld [vmem:[%s18383_s5 + $0x7b8] ss:$28 sps:$4 sm:$0xff]  }
 0x5ca   :  { %9888 = vmatprep.subr.bf16.mxu1 %v14167_v31 }
 0x5cd   :  { %9889 = vmatpush1.bf16.msra.mxu1 %v14165_v41 }
 0x5ce   :  { %9890 = vmatprep.subr.bf16.mxu1 %v14170_v36 }
 0x5d1   :  { %9891 = vmatpush1.bf16.msra.mxu1 %v14168_v38  ;;  %v14211_v38 = vld [vmem:[%s18385_s7 + $0x180] sm:$0xff]  }
 0x5d2   :  { %9892 = vmatprep.subr.bf16.mxu1 %v14173_v14  ;;  %v14214_v14 = vld [vmem:[%s18385_s7 + $0x100] sm:$0xff]  }
 0x5d5   :  { %9893 = vmatpush1.bf16.msra.mxu1 %v14171_v22  ;;  %v14215_v22 = vld [vmem:[%s18385_s7 + $0x148] sm:$0xff]  }
 0x5d6   :  { %9894 = vmatprep.subr.bf16.mxu1 %v14176_v32  ;;  %v14212_v32 = vld [vmem:[%s18385_s7 + $0x188] sm:$0xff]  }
 0x5d9   :  { %9895 = vmatpush1.bf16.msra.mxu1 %v14174_v33  ;;  %v14217_v33 = vld [vmem:[%s18385_s7 + $0x150] sm:$0xff]  }
 0x5da   :  { %11879 = vmatprep.subr.msk.bf16.mxu1 %vm9520_vm2, %v11873_v24  ;;  %v14218_v24 = vld [vmem:[%s18385_s7 + $0x110] sm:$0xff]  }
 0x5dd   :  { %9897 = vmatpush1.bf16.msra.mxu1 %v9534_v40  ;;  %v14221_v40 = vld [vmem:[%s18385_s7 + $0x160] sm:$0xff]  }
 0x5de   :  { %12189 = vmatprep.subr.bf16.mxu1 %v14179_v51  ;;  %v14222_v51 = vld [vmem:[%s18385_s7 + $0x120] sm:$0xff]  }
 0x5e0   :  { %11880 = vmatmul.mubr.msk.bf16.vlgmr.msra.gmra.mrb[56].mxu1 %vm9516_vm3, %v17837_v12  ;;  %v14191_v12 = vld [vmem:[%s18385_s7 + $0x58] sm:$0xff]  }
 0x5e1   :  { %12190 = vmatpush3.bf16.msra.mxu1 %v14181_v34  ;;  %v14223_v34 = vld [vmem:[%s18385_s7 + $0x168] sm:$0xff]  }
 0x5e2   :  { %12191 = vmatprep.subr.bf16.mxu1 %v14183_v42  ;;  %v14224_v42 = vld [vmem:[%s18385_s7 + $0x128] sm:$0xff]  }
 0x5e5   :  { %12192 = vmatpush3.bf16.msra.mxu1 %v14185_v55  ;;  %v14225_v55 = vld [vmem:[%s18385_s7 + $0x170] sm:$0xff]  }
 0x5e6   :  { %12193 = vmatprep.subr.bf16.mxu1 %v14187_v39 }
 0x5e9   :  { %12194 = vmatpush3.bf16.msra.mxu1 %v14189_v47 }
 0x5ea   :  { %12195 = vmatprep.subr.bf16.mxu1 %v14191_v12  ;;  %v14226_v12 = vld [vmem:[%s18385_s7 + $0x130] sm:$0xff]  }
 0x5ed   :  { %12196 = vmatpush3.bf16.msra.mxu1 %v14193_v37 }
 0x5ee   :  { %12197 = vmatprep.subr.bf16.mxu1 %v14195_v48 }
 0x5f1   :  { %12198 = vmatpush3.bf16.msra.mxu1 %v14197_v44  ;;  %v14227_v44 = vld [vmem:[%s18385_s7 + $0x178] sm:$0xff]  }
 0x5f2   :  { %12199 = vmatprep.subr.bf16.mxu1 %v14199_v2 }
 0x5f5   :  { %12200 = vmatpush3.bf16.msra.mxu1 %v14201_v49 }
 0x5f6   :  { %12201 = vmatprep.subr.bf16.mxu1 %v14203_v50  ;;  %v14228_v50 = vld [vmem:[%s18385_s7 + $0x138] sm:$0xff]  }
 0x5f9   :  { %12202 = vmatpush3.bf16.msra.mxu1 %v14205_v57  ;;  %v8158_v57 = vrot.slane %v18297_v0, %v859_v7  ;;  %v8150_v7 = vrot.slane %v18297_v0, %v17123_v25 }
 0x5fa   :  { %12203 = vmatprep.subr.bf16.mxu1 %v14207_v58 }
 0x5fd   :  { %12204 = vmatpush3.bf16.msra.mxu1 %v14209_v61 }
 0x5fe   :  { %12233 = vmatprep.subr.bf16.mxu1 %v14213_v62 }
 0x61b   :  { %v9662_v8 = vpop.f32.mrb[52].mxu1  ;;  %v9791_v10 = vpop.f32.mrb[12].mxu0 }
 0x61c   :  { %v12318_v11 = vadd.f32 %v9662_v8, %v8134_v1  ;;  %v12322_v52 = vadd.f32 %v9791_v10, %v8142_v6  ;;  %v9664_v63 = vpop.f32.mrb[53].mxu1  ;;  %v9793_v45 = vpop.f32.mrb[13].mxu0 }
 0x61d   :  { %v12319_v13 = vadd.f32 %v9664_v63, %v8138_v53  ;;  %v12323_v15 = vadd.f32 %v9793_v45, %v8146_v5  ;;  %v9666_v16 = vpop.f32.mrb[54].mxu1  ;;  %v9795_v17 = vpop.f32.mrb[14].mxu0 }
 0x61e   :  { %v12320_v59 = vadd.f32 %v9666_v16, %v8134_v1  ;;  %v12324_v18 = vadd.f32 %v9795_v17, %v8142_v6  ;;  %v9668_v19 = vpop.f32.mrb[55].mxu1  ;;  %v9797_v60 = vpop.f32.mrb[15].mxu0  ;;  %v10052_v3 = vmax.f32 %v12318_v11, 0.0  ;;  %v10054_v21 = vmax.f32 %v12322_v52, 0.0 }
 0x61f   :  { %v12321_v20 = vadd.f32 %v9668_v19, %v8138_v53  ;;  %v12325_v56 = vadd.f32 %v9797_v60, %v8146_v5  ;;  %v10053_v26 = vmax.f32 %v12319_v13, 0.0  ;;  %v10055_v27 = vmax.f32 %v12323_v15, 0.0 }
 0x620   :  { %v10059_v23 = vmax.f32 %v12320_v59, 0.0  ;;  %v10061_v4 = vmax.f32 %v12324_v18, 0.0  ;;  %v8154_v19 = vrot.slane %v18297_v0, %v855_v9  ;;  %v11882_v9 = vld [vmem:[%s18387_s8] ss:$0 sm:$0xff] }
 0x621   :  { %v10060_v28 = vmax.f32 %v12321_v20, 0.0  ;;  %v10062_v29 = vmax.f32 %v12325_v56, 0.0 }
 0x622   :  { %v10066_v30 = vpack.c.bf16 %v10059_v23, %v10052_v3  ;;  %v10068_v31 = vpack.c.bf16 %v10061_v4, %v10054_v21 }
 0x623   :  { %v10067_v41 = vpack.c.bf16 %v10060_v28, %v10053_v26  ;;  %v10069_v36 = vpack.c.bf16 %v10062_v29, %v10055_v27 }
 0x625   :  { %10515 = vmatprep.mubr.bf16.mxu1 %v10067_v41  ;;  %10556 = vmatprep.mubr.bf16.mxu0 %v10069_v36 }
 0x626   :  { %10516 = vmatmul.mubr.bf16.vlgmr.msra.gmra.mrb[60].mxu1 %v10066_v30  ;;  %10557 = vmatmul.mubr.bf16.vlgmr.msra.gmra.mrb[28].mxu0 %v10068_v31 }
 0x627   :  { %12291 = vmatpush3.bf16.msra.mxu0 %v14211_v38  ;;  %12294 = vmatprep.mubr.msk.bf16.mxu0 %vm14245_vm1, %v14244_v43 }
 0x628   :  { %12292 = vmatprep.subr.bf16.mxu0 %v14244_v43  ;;  %12234 = vmatpush3.bf16.msra.mxu1 %v14214_v14  ;;  %v14219_v43 = vld [vmem:[%s18385_s7 + $0x158] sm:$0xff]  }
 0x629   :  { %12235 = vmatprep.subr.bf16.mxu1 %v14215_v22 }
 0x62b   :  { %12293 = vmatpush3.bf16.msra.mxu0 %v14212_v32 }
 0x62c   :  { %12236 = vmatpush3.bf16.msra.mxu1 %v14216_v46 }
 0x62d   :  { %12237 = vmatprep.subr.bf16.mxu1 %v14217_v33 }
 0x630   :  { %12238 = vmatpush3.bf16.msra.mxu1 %v14218_v24 }
 0x631   :  { %12239 = vmatprep.subr.bf16.mxu1 %v14219_v43 }
 0x634   :  { %12240 = vmatpush3.bf16.msra.mxu1 %v14220_v35 }
 0x635   :  { %12241 = vmatprep.subr.bf16.mxu1 %v14221_v40 }
 0x638   :  { %12242 = vmatpush3.bf16.msra.mxu1 %v14222_v51 }
 0x639   :  { %12243 = vmatprep.subr.bf16.mxu1 %v14223_v34 }
 0x63b   :  { %v12154_v39 = vpop.f32.mrb[16].mxu0 }
 0x63c   :  { %v12155_v47 = vpop.f32.mrb[17].mxu0  ;;  %12244 = vmatpush3.bf16.msra.mxu1 %v14224_v42 }
 0x63d   :  { %v12156_v37 = vadd.f32 %v12155_v47, %v12154_v39  ;;  %v12157_v48 = vpop.f32.mrb[18].mxu0  ;;  %12245 = vmatprep.subr.bf16.mxu1 %v14225_v55 }
 0x63e   :  { %v12158_v2 = vpop.f32.mrb[19].mxu0 }
 0x63f   :  { %v12159_v49 = vadd.f32 %v12158_v2, %v12157_v48  ;;  %v9964_v62 = vadd.f32 %v12156_v37, %v8158_v57 }
 0x640   :  { %12246 = vmatpush3.bf16.msra.mxu1 %v14226_v12 }
 0x641   :  { %12247 = vmatprep.subr.bf16.mxu1 %v14227_v44  ;;  %v9967_v5 = vadd.f32 %v12159_v49, %v8158_v57 }
 0x644   :  { %12248 = vmatpush3.bf16.msra.mxu1 %v14228_v50 }
 0x65b   :  { %v12176_v58 = vpop.f32.mrb[20].mxu0 }
 0x65c   :  { %v12177_v61 = vpop.f32.mrb[21].mxu0 }
 0x65d   :  { %v12178_v1 = vadd.f32 %v12177_v61, %v12176_v58  ;;  %v12179_v6 = vpop.f32.mrb[22].mxu0 }
 0x65e   :  { %v12180_v53 = vpop.f32.mrb[23].mxu0 }
 0x65f   :  { %v12181_v8 = vadd.f32 %v12180_v53, %v12179_v6  ;;  %v10005_v10 = vadd.f32 %v12178_v1, %v9964_v62 }
 0x661   :  { %v10008_v11 = vadd.f32 %v12181_v8, %v9967_v5 }
 0x674   :  { %v10045_v52 = vpop.f32.mrb[24].mxu0 }
 0x675   :  { %v10046_v63 = vadd.f32 %v10045_v52, %v10005_v10  ;;  %v12288_v45 = vpop.f32.mrb[25].mxu0 }
 0x676   :  { %v10048_v13 = vpop.f32.mrb[26].mxu0 }
 0x677   :  { %v10049_v15 = vadd.f32 %v10048_v13, %v10008_v11  ;;  %v12289_v16 = vpop.f32.mrb[27].mxu0  ;;  %v10058_v17 = vmax.f32 %v10046_v63, 0.0 }
 0x679   :  { %v10065_v59 = vmax.f32 %v10049_v15, 0.0 }
 0x67b   :  { %v10072_v18 = vpack.c.bf16 %v10065_v59, %v10058_v17 }
 0x67d   :  { %12295 = vmatmul.mubr.msk.bf16.vlgmr.msra.gmra.mrb[32].mxu0 %vm4461_vm0, %v10072_v18 }
 0x6b3   :  { %v9920_v60 = vpop.f32.mrb[56].mxu1 }
 0x6b4   :  { %v12326_v20 = vadd.f32 %v9920_v60, %v8150_v7  ;;  %v9922_v56 = vpop.f32.mrb[57].mxu1 }
 0x6b5   :  { %v12327_v3 = vadd.f32 %v9922_v56, %v8154_v19  ;;  %v9924_v21 = vpop.f32.mrb[58].mxu1 }
 0x6b6   :  { %v12328_v23 = vadd.f32 %v9924_v21, %v8150_v7  ;;  %v9926_v4 = vpop.f32.mrb[59].mxu1  ;;  %v10056_v27 = vmax.f32 %v12326_v20, 0.0 }
 0x6b7   :  { %v12329_v26 = vadd.f32 %v9926_v4, %v8154_v19  ;;  %v10057_v29 = vmax.f32 %v12327_v3, 0.0 }
 0x6b8   :  { %v10063_v28 = vmax.f32 %v12328_v23, 0.0 }
 0x6b9   :  { %v10064_v30 = vmax.f32 %v12329_v26, 0.0 }
 0x6ba   :  { %v10070_v31 = vpack.c.bf16 %v10063_v28, %v10056_v27 }
 0x6bb   :  { %v10071_v41 = vpack.c.bf16 %v10064_v30, %v10057_v29 }
 0x6bd   :  { %10597 = vmatprep.mubr.bf16.mxu1 %v10071_v41 }
 0x6be   :  { %10598 = vmatmul.mubr.bf16.vlgmr.msra.gmra.mrb[64].mxu1 %v10070_v31 }
 0x6f9   :  { %v12205_v25 = vpop.f32.mrb[60].mxu1  ;;  %v12227_v54 = vpop.f32.mrb[28].mxu0 }
 0x6fa   :  { %v12206_v0 = vpop.f32.mrb[61].mxu1  ;;  %v12228_v36 = vpop.f32.mrb[29].mxu0 }
 0x6fb   :  { %v12207_v38 = vadd.f32 %v12206_v0, %v12205_v25  ;;  %v12229_v14 = vadd.f32 %v12228_v36, %v12227_v54  ;;  %v12208_v22 = vpop.f32.mrb[62].mxu1  ;;  %v12230_v32 = vpop.f32.mrb[30].mxu0 }
 0x6fc   :  { %v12209_v46 = vpop.f32.mrb[63].mxu1  ;;  %v12231_v33 = vpop.f32.mrb[31].mxu0 }
 0x6fd   :  { %v10518_v24 = vadd.f32 %v12207_v38, %v11882_v9  ;;  %v12210_v43 = vadd.f32 %v12209_v46, %v12208_v22  ;;  %v12232_v35 = vadd.f32 %v12231_v33, %v12230_v32 }
 0x6ff   :  { %v10559_v40 = vadd.f32 %v12229_v14, %v10518_v24  ;;  %v10521_v51 = vadd.f32 %v12210_v43, %v11882_v9 }
 0x701   :  { %v10562_v34 = vadd.f32 %v12232_v35, %v10521_v51 }
 0x750   :  { %v10640_v42 = vpop.f32.mrb[32].mxu0 }
 0x751   :  { %v12296_v55 = vpop.f32.mrb[33].mxu0 }
 0x752   :  { %v10643_v39 = vpop.f32.mrb[34].mxu0 }
 0x753   :  { %v12297_v47 = vpop.f32.mrb[35].mxu0 }
 0x791   :  { %v12249_v12 = vpop.f32.mrb[64].mxu1 }
 0x792   :  { %v12250_v37 = vpop.f32.mrb[65].mxu1 }
 0x793   :  { %v12251_v48 = vadd.f32 %v12250_v37, %v12249_v12  ;;  %v12252_v44 = vpop.f32.mrb[66].mxu1 }
 0x794   :  { %v12253_v2 = vpop.f32.mrb[67].mxu1 }
 0x795   :  { %v10600_v49 = vadd.f32 %v12251_v48, %v10559_v40  ;;  %v12254_v50 = vadd.f32 %v12253_v2, %v12252_v44 }
 0x797   :  { %v10641_v57 = vadd.f32 %v10640_v42, %v10600_v49  ;;  %v10603_v58 = vadd.f32 %v12254_v50, %v10562_v34 }
 0x799   :  { %10647 = vst [vmem:[%s18388_s9] sm:$0xff] %v10641_v57  ;;  %v10644_v61 = vadd.f32 %v10643_v39, %v10603_v58 }
 0x79b   :  { %10648 = vst [vmem:[%s18388_s9 + $0x8] sm:$0xff] %v10644_v61 }

</bundles_post_ra>
